<compile_context>
chip_gen: v7x
topology: tpu7x:2x2x1
jax: 0.10.0
libtpu: 0.0.40
codegen_flags: <defaults>
</compile_context>

<pallas_src>
import math

import jax
import jax.numpy as jnp
from jax.experimental import pallas as pl
from jax.experimental.pallas import tpu as pltpu

# (block name -> [(in_dim, out_dim), ...])  -- SiLU between layers, none at end.
BLOCKS = {
    "allfirst":   [(128, 128), (128, 256), (256, 128)],
    "mlp2":       [(128, 128), (128, 256), (256, 128)],
    "proj":       [(128, 128), (128, 256), (256, 128)],
    "down_proj":  [(256, 128), (128, 256), (256, 128)],   # layer 0 split in-kernel
    "aftertime":  [(128, 128), (128, 256), (256, 512), (512, 256), (256, 128)],
    "aftertime2": [(128, 128), (128, 256), (256, 512), (512, 256), (256, 128)],
    "out":        [(128, 128)],
}
BLOCK_ORDER = ("allfirst", "mlp2", "proj", "down_proj",
               "aftertime", "aftertime2", "out")

WEIGHT_DTYPE = jnp.bfloat16   # MXU operand dtype; accumulation stays f32


def _build_index_maps():
    """Static map: (block, layer) -> where its weight/bias live in the stacks."""
    w_counts, b_counts, layer_map = {}, {}, {}
    for name in BLOCK_ORDER:
        for li, (din, dout) in enumerate(BLOCKS[name]):
            if name == "down_proj" and li == 0:
                # [256,128] split along the input dim into two [128,128] halves.
                wi_top = w_counts.setdefault((128, 128), 0)
                w_counts[(128, 128)] += 1
                wi_bot = w_counts[(128, 128)]
                w_counts[(128, 128)] += 1
                bi = b_counts.setdefault(dout, 0)
                b_counts[dout] += 1
                layer_map[(name, li)] = ("split", wi_top, wi_bot, dout, bi)
            else:
                wi = w_counts.setdefault((din, dout), 0)
                w_counts[(din, dout)] += 1
                bi = b_counts.setdefault(dout, 0)
                b_counts[dout] += 1
                layer_map[(name, li)] = ("dense", (din, dout), wi, dout, bi)
    return layer_map, list(w_counts.keys()), list(b_counts.keys())


LAYER_MAP, W_GROUP_SHAPES, B_GROUP_DIMS = _build_index_maps()


def timestep_embedding(t, dim, max_period=10000):
    """Matches the PyTorch TimestepEmbedding (dim even -> no zero pad)."""
    half = dim // 2
    freqs = jnp.exp(
        -math.log(max_period) * jnp.arange(half, dtype=jnp.float32) / half
    )
    args = t[:, None].astype(jnp.float32) * freqs[None, :]
    return jnp.concatenate([jnp.cos(args), jnp.sin(args)], axis=-1)


# ---------------------------------------------------------------------------
# Kernel
# ---------------------------------------------------------------------------
def _linear_bf16(x_f32, w_bf16, b_f32):
    """y = x @ W + b : bf16 MXU operands, f32 accumulate, f32 bias/result."""
    return jnp.dot(x_f32.astype(WEIGHT_DTYPE), w_bf16,
                   preferred_element_type=jnp.float32) + b_f32


def _block(x, name, w_refs, b_refs, split_inputs=None):
    """Sequential(Linear, SiLU, ..., Linear); refs read at their use site."""
    sizes = BLOCKS[name]
    n = len(sizes)
    for li in range(n):
        entry = LAYER_MAP[(name, li)]
        if entry[0] == "split":
            _, wi_top, wi_bot, bdim, bi = entry
            th, te = split_inputs
            w_top = w_refs[(128, 128)][wi_top]        # [128,128] bf16
            w_bot = w_refs[(128, 128)][wi_bot]        # [128,128] bf16
            b = b_refs[bdim][bi]                      # [1,128] f32
            y = (jnp.dot(th.astype(WEIGHT_DTYPE), w_top,
                         preferred_element_type=jnp.float32)
                 + jnp.dot(te.astype(WEIGHT_DTYPE), w_bot,
                           preferred_element_type=jnp.float32)
                 + b)
        else:
            _, wshape, wi, bdim, bi = entry
            w = w_refs[wshape][wi]                    # [din,dout] bf16
            b = b_refs[bdim][bi]                      # [1,dout] f32
            y = _linear_bf16(x, w, b)
        if li < n - 1:
            y = y * jax.nn.sigmoid(y)                 # SiLU in f32
        x = y
    return x


def dynamics_kernel(x_ref, temb_ref, *refs):
    nw = len(W_GROUP_SHAPES)
    nb = len(B_GROUP_DIMS)
    w_refs = dict(zip(W_GROUP_SHAPES, refs[:nw]))
    b_refs = dict(zip(B_GROUP_DIMS, refs[nw:nw + nb]))
    out_ref = refs[-1]

    x = x_ref[...].astype(jnp.float32)          # noitarget           [TM, 128]
    temb = temb_ref[...].astype(jnp.float32)    # timestep embedding  [TM, 128]

    transed_target = _block(x, "allfirst", w_refs, b_refs) + x
    target_hidden = _block(transed_target, "mlp2", w_refs, b_refs) + transed_target
    temb_p = _block(temb, "proj", w_refs, b_refs)
    # concat-free down_proj (layer 0 uses the split weight on (th, temb_p))
    target_hidden = _block(None, "down_proj", w_refs, b_refs,
                           split_inputs=(target_hidden, temb_p)) + temb_p
    output = _block(target_hidden, "aftertime", w_refs, b_refs) + target_hidden
    output2 = _block(output, "aftertime2", w_refs, b_refs) + output
    output = _block(output2, "out", w_refs, b_refs)          # single Linear
    out_ref[...] = (x - output).astype(out_ref.dtype)


# ---------------------------------------------------------------------------
# Parameters (PyTorch-Linear-style init; weights stored as [in, out])
# ---------------------------------------------------------------------------
def init_params(key):
    flat = []
    i = 0
    for name in BLOCK_ORDER:
        for (din, dout) in BLOCKS[name]:
            kw, kb = jax.random.split(jax.random.fold_in(key, i))
            i += 1
            bound = 1.0 / math.sqrt(din)
            w = jax.random.uniform(kw, (din, dout), jnp.float32, -bound, bound)
            b = jax.random.uniform(kb, (1, dout), jnp.float32, -bound, bound)
            flat.extend([w, b])
    return flat


def pack_params(params_flat):
    """Group weights by shape (bf16 stacks) and biases by out-dim (f32 stacks)."""
    w_groups = {s: [] for s in W_GROUP_SHAPES}
    b_groups = {d: [] for d in B_GROUP_DIMS}
    idx = 0
    for name in BLOCK_ORDER:
        for li, (din, dout) in enumerate(BLOCKS[name]):
            w, b = params_flat[idx], params_flat[idx + 1]
            idx += 2
            if name == "down_proj" and li == 0:
                w_groups[(128, 128)].append(w[:128, :])   # multiplies target_hidden
                w_groups[(128, 128)].append(w[128:, :])   # multiplies temb_p
            else:
                w_groups[(din, dout)].append(w)
            b_groups[dout].append(b.reshape(1, dout))
    w_stacks = [jnp.stack(w_groups[s]).astype(WEIGHT_DTYPE) for s in W_GROUP_SHAPES]
    b_stacks = [jnp.stack(b_groups[d]).astype(jnp.float32) for d in B_GROUP_DIMS]
    return w_stacks, b_stacks


# ---------------------------------------------------------------------------
# Wrapper
# ---------------------------------------------------------------------------
def dynamics_forward(t, noidata, params_flat):
    N, D = noidata.shape
    assert D == 128, "feature dim must be 128"
    temb = timestep_embedding(t, 128)

    # Cap the batch tile; weights stay resident (constant index_map) across tiles.
    TM = N if N <= 256 else 256
    assert N % TM == 0 and (TM == N or TM % 8 == 0), \
        "batch must be a multiple of the 256-row tile (or <=256)"
    # TODO(synk): pad/mask the batch tail instead of asserting for ragged N.

    w_stacks, b_stacks = pack_params(params_flat)

    in_specs = [
        pl.BlockSpec((TM, 128), lambda i: (i, 0)),   # noidata
        pl.BlockSpec((TM, 128), lambda i: (i, 0)),   # temb
    ]
    for w in w_stacks:
        in_specs.append(pl.BlockSpec(w.shape, lambda i: (0, 0, 0)))
    for b in b_stacks:
        in_specs.append(pl.BlockSpec(b.shape, lambda i: (0, 0, 0)))

    out = pl.pallas_call(
        dynamics_kernel,
        out_shape=jax.ShapeDtypeStruct((N, 128), noidata.dtype),
        grid_spec=pltpu.PrefetchScalarGridSpec(
            num_scalar_prefetch=0,
            grid=(N // TM,),
            in_specs=in_specs,
            out_specs=pl.BlockSpec((TM, 128), lambda i: (i, 0)),
        ),
        compiler_params=pltpu.CompilerParams(
            dimension_semantics=("parallel",),      # batch tiles are independent
            vmem_limit_bytes=32 << 20,              # actual need ~6-10 MiB
        ),
    )(noidata, temb, *w_stacks, *b_stacks)
    return out


# ---------------------------------------------------------------------------
# Pure-JAX reference (mirrors the PyTorch forward)
# ---------------------------------------------------------------------------
def dynamics_forward_ref(t, noidata, params_flat, operand_dtype=jnp.float32):
    def linear(x, w, b):
        return jnp.dot(x.astype(operand_dtype), w.astype(operand_dtype),
                       preferred_element_type=jnp.float32) + b

    def mlp(x, layers):
        n = len(layers)
        for i, (w, b) in enumerate(layers):
            y = linear(x, w, b)
            if i < n - 1:
                y = y * jax.nn.sigmoid(y)
            x = y
        return x

    blocks, idx = {}, 0
    for name in BLOCK_ORDER:
        layers = []
        for _ in BLOCKS[name]:
            layers.append((params_flat[idx], params_flat[idx + 1]))
            idx += 2
        blocks[name] = layers

    x = noidata.astype(jnp.float32)
    temb = timestep_embedding(t, 128)
    tt = mlp(x, blocks["allfirst"]) + x
    th = mlp(tt, blocks["mlp2"]) + tt
    te = mlp(temb, blocks["proj"])
    th = mlp(jnp.concatenate([th, te], axis=1), blocks["down_proj"]) + te
    o = mlp(th, blocks["aftertime"]) + th
    o2 = mlp(o, blocks["aftertime2"]) + o
    o = mlp(o2, blocks["out"])
    return x - o


if __name__ == "__main__":
    key = jax.random.PRNGKey(0)
    k_t, k_x, k_p = jax.random.split(key, 3)

    N = 8  # small batch
    t = jax.random.uniform(k_t, (N,), jnp.float32, 0.0, 1000.0)
    noidata = jax.random.normal(k_x, (N, 128), jnp.float32)
    params = init_params(k_p)

    out = dynamics_forward(t, noidata, params)
    out = jax.block_until_ready(out)
    assert out.shape == (N, 128)

    # Tight check vs a reference using the same bf16 matmul operands (verifies
    # the kernel wiring exactly), plus a loose check vs the full-f32 reference
    # (bf16 operand rounding accounts for the remaining drift).
    ref_bf16 = dynamics_forward_ref(t, noidata, params, operand_dtype=jnp.bfloat16)
    ref_f32 = dynamics_forward_ref(t, noidata, params, operand_dtype=jnp.float32)
    assert jnp.allclose(out, ref_bf16, atol=1e-3, rtol=1e-3), \
        "mismatch vs bf16-operand JAX reference"
    assert jnp.allclose(out, ref_f32, atol=1e-1, rtol=1e-1), \
        "mismatch vs f32 JAX reference"

    print("KERNEL_OK")
</pallas_src>

<mosaic_0001>
module attributes {stable_mosaic.version = 11 : i64} {
  func.func @dynamics_kernel(%arg0: i32, %arg1: memref<8x128xf32, #tpu.memory_space<vmem>>, %arg2: memref<8x128xf32, #tpu.memory_space<vmem>>, %arg3: memref<8x128x128xbf16, #tpu.memory_space<vmem>>, %arg4: memref<6x128x256xbf16, #tpu.memory_space<vmem>>, %arg5: memref<6x256x128xbf16, #tpu.memory_space<vmem>>, %arg6: memref<2x256x512xbf16, #tpu.memory_space<vmem>>, %arg7: memref<2x512x256xbf16, #tpu.memory_space<vmem>>, %arg8: memref<13x1x128xf32, #tpu.memory_space<vmem>>, %arg9: memref<8x1x256xf32, #tpu.memory_space<vmem>>, %arg10: memref<2x1x512xf32, #tpu.memory_space<vmem>>, %arg11: memref<8x128xf32, #tpu.memory_space<vmem>>) attributes {dimension_semantics = [#tpu.dimension_semantics<parallel>], iteration_bounds = array<i64: 1>, scalar_prefetch = 0 : i64, scratch_operands = 0 : i64, tpu.core_type = #tpu.core_type<tc>, window_params = [{transform_indices = @transform_0, window_bounds = array<i64: 8, 128>}, {transform_indices = @transform_1, window_bounds = array<i64: 8, 128>}, {pipeline_mode = #tpu.pipeline_mode<synchronous>, transform_indices = @transform_2, window_bounds = array<i64: 8, 128, 128>}, {pipeline_mode = #tpu.pipeline_mode<synchronous>, transform_indices = @transform_3, window_bounds = array<i64: 6, 128, 256>}, {pipeline_mode = #tpu.pipeline_mode<synchronous>, transform_indices = @transform_4, window_bounds = array<i64: 6, 256, 128>}, {pipeline_mode = #tpu.pipeline_mode<synchronous>, transform_indices = @transform_5, window_bounds = array<i64: 2, 256, 512>}, {pipeline_mode = #tpu.pipeline_mode<synchronous>, transform_indices = @transform_6, window_bounds = array<i64: 2, 512, 256>}, {pipeline_mode = #tpu.pipeline_mode<synchronous>, transform_indices = @transform_7, window_bounds = array<i64: 13, 1, 128>}, {pipeline_mode = #tpu.pipeline_mode<synchronous>, transform_indices = @transform_8, window_bounds = array<i64: 8, 1, 256>}, {pipeline_mode = #tpu.pipeline_mode<synchronous>, transform_indices = @transform_9, window_bounds = array<i64: 2, 1, 512>}, {transform_indices = @transform_10, window_bounds = array<i64: 8, 128>}]} {
    %c0 = arith.constant 0 : index
    %c0_0 = arith.constant 0 : index
    %0 = vector.load %arg1[%c0, %c0_0] : memref<8x128xf32, #tpu.memory_space<vmem>>, vector<8x128xf32>
    %c0_1 = arith.constant 0 : index
    %c0_2 = arith.constant 0 : index
    %1 = vector.load %arg2[%c0_1, %c0_2] : memref<8x128xf32, #tpu.memory_space<vmem>>, vector<8x128xf32>
    %c0_3 = arith.constant 0 : index
    %c0_4 = arith.constant 0 : index
    %c0_5 = arith.constant 0 : index
    %2 = vector.load %arg3[%c0_3, %c0_4, %c0_5] : memref<8x128x128xbf16, #tpu.memory_space<vmem>>, vector<1x128x128xbf16>
    %3 = vector.shape_cast %2 : vector<1x128x128xbf16> to vector<128x128xbf16>
    %c0_6 = arith.constant 0 : index
    %c0_7 = arith.constant 0 : index
    %c0_8 = arith.constant 0 : index
    %4 = vector.load %arg8[%c0_6, %c0_7, %c0_8] : memref<13x1x128xf32, #tpu.memory_space<vmem>>, vector<1x1x128xf32>
    %5 = vector.shape_cast %4 : vector<1x1x128xf32> to vector<1x128xf32>
    %6 = arith.truncf %0 : vector<8x128xf32> to vector<8x128xbf16>
    %cst = arith.constant dense<0.000000e+00> : vector<8x128xf32>
    %7 = tpu.matmul %6, %3, %cst {dimension_numbers = #tpu.dot_dimension_numbers<[1], [0], [0], [1], [0, 0, 1, 1], [], []>} : vector<8x128xbf16>, vector<128x128xbf16>, vector<8x128xf32> -> vector<8x128xf32>
    %8 = vector.broadcast %5 : vector<1x128xf32> to vector<8x128xf32>
    %9 = arith.addf %7, %8 : vector<8x128xf32>
    %10 = arith.negf %9 : vector<8x128xf32>
    %11 = math.exp %10 : vector<8x128xf32>
    %cst_9 = arith.constant 1.000000e+00 : f32
    %12 = vector.broadcast %cst_9 : f32 to vector<8x128xf32>
    %13 = arith.addf %12, %11 : vector<8x128xf32>
    %14 = arith.divf %12, %13 : vector<8x128xf32>
    %15 = arith.mulf %9, %14 : vector<8x128xf32>
    %c0_10 = arith.constant 0 : index
    %c0_11 = arith.constant 0 : index
    %c0_12 = arith.constant 0 : index
    %16 = vector.load %arg4[%c0_10, %c0_11, %c0_12] : memref<6x128x256xbf16, #tpu.memory_space<vmem>>, vector<1x128x256xbf16>
    %17 = vector.shape_cast %16 : vector<1x128x256xbf16> to vector<128x256xbf16>
    %c0_13 = arith.constant 0 : index
    %c0_14 = arith.constant 0 : index
    %c0_15 = arith.constant 0 : index
    %18 = vector.load %arg9[%c0_13, %c0_14, %c0_15] : memref<8x1x256xf32, #tpu.memory_space<vmem>>, vector<1x1x256xf32>
    %19 = vector.shape_cast %18 : vector<1x1x256xf32> to vector<1x256xf32>
    %20 = arith.truncf %15 : vector<8x128xf32> to vector<8x128xbf16>
    %cst_16 = arith.constant dense<0.000000e+00> : vector<8x256xf32>
    %21 = tpu.matmul %20, %17, %cst_16 {dimension_numbers = #tpu.dot_dimension_numbers<[1], [0], [0], [1], [0, 0, 1, 1], [], []>} : vector<8x128xbf16>, vector<128x256xbf16>, vector<8x256xf32> -> vector<8x256xf32>
    %22 = vector.broadcast %19 : vector<1x256xf32> to vector<8x256xf32>
    %23 = arith.addf %21, %22 : vector<8x256xf32>
    %24 = arith.negf %23 : vector<8x256xf32>
    %25 = math.exp %24 : vector<8x256xf32>
    %cst_17 = arith.constant 1.000000e+00 : f32
    %26 = vector.broadcast %cst_17 : f32 to vector<8x256xf32>
    %27 = arith.addf %26, %25 : vector<8x256xf32>
    %28 = arith.divf %26, %27 : vector<8x256xf32>
    %29 = arith.mulf %23, %28 : vector<8x256xf32>
    %c0_18 = arith.constant 0 : index
    %c0_19 = arith.constant 0 : index
    %c0_20 = arith.constant 0 : index
    %30 = vector.load %arg5[%c0_18, %c0_19, %c0_20] : memref<6x256x128xbf16, #tpu.memory_space<vmem>>, vector<1x256x128xbf16>
    %31 = vector.shape_cast %30 : vector<1x256x128xbf16> to vector<256x128xbf16>
    %c1 = arith.constant 1 : index
    %c0_21 = arith.constant 0 : index
    %c0_22 = arith.constant 0 : index
    %32 = vector.load %arg8[%c1, %c0_21, %c0_22] : memref<13x1x128xf32, #tpu.memory_space<vmem>>, vector<1x1x128xf32>
    %33 = vector.shape_cast %32 : vector<1x1x128xf32> to vector<1x128xf32>
    %34 = arith.truncf %29 : vector<8x256xf32> to vector<8x256xbf16>
    %cst_23 = arith.constant dense<0.000000e+00> : vector<8x128xf32>
    %35 = tpu.matmul %34, %31, %cst_23 {dimension_numbers = #tpu.dot_dimension_numbers<[1], [0], [0], [1], [0, 0, 1, 1], [], []>} : vector<8x256xbf16>, vector<256x128xbf16>, vector<8x128xf32> -> vector<8x128xf32>
    %36 = vector.broadcast %33 : vector<1x128xf32> to vector<8x128xf32>
    %37 = arith.addf %35, %36 : vector<8x128xf32>
    %38 = arith.addf %37, %0 : vector<8x128xf32>
    %c1_24 = arith.constant 1 : index
    %c0_25 = arith.constant 0 : index
    %c0_26 = arith.constant 0 : index
    %39 = vector.load %arg3[%c1_24, %c0_25, %c0_26] : memref<8x128x128xbf16, #tpu.memory_space<vmem>>, vector<1x128x128xbf16>
    %40 = vector.shape_cast %39 : vector<1x128x128xbf16> to vector<128x128xbf16>
    %c2 = arith.constant 2 : index
    %c0_27 = arith.constant 0 : index
    %c0_28 = arith.constant 0 : index
    %41 = vector.load %arg8[%c2, %c0_27, %c0_28] : memref<13x1x128xf32, #tpu.memory_space<vmem>>, vector<1x1x128xf32>
    %42 = vector.shape_cast %41 : vector<1x1x128xf32> to vector<1x128xf32>
    %43 = arith.truncf %38 : vector<8x128xf32> to vector<8x128xbf16>
    %cst_29 = arith.constant dense<0.000000e+00> : vector<8x128xf32>
    %44 = tpu.matmul %43, %40, %cst_29 {dimension_numbers = #tpu.dot_dimension_numbers<[1], [0], [0], [1], [0, 0, 1, 1], [], []>} : vector<8x128xbf16>, vector<128x128xbf16>, vector<8x128xf32> -> vector<8x128xf32>
    %45 = vector.broadcast %42 : vector<1x128xf32> to vector<8x128xf32>
    %46 = arith.addf %44, %45 : vector<8x128xf32>
    %47 = arith.negf %46 : vector<8x128xf32>
    %48 = math.exp %47 : vector<8x128xf32>
    %cst_30 = arith.constant 1.000000e+00 : f32
    %49 = vector.broadcast %cst_30 : f32 to vector<8x128xf32>
    %50 = arith.addf %49, %48 : vector<8x128xf32>
    %51 = arith.divf %49, %50 : vector<8x128xf32>
    %52 = arith.mulf %46, %51 : vector<8x128xf32>
    %c1_31 = arith.constant 1 : index
    %c0_32 = arith.constant 0 : index
    %c0_33 = arith.constant 0 : index
    %53 = vector.load %arg4[%c1_31, %c0_32, %c0_33] : memref<6x128x256xbf16, #tpu.memory_space<vmem>>, vector<1x128x256xbf16>
    %54 = vector.shape_cast %53 : vector<1x128x256xbf16> to vector<128x256xbf16>
    %c1_34 = arith.constant 1 : index
    %c0_35 = arith.constant 0 : index
    %c0_36 = arith.constant 0 : index
    %55 = vector.load %arg9[%c1_34, %c0_35, %c0_36] : memref<8x1x256xf32, #tpu.memory_space<vmem>>, vector<1x1x256xf32>
    %56 = vector.shape_cast %55 : vector<1x1x256xf32> to vector<1x256xf32>
    %57 = arith.truncf %52 : vector<8x128xf32> to vector<8x128xbf16>
    %cst_37 = arith.constant dense<0.000000e+00> : vector<8x256xf32>
    %58 = tpu.matmul %57, %54, %cst_37 {dimension_numbers = #tpu.dot_dimension_numbers<[1], [0], [0], [1], [0, 0, 1, 1], [], []>} : vector<8x128xbf16>, vector<128x256xbf16>, vector<8x256xf32> -> vector<8x256xf32>
    %59 = vector.broadcast %56 : vector<1x256xf32> to vector<8x256xf32>
    %60 = arith.addf %58, %59 : vector<8x256xf32>
    %61 = arith.negf %60 : vector<8x256xf32>
    %62 = math.exp %61 : vector<8x256xf32>
    %cst_38 = arith.constant 1.000000e+00 : f32
    %63 = vector.broadcast %cst_38 : f32 to vector<8x256xf32>
    %64 = arith.addf %63, %62 : vector<8x256xf32>
    %65 = arith.divf %63, %64 : vector<8x256xf32>
    %66 = arith.mulf %60, %65 : vector<8x256xf32>
    %c1_39 = arith.constant 1 : index
    %c0_40 = arith.constant 0 : index
    %c0_41 = arith.constant 0 : index
    %67 = vector.load %arg5[%c1_39, %c0_40, %c0_41] : memref<6x256x128xbf16, #tpu.memory_space<vmem>>, vector<1x256x128xbf16>
    %68 = vector.shape_cast %67 : vector<1x256x128xbf16> to vector<256x128xbf16>
    %c3 = arith.constant 3 : index
    %c0_42 = arith.constant 0 : index
    %c0_43 = arith.constant 0 : index
    %69 = vector.load %arg8[%c3, %c0_42, %c0_43] : memref<13x1x128xf32, #tpu.memory_space<vmem>>, vector<1x1x128xf32>
    %70 = vector.shape_cast %69 : vector<1x1x128xf32> to vector<1x128xf32>
    %71 = arith.truncf %66 : vector<8x256xf32> to vector<8x256xbf16>
    %cst_44 = arith.constant dense<0.000000e+00> : vector<8x128xf32>
    %72 = tpu.matmul %71, %68, %cst_44 {dimension_numbers = #tpu.dot_dimension_numbers<[1], [0], [0], [1], [0, 0, 1, 1], [], []>} : vector<8x256xbf16>, vector<256x128xbf16>, vector<8x128xf32> -> vector<8x128xf32>
    %73 = vector.broadcast %70 : vector<1x128xf32> to vector<8x128xf32>
    %74 = arith.addf %72, %73 : vector<8x128xf32>
    %75 = arith.addf %74, %38 : vector<8x128xf32>
    %c2_45 = arith.constant 2 : index
    %c0_46 = arith.constant 0 : index
    %c0_47 = arith.constant 0 : index
    %76 = vector.load %arg3[%c2_45, %c0_46, %c0_47] : memref<8x128x128xbf16, #tpu.memory_space<vmem>>, vector<1x128x128xbf16>
    %77 = vector.shape_cast %76 : vector<1x128x128xbf16> to vector<128x128xbf16>
    %c4 = arith.constant 4 : index
    %c0_48 = arith.constant 0 : index
    %c0_49 = arith.constant 0 : index
    %78 = vector.load %arg8[%c4, %c0_48, %c0_49] : memref<13x1x128xf32, #tpu.memory_space<vmem>>, vector<1x1x128xf32>
    %79 = vector.shape_cast %78 : vector<1x1x128xf32> to vector<1x128xf32>
    %80 = arith.truncf %1 : vector<8x128xf32> to vector<8x128xbf16>
    %cst_50 = arith.constant dense<0.000000e+00> : vector<8x128xf32>
    %81 = tpu.matmul %80, %77, %cst_50 {dimension_numbers = #tpu.dot_dimension_numbers<[1], [0], [0], [1], [0, 0, 1, 1], [], []>} : vector<8x128xbf16>, vector<128x128xbf16>, vector<8x128xf32> -> vector<8x128xf32>
    %82 = vector.broadcast %79 : vector<1x128xf32> to vector<8x128xf32>
    %83 = arith.addf %81, %82 : vector<8x128xf32>
    %84 = arith.negf %83 : vector<8x128xf32>
    %85 = math.exp %84 : vector<8x128xf32>
    %cst_51 = arith.constant 1.000000e+00 : f32
    %86 = vector.broadcast %cst_51 : f32 to vector<8x128xf32>
    %87 = arith.addf %86, %85 : vector<8x128xf32>
    %88 = arith.divf %86, %87 : vector<8x128xf32>
    %89 = arith.mulf %83, %88 : vector<8x128xf32>
    %c2_52 = arith.constant 2 : index
    %c0_53 = arith.constant 0 : index
    %c0_54 = arith.constant 0 : index
    %90 = vector.load %arg4[%c2_52, %c0_53, %c0_54] : memref<6x128x256xbf16, #tpu.memory_space<vmem>>, vector<1x128x256xbf16>
    %91 = vector.shape_cast %90 : vector<1x128x256xbf16> to vector<128x256xbf16>
    %c2_55 = arith.constant 2 : index
    %c0_56 = arith.constant 0 : index
    %c0_57 = arith.constant 0 : index
    %92 = vector.load %arg9[%c2_55, %c0_56, %c0_57] : memref<8x1x256xf32, #tpu.memory_space<vmem>>, vector<1x1x256xf32>
    %93 = vector.shape_cast %92 : vector<1x1x256xf32> to vector<1x256xf32>
    %94 = arith.truncf %89 : vector<8x128xf32> to vector<8x128xbf16>
    %cst_58 = arith.constant dense<0.000000e+00> : vector<8x256xf32>
    %95 = tpu.matmul %94, %91, %cst_58 {dimension_numbers = #tpu.dot_dimension_numbers<[1], [0], [0], [1], [0, 0, 1, 1], [], []>} : vector<8x128xbf16>, vector<128x256xbf16>, vector<8x256xf32> -> vector<8x256xf32>
    %96 = vector.broadcast %93 : vector<1x256xf32> to vector<8x256xf32>
    %97 = arith.addf %95, %96 : vector<8x256xf32>
    %98 = arith.negf %97 : vector<8x256xf32>
    %99 = math.exp %98 : vector<8x256xf32>
    %cst_59 = arith.constant 1.000000e+00 : f32
    %100 = vector.broadcast %cst_59 : f32 to vector<8x256xf32>
    %101 = arith.addf %100, %99 : vector<8x256xf32>
    %102 = arith.divf %100, %101 : vector<8x256xf32>
    %103 = arith.mulf %97, %102 : vector<8x256xf32>
    %c2_60 = arith.constant 2 : index
    %c0_61 = arith.constant 0 : index
    %c0_62 = arith.constant 0 : index
    %104 = vector.load %arg5[%c2_60, %c0_61, %c0_62] : memref<6x256x128xbf16, #tpu.memory_space<vmem>>, vector<1x256x128xbf16>
    %105 = vector.shape_cast %104 : vector<1x256x128xbf16> to vector<256x128xbf16>
    %c5 = arith.constant 5 : index
    %c0_63 = arith.constant 0 : index
    %c0_64 = arith.constant 0 : index
    %106 = vector.load %arg8[%c5, %c0_63, %c0_64] : memref<13x1x128xf32, #tpu.memory_space<vmem>>, vector<1x1x128xf32>
    %107 = vector.shape_cast %106 : vector<1x1x128xf32> to vector<1x128xf32>
    %108 = arith.truncf %103 : vector<8x256xf32> to vector<8x256xbf16>
    %cst_65 = arith.constant dense<0.000000e+00> : vector<8x128xf32>
    %109 = tpu.matmul %108, %105, %cst_65 {dimension_numbers = #tpu.dot_dimension_numbers<[1], [0], [0], [1], [0, 0, 1, 1], [], []>} : vector<8x256xbf16>, vector<256x128xbf16>, vector<8x128xf32> -> vector<8x128xf32>
    %110 = vector.broadcast %107 : vector<1x128xf32> to vector<8x128xf32>
    %111 = arith.addf %109, %110 : vector<8x128xf32>
    %c3_66 = arith.constant 3 : index
    %c0_67 = arith.constant 0 : index
    %c0_68 = arith.constant 0 : index
    %112 = vector.load %arg3[%c3_66, %c0_67, %c0_68] : memref<8x128x128xbf16, #tpu.memory_space<vmem>>, vector<1x128x128xbf16>
    %113 = vector.shape_cast %112 : vector<1x128x128xbf16> to vector<128x128xbf16>
    %c4_69 = arith.constant 4 : index
    %c0_70 = arith.constant 0 : index
    %c0_71 = arith.constant 0 : index
    %114 = vector.load %arg3[%c4_69, %c0_70, %c0_71] : memref<8x128x128xbf16, #tpu.memory_space<vmem>>, vector<1x128x128xbf16>
    %115 = vector.shape_cast %114 : vector<1x128x128xbf16> to vector<128x128xbf16>
    %c6 = arith.constant 6 : index
    %c0_72 = arith.constant 0 : index
    %c0_73 = arith.constant 0 : index
    %116 = vector.load %arg8[%c6, %c0_72, %c0_73] : memref<13x1x128xf32, #tpu.memory_space<vmem>>, vector<1x1x128xf32>
    %117 = vector.shape_cast %116 : vector<1x1x128xf32> to vector<1x128xf32>
    %118 = arith.truncf %75 : vector<8x128xf32> to vector<8x128xbf16>
    %cst_74 = arith.constant dense<0.000000e+00> : vector<8x128xf32>
    %119 = tpu.matmul %118, %113, %cst_74 {dimension_numbers = #tpu.dot_dimension_numbers<[1], [0], [0], [1], [0, 0, 1, 1], [], []>} : vector<8x128xbf16>, vector<128x128xbf16>, vector<8x128xf32> -> vector<8x128xf32>
    %120 = arith.truncf %111 : vector<8x128xf32> to vector<8x128xbf16>
    %cst_75 = arith.constant dense<0.000000e+00> : vector<8x128xf32>
    %121 = tpu.matmul %120, %115, %cst_75 {dimension_numbers = #tpu.dot_dimension_numbers<[1], [0], [0], [1], [0, 0, 1, 1], [], []>} : vector<8x128xbf16>, vector<128x128xbf16>, vector<8x128xf32> -> vector<8x128xf32>
    %122 = arith.addf %119, %121 : vector<8x128xf32>
    %123 = vector.broadcast %117 : vector<1x128xf32> to vector<8x128xf32>
    %124 = arith.addf %122, %123 : vector<8x128xf32>
    %125 = arith.negf %124 : vector<8x128xf32>
    %126 = math.exp %125 : vector<8x128xf32>
    %cst_76 = arith.constant 1.000000e+00 : f32
    %127 = vector.broadcast %cst_76 : f32 to vector<8x128xf32>
    %128 = arith.addf %127, %126 : vector<8x128xf32>
    %129 = arith.divf %127, %128 : vector<8x128xf32>
    %130 = arith.mulf %124, %129 : vector<8x128xf32>
    %c3_77 = arith.constant 3 : index
    %c0_78 = arith.constant 0 : index
    %c0_79 = arith.constant 0 : index
    %131 = vector.load %arg4[%c3_77, %c0_78, %c0_79] : memref<6x128x256xbf16, #tpu.memory_space<vmem>>, vector<1x128x256xbf16>
    %132 = vector.shape_cast %131 : vector<1x128x256xbf16> to vector<128x256xbf16>
    %c3_80 = arith.constant 3 : index
    %c0_81 = arith.constant 0 : index
    %c0_82 = arith.constant 0 : index
    %133 = vector.load %arg9[%c3_80, %c0_81, %c0_82] : memref<8x1x256xf32, #tpu.memory_space<vmem>>, vector<1x1x256xf32>
    %134 = vector.shape_cast %133 : vector<1x1x256xf32> to vector<1x256xf32>
    %135 = arith.truncf %130 : vector<8x128xf32> to vector<8x128xbf16>
    %cst_83 = arith.constant dense<0.000000e+00> : vector<8x256xf32>
    %136 = tpu.matmul %135, %132, %cst_83 {dimension_numbers = #tpu.dot_dimension_numbers<[1], [0], [0], [1], [0, 0, 1, 1], [], []>} : vector<8x128xbf16>, vector<128x256xbf16>, vector<8x256xf32> -> vector<8x256xf32>
    %137 = vector.broadcast %134 : vector<1x256xf32> to vector<8x256xf32>
    %138 = arith.addf %136, %137 : vector<8x256xf32>
    %139 = arith.negf %138 : vector<8x256xf32>
    %140 = math.exp %139 : vector<8x256xf32>
    %cst_84 = arith.constant 1.000000e+00 : f32
    %141 = vector.broadcast %cst_84 : f32 to vector<8x256xf32>
    %142 = arith.addf %141, %140 : vector<8x256xf32>
    %143 = arith.divf %141, %142 : vector<8x256xf32>
    %144 = arith.mulf %138, %143 : vector<8x256xf32>
    %c3_85 = arith.constant 3 : index
    %c0_86 = arith.constant 0 : index
    %c0_87 = arith.constant 0 : index
    %145 = vector.load %arg5[%c3_85, %c0_86, %c0_87] : memref<6x256x128xbf16, #tpu.memory_space<vmem>>, vector<1x256x128xbf16>
    %146 = vector.shape_cast %145 : vector<1x256x128xbf16> to vector<256x128xbf16>
    %c7 = arith.constant 7 : index
    %c0_88 = arith.constant 0 : index
    %c0_89 = arith.constant 0 : index
    %147 = vector.load %arg8[%c7, %c0_88, %c0_89] : memref<13x1x128xf32, #tpu.memory_space<vmem>>, vector<1x1x128xf32>
    %148 = vector.shape_cast %147 : vector<1x1x128xf32> to vector<1x128xf32>
    %149 = arith.truncf %144 : vector<8x256xf32> to vector<8x256xbf16>
    %cst_90 = arith.constant dense<0.000000e+00> : vector<8x128xf32>
    %150 = tpu.matmul %149, %146, %cst_90 {dimension_numbers = #tpu.dot_dimension_numbers<[1], [0], [0], [1], [0, 0, 1, 1], [], []>} : vector<8x256xbf16>, vector<256x128xbf16>, vector<8x128xf32> -> vector<8x128xf32>
    %151 = vector.broadcast %148 : vector<1x128xf32> to vector<8x128xf32>
    %152 = arith.addf %150, %151 : vector<8x128xf32>
    %153 = arith.addf %152, %111 : vector<8x128xf32>
    %c5_91 = arith.constant 5 : index
    %c0_92 = arith.constant 0 : index
    %c0_93 = arith.constant 0 : index
    %154 = vector.load %arg3[%c5_91, %c0_92, %c0_93] : memref<8x128x128xbf16, #tpu.memory_space<vmem>>, vector<1x128x128xbf16>
    %155 = vector.shape_cast %154 : vector<1x128x128xbf16> to vector<128x128xbf16>
    %c8 = arith.constant 8 : index
    %c0_94 = arith.constant 0 : index
    %c0_95 = arith.constant 0 : index
    %156 = vector.load %arg8[%c8, %c0_94, %c0_95] : memref<13x1x128xf32, #tpu.memory_space<vmem>>, vector<1x1x128xf32>
    %157 = vector.shape_cast %156 : vector<1x1x128xf32> to vector<1x128xf32>
    %158 = arith.truncf %153 : vector<8x128xf32> to vector<8x128xbf16>
    %cst_96 = arith.constant dense<0.000000e+00> : vector<8x128xf32>
    %159 = tpu.matmul %158, %155, %cst_96 {dimension_numbers = #tpu.dot_dimension_numbers<[1], [0], [0], [1], [0, 0, 1, 1], [], []>} : vector<8x128xbf16>, vector<128x128xbf16>, vector<8x128xf32> -> vector<8x128xf32>
    %160 = vector.broadcast %157 : vector<1x128xf32> to vector<8x128xf32>
    %161 = arith.addf %159, %160 : vector<8x128xf32>
    %162 = arith.negf %161 : vector<8x128xf32>
    %163 = math.exp %162 : vector<8x128xf32>
    %cst_97 = arith.constant 1.000000e+00 : f32
    %164 = vector.broadcast %cst_97 : f32 to vector<8x128xf32>
    %165 = arith.addf %164, %163 : vector<8x128xf32>
    %166 = arith.divf %164, %165 : vector<8x128xf32>
    %167 = arith.mulf %161, %166 : vector<8x128xf32>
    %c4_98 = arith.constant 4 : index
    %c0_99 = arith.constant 0 : index
    %c0_100 = arith.constant 0 : index
    %168 = vector.load %arg4[%c4_98, %c0_99, %c0_100] : memref<6x128x256xbf16, #tpu.memory_space<vmem>>, vector<1x128x256xbf16>
    %169 = vector.shape_cast %168 : vector<1x128x256xbf16> to vector<128x256xbf16>
    %c4_101 = arith.constant 4 : index
    %c0_102 = arith.constant 0 : index
    %c0_103 = arith.constant 0 : index
    %170 = vector.load %arg9[%c4_101, %c0_102, %c0_103] : memref<8x1x256xf32, #tpu.memory_space<vmem>>, vector<1x1x256xf32>
    %171 = vector.shape_cast %170 : vector<1x1x256xf32> to vector<1x256xf32>
    %172 = arith.truncf %167 : vector<8x128xf32> to vector<8x128xbf16>
    %cst_104 = arith.constant dense<0.000000e+00> : vector<8x256xf32>
    %173 = tpu.matmul %172, %169, %cst_104 {dimension_numbers = #tpu.dot_dimension_numbers<[1], [0], [0], [1], [0, 0, 1, 1], [], []>} : vector<8x128xbf16>, vector<128x256xbf16>, vector<8x256xf32> -> vector<8x256xf32>
    %174 = vector.broadcast %171 : vector<1x256xf32> to vector<8x256xf32>
    %175 = arith.addf %173, %174 : vector<8x256xf32>
    %176 = arith.negf %175 : vector<8x256xf32>
    %177 = math.exp %176 : vector<8x256xf32>
    %cst_105 = arith.constant 1.000000e+00 : f32
    %178 = vector.broadcast %cst_105 : f32 to vector<8x256xf32>
    %179 = arith.addf %178, %177 : vector<8x256xf32>
    %180 = arith.divf %178, %179 : vector<8x256xf32>
    %181 = arith.mulf %175, %180 : vector<8x256xf32>
    %c0_106 = arith.constant 0 : index
    %c0_107 = arith.constant 0 : index
    %c0_108 = arith.constant 0 : index
    %182 = vector.load %arg6[%c0_106, %c0_107, %c0_108] : memref<2x256x512xbf16, #tpu.memory_space<vmem>>, vector<1x256x512xbf16>
    %183 = vector.shape_cast %182 : vector<1x256x512xbf16> to vector<256x512xbf16>
    %c0_109 = arith.constant 0 : index
    %c0_110 = arith.constant 0 : index
    %c0_111 = arith.constant 0 : index
    %184 = vector.load %arg10[%c0_109, %c0_110, %c0_111] : memref<2x1x512xf32, #tpu.memory_space<vmem>>, vector<1x1x512xf32>
    %185 = vector.shape_cast %184 : vector<1x1x512xf32> to vector<1x512xf32>
    %186 = arith.truncf %181 : vector<8x256xf32> to vector<8x256xbf16>
    %cst_112 = arith.constant dense<0.000000e+00> : vector<8x512xf32>
    %187 = tpu.matmul %186, %183, %cst_112 {dimension_numbers = #tpu.dot_dimension_numbers<[1], [0], [0], [1], [0, 0, 1, 1], [], []>} : vector<8x256xbf16>, vector<256x512xbf16>, vector<8x512xf32> -> vector<8x512xf32>
    %188 = vector.broadcast %185 : vector<1x512xf32> to vector<8x512xf32>
    %189 = arith.addf %187, %188 : vector<8x512xf32>
    %190 = arith.negf %189 : vector<8x512xf32>
    %191 = math.exp %190 : vector<8x512xf32>
    %cst_113 = arith.constant 1.000000e+00 : f32
    %192 = vector.broadcast %cst_113 : f32 to vector<8x512xf32>
    %193 = arith.addf %192, %191 : vector<8x512xf32>
    %194 = arith.divf %192, %193 : vector<8x512xf32>
    %195 = arith.mulf %189, %194 : vector<8x512xf32>
    %c0_114 = arith.constant 0 : index
    %c0_115 = arith.constant 0 : index
    %c0_116 = arith.constant 0 : index
    %196 = vector.load %arg7[%c0_114, %c0_115, %c0_116] : memref<2x512x256xbf16, #tpu.memory_space<vmem>>, vector<1x512x256xbf16>
    %197 = vector.shape_cast %196 : vector<1x512x256xbf16> to vector<512x256xbf16>
    %c5_117 = arith.constant 5 : index
    %c0_118 = arith.constant 0 : index
    %c0_119 = arith.constant 0 : index
    %198 = vector.load %arg9[%c5_117, %c0_118, %c0_119] : memref<8x1x256xf32, #tpu.memory_space<vmem>>, vector<1x1x256xf32>
    %199 = vector.shape_cast %198 : vector<1x1x256xf32> to vector<1x256xf32>
    %200 = arith.truncf %195 : vector<8x512xf32> to vector<8x512xbf16>
    %cst_120 = arith.constant dense<0.000000e+00> : vector<8x256xf32>
    %201 = tpu.matmul %200, %197, %cst_120 {dimension_numbers = #tpu.dot_dimension_numbers<[1], [0], [0], [1], [0, 0, 1, 1], [], []>} : vector<8x512xbf16>, vector<512x256xbf16>, vector<8x256xf32> -> vector<8x256xf32>
    %202 = vector.broadcast %199 : vector<1x256xf32> to vector<8x256xf32>
    %203 = arith.addf %201, %202 : vector<8x256xf32>
    %204 = arith.negf %203 : vector<8x256xf32>
    %205 = math.exp %204 : vector<8x256xf32>
    %cst_121 = arith.constant 1.000000e+00 : f32
    %206 = vector.broadcast %cst_121 : f32 to vector<8x256xf32>
    %207 = arith.addf %206, %205 : vector<8x256xf32>
    %208 = arith.divf %206, %207 : vector<8x256xf32>
    %209 = arith.mulf %203, %208 : vector<8x256xf32>
    %c4_122 = arith.constant 4 : index
    %c0_123 = arith.constant 0 : index
    %c0_124 = arith.constant 0 : index
    %210 = vector.load %arg5[%c4_122, %c0_123, %c0_124] : memref<6x256x128xbf16, #tpu.memory_space<vmem>>, vector<1x256x128xbf16>
    %211 = vector.shape_cast %210 : vector<1x256x128xbf16> to vector<256x128xbf16>
    %c9 = arith.constant 9 : index
    %c0_125 = arith.constant 0 : index
    %c0_126 = arith.constant 0 : index
    %212 = vector.load %arg8[%c9, %c0_125, %c0_126] : memref<13x1x128xf32, #tpu.memory_space<vmem>>, vector<1x1x128xf32>
    %213 = vector.shape_cast %212 : vector<1x1x128xf32> to vector<1x128xf32>
    %214 = arith.truncf %209 : vector<8x256xf32> to vector<8x256xbf16>
    %cst_127 = arith.constant dense<0.000000e+00> : vector<8x128xf32>
    %215 = tpu.matmul %214, %211, %cst_127 {dimension_numbers = #tpu.dot_dimension_numbers<[1], [0], [0], [1], [0, 0, 1, 1], [], []>} : vector<8x256xbf16>, vector<256x128xbf16>, vector<8x128xf32> -> vector<8x128xf32>
    %216 = vector.broadcast %213 : vector<1x128xf32> to vector<8x128xf32>
    %217 = arith.addf %215, %216 : vector<8x128xf32>
    %218 = arith.addf %217, %153 : vector<8x128xf32>
    %c6_128 = arith.constant 6 : index
    %c0_129 = arith.constant 0 : index
    %c0_130 = arith.constant 0 : index
    %219 = vector.load %arg3[%c6_128, %c0_129, %c0_130] : memref<8x128x128xbf16, #tpu.memory_space<vmem>>, vector<1x128x128xbf16>
    %220 = vector.shape_cast %219 : vector<1x128x128xbf16> to vector<128x128xbf16>
    %c10 = arith.constant 10 : index
    %c0_131 = arith.constant 0 : index
    %c0_132 = arith.constant 0 : index
    %221 = vector.load %arg8[%c10, %c0_131, %c0_132] : memref<13x1x128xf32, #tpu.memory_space<vmem>>, vector<1x1x128xf32>
    %222 = vector.shape_cast %221 : vector<1x1x128xf32> to vector<1x128xf32>
    %223 = arith.truncf %218 : vector<8x128xf32> to vector<8x128xbf16>
    %cst_133 = arith.constant dense<0.000000e+00> : vector<8x128xf32>
    %224 = tpu.matmul %223, %220, %cst_133 {dimension_numbers = #tpu.dot_dimension_numbers<[1], [0], [0], [1], [0, 0, 1, 1], [], []>} : vector<8x128xbf16>, vector<128x128xbf16>, vector<8x128xf32> -> vector<8x128xf32>
    %225 = vector.broadcast %222 : vector<1x128xf32> to vector<8x128xf32>
    %226 = arith.addf %224, %225 : vector<8x128xf32>
    %227 = arith.negf %226 : vector<8x128xf32>
    %228 = math.exp %227 : vector<8x128xf32>
    %cst_134 = arith.constant 1.000000e+00 : f32
    %229 = vector.broadcast %cst_134 : f32 to vector<8x128xf32>
    %230 = arith.addf %229, %228 : vector<8x128xf32>
    %231 = arith.divf %229, %230 : vector<8x128xf32>
    %232 = arith.mulf %226, %231 : vector<8x128xf32>
    %c5_135 = arith.constant 5 : index
    %c0_136 = arith.constant 0 : index
    %c0_137 = arith.constant 0 : index
    %233 = vector.load %arg4[%c5_135, %c0_136, %c0_137] : memref<6x128x256xbf16, #tpu.memory_space<vmem>>, vector<1x128x256xbf16>
    %234 = vector.shape_cast %233 : vector<1x128x256xbf16> to vector<128x256xbf16>
    %c6_138 = arith.constant 6 : index
    %c0_139 = arith.constant 0 : index
    %c0_140 = arith.constant 0 : index
    %235 = vector.load %arg9[%c6_138, %c0_139, %c0_140] : memref<8x1x256xf32, #tpu.memory_space<vmem>>, vector<1x1x256xf32>
    %236 = vector.shape_cast %235 : vector<1x1x256xf32> to vector<1x256xf32>
    %237 = arith.truncf %232 : vector<8x128xf32> to vector<8x128xbf16>
    %cst_141 = arith.constant dense<0.000000e+00> : vector<8x256xf32>
    %238 = tpu.matmul %237, %234, %cst_141 {dimension_numbers = #tpu.dot_dimension_numbers<[1], [0], [0], [1], [0, 0, 1, 1], [], []>} : vector<8x128xbf16>, vector<128x256xbf16>, vector<8x256xf32> -> vector<8x256xf32>
    %239 = vector.broadcast %236 : vector<1x256xf32> to vector<8x256xf32>
    %240 = arith.addf %238, %239 : vector<8x256xf32>
    %241 = arith.negf %240 : vector<8x256xf32>
    %242 = math.exp %241 : vector<8x256xf32>
    %cst_142 = arith.constant 1.000000e+00 : f32
    %243 = vector.broadcast %cst_142 : f32 to vector<8x256xf32>
    %244 = arith.addf %243, %242 : vector<8x256xf32>
    %245 = arith.divf %243, %244 : vector<8x256xf32>
    %246 = arith.mulf %240, %245 : vector<8x256xf32>
    %c1_143 = arith.constant 1 : index
    %c0_144 = arith.constant 0 : index
    %c0_145 = arith.constant 0 : index
    %247 = vector.load %arg6[%c1_143, %c0_144, %c0_145] : memref<2x256x512xbf16, #tpu.memory_space<vmem>>, vector<1x256x512xbf16>
    %248 = vector.shape_cast %247 : vector<1x256x512xbf16> to vector<256x512xbf16>
    %c1_146 = arith.constant 1 : index
    %c0_147 = arith.constant 0 : index
    %c0_148 = arith.constant 0 : index
    %249 = vector.load %arg10[%c1_146, %c0_147, %c0_148] : memref<2x1x512xf32, #tpu.memory_space<vmem>>, vector<1x1x512xf32>
    %250 = vector.shape_cast %249 : vector<1x1x512xf32> to vector<1x512xf32>
    %251 = arith.truncf %246 : vector<8x256xf32> to vector<8x256xbf16>
    %cst_149 = arith.constant dense<0.000000e+00> : vector<8x512xf32>
    %252 = tpu.matmul %251, %248, %cst_149 {dimension_numbers = #tpu.dot_dimension_numbers<[1], [0], [0], [1], [0, 0, 1, 1], [], []>} : vector<8x256xbf16>, vector<256x512xbf16>, vector<8x512xf32> -> vector<8x512xf32>
    %253 = vector.broadcast %250 : vector<1x512xf32> to vector<8x512xf32>
    %254 = arith.addf %252, %253 : vector<8x512xf32>
    %255 = arith.negf %254 : vector<8x512xf32>
    %256 = math.exp %255 : vector<8x512xf32>
    %cst_150 = arith.constant 1.000000e+00 : f32
    %257 = vector.broadcast %cst_150 : f32 to vector<8x512xf32>
    %258 = arith.addf %257, %256 : vector<8x512xf32>
    %259 = arith.divf %257, %258 : vector<8x512xf32>
    %260 = arith.mulf %254, %259 : vector<8x512xf32>
    %c1_151 = arith.constant 1 : index
    %c0_152 = arith.constant 0 : index
    %c0_153 = arith.constant 0 : index
    %261 = vector.load %arg7[%c1_151, %c0_152, %c0_153] : memref<2x512x256xbf16, #tpu.memory_space<vmem>>, vector<1x512x256xbf16>
    %262 = vector.shape_cast %261 : vector<1x512x256xbf16> to vector<512x256xbf16>
    %c7_154 = arith.constant 7 : index
    %c0_155 = arith.constant 0 : index
    %c0_156 = arith.constant 0 : index
    %263 = vector.load %arg9[%c7_154, %c0_155, %c0_156] : memref<8x1x256xf32, #tpu.memory_space<vmem>>, vector<1x1x256xf32>
    %264 = vector.shape_cast %263 : vector<1x1x256xf32> to vector<1x256xf32>
    %265 = arith.truncf %260 : vector<8x512xf32> to vector<8x512xbf16>
    %cst_157 = arith.constant dense<0.000000e+00> : vector<8x256xf32>
    %266 = tpu.matmul %265, %262, %cst_157 {dimension_numbers = #tpu.dot_dimension_numbers<[1], [0], [0], [1], [0, 0, 1, 1], [], []>} : vector<8x512xbf16>, vector<512x256xbf16>, vector<8x256xf32> -> vector<8x256xf32>
    %267 = vector.broadcast %264 : vector<1x256xf32> to vector<8x256xf32>
    %268 = arith.addf %266, %267 : vector<8x256xf32>
    %269 = arith.negf %268 : vector<8x256xf32>
    %270 = math.exp %269 : vector<8x256xf32>
    %cst_158 = arith.constant 1.000000e+00 : f32
    %271 = vector.broadcast %cst_158 : f32 to vector<8x256xf32>
    %272 = arith.addf %271, %270 : vector<8x256xf32>
    %273 = arith.divf %271, %272 : vector<8x256xf32>
    %274 = arith.mulf %268, %273 : vector<8x256xf32>
    %c5_159 = arith.constant 5 : index
    %c0_160 = arith.constant 0 : index
    %c0_161 = arith.constant 0 : index
    %275 = vector.load %arg5[%c5_159, %c0_160, %c0_161] : memref<6x256x128xbf16, #tpu.memory_space<vmem>>, vector<1x256x128xbf16>
    %276 = vector.shape_cast %275 : vector<1x256x128xbf16> to vector<256x128xbf16>
    %c11 = arith.constant 11 : index
    %c0_162 = arith.constant 0 : index
    %c0_163 = arith.constant 0 : index
    %277 = vector.load %arg8[%c11, %c0_162, %c0_163] : memref<13x1x128xf32, #tpu.memory_space<vmem>>, vector<1x1x128xf32>
    %278 = vector.shape_cast %277 : vector<1x1x128xf32> to vector<1x128xf32>
    %279 = arith.truncf %274 : vector<8x256xf32> to vector<8x256xbf16>
    %cst_164 = arith.constant dense<0.000000e+00> : vector<8x128xf32>
    %280 = tpu.matmul %279, %276, %cst_164 {dimension_numbers = #tpu.dot_dimension_numbers<[1], [0], [0], [1], [0, 0, 1, 1], [], []>} : vector<8x256xbf16>, vector<256x128xbf16>, vector<8x128xf32> -> vector<8x128xf32>
    %281 = vector.broadcast %278 : vector<1x128xf32> to vector<8x128xf32>
    %282 = arith.addf %280, %281 : vector<8x128xf32>
    %283 = arith.addf %282, %218 : vector<8x128xf32>
    %c7_165 = arith.constant 7 : index
    %c0_166 = arith.constant 0 : index
    %c0_167 = arith.constant 0 : index
    %284 = vector.load %arg3[%c7_165, %c0_166, %c0_167] : memref<8x128x128xbf16, #tpu.memory_space<vmem>>, vector<1x128x128xbf16>
    %285 = vector.shape_cast %284 : vector<1x128x128xbf16> to vector<128x128xbf16>
    %c12 = arith.constant 12 : index
    %c0_168 = arith.constant 0 : index
    %c0_169 = arith.constant 0 : index
    %286 = vector.load %arg8[%c12, %c0_168, %c0_169] : memref<13x1x128xf32, #tpu.memory_space<vmem>>, vector<1x1x128xf32>
    %287 = vector.shape_cast %286 : vector<1x1x128xf32> to vector<1x128xf32>
    %288 = arith.truncf %283 : vector<8x128xf32> to vector<8x128xbf16>
    %cst_170 = arith.constant dense<0.000000e+00> : vector<8x128xf32>
    %289 = tpu.matmul %288, %285, %cst_170 {dimension_numbers = #tpu.dot_dimension_numbers<[1], [0], [0], [1], [0, 0, 1, 1], [], []>} : vector<8x128xbf16>, vector<128x128xbf16>, vector<8x128xf32> -> vector<8x128xf32>
    %290 = vector.broadcast %287 : vector<1x128xf32> to vector<8x128xf32>
    %291 = arith.addf %289, %290 : vector<8x128xf32>
    %292 = arith.subf %0, %291 : vector<8x128xf32>
    %c0_171 = arith.constant 0 : index
    %c0_172 = arith.constant 0 : index
    %293 = vector.load %arg11[%c0_171, %c0_172] : memref<8x128xf32, #tpu.memory_space<vmem>>, vector<8x128xf32>
    tpu.vector_store %arg11[%c0_171, %c0_172], %292 {strides = array<i32>} : memref<8x128xf32, #tpu.memory_space<vmem>>, vector<8x128xf32>,
    return
  }
  func.func @transform_0(%arg0: i32) -> (i32, i32) {
    %c0_i32 = arith.constant 0 : i32
    %c0_i32_0 = arith.constant 0 : i32
    return %arg0, %c0_i32 : i32, i32
  }
  func.func @transform_1(%arg0: i32) -> (i32, i32) {
    %c0_i32 = arith.constant 0 : i32
    %c0_i32_0 = arith.constant 0 : i32
    return %arg0, %c0_i32 : i32, i32
  }
  func.func @transform_2(%arg0: i32) -> (i32, i32, i32) {
    %c0_i32 = arith.constant 0 : i32
    %c0_i32_0 = arith.constant 0 : i32
    %c0_i32_1 = arith.constant 0 : i32
    %c0_i32_2 = arith.constant 0 : i32
    return %c0_i32, %c0_i32_0, %c0_i32_1 : i32, i32, i32
  }
  func.func @transform_3(%arg0: i32) -> (i32, i32, i32) {
    %c0_i32 = arith.constant 0 : i32
    %c0_i32_0 = arith.constant 0 : i32
    %c0_i32_1 = arith.constant 0 : i32
    %c0_i32_2 = arith.constant 0 : i32
    return %c0_i32, %c0_i32_0, %c0_i32_1 : i32, i32, i32
  }
  func.func @transform_4(%arg0: i32) -> (i32, i32, i32) {
    %c0_i32 = arith.constant 0 : i32
    %c0_i32_0 = arith.constant 0 : i32
    %c0_i32_1 = arith.constant 0 : i32
    %c0_i32_2 = arith.constant 0 : i32
    return %c0_i32, %c0_i32_0, %c0_i32_1 : i32, i32, i32
  }
  func.func @transform_5(%arg0: i32) -> (i32, i32, i32) {
    %c0_i32 = arith.constant 0 : i32
    %c0_i32_0 = arith.constant 0 : i32
    %c0_i32_1 = arith.constant 0 : i32
    %c0_i32_2 = arith.constant 0 : i32
    return %c0_i32, %c0_i32_0, %c0_i32_1 : i32, i32, i32
  }
  func.func @transform_6(%arg0: i32) -> (i32, i32, i32) {
    %c0_i32 = arith.constant 0 : i32
    %c0_i32_0 = arith.constant 0 : i32
    %c0_i32_1 = arith.constant 0 : i32
    %c0_i32_2 = arith.constant 0 : i32
    return %c0_i32, %c0_i32_0, %c0_i32_1 : i32, i32, i32
  }
  func.func @transform_7(%arg0: i32) -> (i32, i32, i32) {
    %c0_i32 = arith.constant 0 : i32
    %c0_i32_0 = arith.constant 0 : i32
    %c0_i32_1 = arith.constant 0 : i32
    %c0_i32_2 = arith.constant 0 : i32
    return %c0_i32, %c0_i32_0, %c0_i32_1 : i32, i32, i32
  }
  func.func @transform_8(%arg0: i32) -> (i32, i32, i32) {
    %c0_i32 = arith.constant 0 : i32
    %c0_i32_0 = arith.constant 0 : i32
    %c0_i32_1 = arith.constant 0 : i32
    %c0_i32_2 = arith.constant 0 : i32
    return %c0_i32, %c0_i32_0, %c0_i32_1 : i32, i32, i32
  }
  func.func @transform_9(%arg0: i32) -> (i32, i32, i32) {
    %c0_i32 = arith.constant 0 : i32
    %c0_i32_0 = arith.constant 0 : i32
    %c0_i32_1 = arith.constant 0 : i32
    %c0_i32_2 = arith.constant 0 : i32
    return %c0_i32, %c0_i32_0, %c0_i32_1 : i32, i32, i32
  }
  func.func @transform_10(%arg0: i32) -> (i32, i32) {
    %c0_i32 = arith.constant 0 : i32
    %c0_i32_0 = arith.constant 0 : i32
    return %arg0, %c0_i32 : i32, i32
  }
}

</mosaic_0001>

<bundles_post_ra>
// kernel: tpu_custom_call.1
= control target key start
LH: loop header
LB: loop body
LE: loop exit
PB: predicated region body
PF: predicated region fallthrough
CT: control target
= control target key end

     0   :  { %15 = vsyncpa [#allocation3], 0  ;;  %s7613_s0 = inlined_call_operand.hbm [shape: f32[8,128], index: 0, kind: input, shape index: {}]   ;;  %s7614_s1 = inlined_call_operand.hbm [shape: f32[8,128], index: 1, kind: input, shape index: {}]   ;;  %s7615_s2 = inlined_call_operand.hbm [shape: bf16[8,128,128], index: 2, kind: input, shape index: {}]   ;;  %s7616_s3 = inlined_call_operand.hbm [shape: bf16[6,128,256], index: 3, kind: input, shape index: {}]   ;;  %s7617_s4 = inlined_call_operand.hbm [shape: bf16[6,256,128], index: 4, kind: input, shape index: {}]   ;;  %s7618_s5 = inlined_call_operand.hbm [shape: bf16[2,256,512], index: 5, kind: input, shape index: {}]   ;;  %s7619_s6 = inlined_call_operand.hbm [shape: bf16[2,512,256], index: 6, kind: input, shape index: {}]   ;;  %s7620_s7 = inlined_call_operand.vmem [shape: f32[13,1,128], index: 7, kind: input, shape index: {}]   ;;  %s7621_s8 = inlined_call_operand.vmem [shape: f32[8,1,256], index: 8, kind: input, shape index: {}]   ;;  %s7622_s9 = inlined_call_operand.hbm [shape: f32[2,1,512], index: 9, kind: input, shape index: {}]   ;;  %s7623_s10 = inlined_call_operand.hbm [shape: f32[8,128], index: 10, kind: output, shape index: {}]  }
   0x1   :  { %16 = vsyncpa [#allocation6], 0 }
   0x2   :  { %17 = vsyncpa [#allocation9], 0 }
   0x3   :  { %18 = vsyncpa [#allocation12], 0 }
   0x4   :  { %19 = vsyncpa [#allocation15], 0 }
   0x5   :  { %20 = vsyncpa [#allocation4], 0  ;;  %s7203_s13 = smov [#allocation5]   ;;  %s7204_s15 = smov [#allocation8]  }
   0x6   :  { %s37_s14 = sshll.u32 %s7203_s13, 4  ;;  %s58_s16 = sshll.u32 %s7204_s15, 4  ;;  %s38_s14 = int_to_ptr.vmem [resolvable:$true] %s37_s14  ;;  %s7276_s16 = int_to_ptr.vmem [resolvable:$true] %s58_s16 }
   0x7   :  { %s6993_s19 = scalar_lea.hbm %s7614_s1, 128 }
   0x8   :  { %p6994_p0 = scmp.ne.s32.totalorder %s7614_s1, %s6993_s19  ;;  %p6997_p1 = scmp.lt.u32.totalorder %s6993_s19, %s7614_s1 }
   0xa   :  { %p6999_p2 = pnand %p6997_p1, %p6994_p0 }
   0xc   :  { %7002 = shalt.err (!%p6999_p2)
}
   0xd   :  { %s7003_s24 = scalar_lea.vmem %s38_s14, 128  ;;  %p7008_p4 = scmp.lt.s32.totalorder %s38_s14, %s38_s14 }
   0xe   :  { %p7004_p3 = scmp.ne.s32.totalorder %s38_s14, %s7003_s24  ;;  %p7009_p5 = scmp.lt.s32.totalorder %s7003_s24, %s7003_s24 }
  0x10   :  { %p7010_p6 = por %p7009_p5, %p7008_p4 }
  0x12   :  { %p7011_p7 = pnand %p7010_p6, %p7004_p3 }
  0x14   :  { %7014 = shalt.err (!%p7011_p7)
}
  0x15   :  { %40 = dma.hbm_to_vmem [thread:$0]  %s7614_s1, 128, %s38_s14, [#allocation6]  }
  0x16   :  { %s7015_s29 = scalar_lea.hbm %s7616_s3, 12288 }
  0x17   :  { %p7016_p8 = scmp.ne.s32.totalorder %s7616_s3, %s7015_s29  ;;  %p7019_p9 = scmp.lt.u32.totalorder %s7015_s29, %s7616_s3 }
  0x19   :  { %p7021_p10 = pnand %p7019_p9, %p7016_p8 }
  0x1b   :  { %7024 = shalt.err (!%p7021_p10)
}
  0x1c   :  { %s7025_s15 = scalar_lea.vmem %s7276_s16, 12288  ;;  %p7030_p12 = scmp.lt.s32.totalorder %s7276_s16, %s7276_s16 }
  0x1d   :  { %p7026_p11 = scmp.ne.s32.totalorder %s7276_s16, %s7025_s15  ;;  %p7031_p13 = scmp.lt.s32.totalorder %s7025_s15, %s7025_s15 }
  0x1f   :  { %p7032_p0 = por %p7031_p13, %p7030_p12 }
  0x21   :  { %p7033_p1 = pnand %p7032_p0, %p7026_p11 }
  0x23   :  { %7036 = shalt.err (!%p7033_p1)
}
  0x24   :  { %s7205_s1 = smov 128   ;;  %s7206_s14 = smov 8  }
  0x25   :  { %64 = dma.hbm_to_vmem [thread:$0]  %s7616_s3, 12288, %s7276_s16, [#allocation9], %s7205_s1, %s7205_s1, %s7206_s14  }
  0x26   :  { %s7207_s19 = smov [#allocation11]   ;;  %s7037_s23 = scalar_lea.hbm %s7618_s5, 16384 }
  0x27   :  { %s82_s20 = sshll.u32 %s7207_s19, 4  ;;  %p7038_p2 = scmp.ne.s32.totalorder %s7618_s5, %s7037_s23  ;;  %s83_s20 = int_to_ptr.vmem [resolvable:$true] %s82_s20 }
  0x28   :  { %p7041_p3 = scmp.lt.u32.totalorder %s7037_s23, %s7618_s5 }
  0x2a   :  { %p7043_p4 = pnand %p7041_p3, %p7038_p2 }
  0x2c   :  { %7046 = shalt.err (!%p7043_p4)
}
  0x2d   :  { %s7047_s28 = scalar_lea.vmem %s83_s20, 16384  ;;  %p7052_p6 = scmp.lt.s32.totalorder %s83_s20, %s83_s20 }
  0x2e   :  { %p7048_p5 = scmp.ne.s32.totalorder %s83_s20, %s7047_s28  ;;  %p7053_p7 = scmp.lt.s32.totalorder %s7047_s28, %s7047_s28 }
  0x30   :  { %p7054_p8 = por %p7053_p7, %p7052_p6 }
  0x32   :  { %p7055_p9 = pnand %p7054_p8, %p7048_p5 }
  0x34   :  { %7058 = shalt.err (!%p7055_p9)
}
  0x35   :  { %s7208_s3 = smov 256   ;;  %s7209_s16 = smov 16  }
  0x36   :  { %88 = dma.hbm_to_vmem [thread:$0]  %s7618_s5, 16384, %s83_s20, [#allocation12], %s7208_s3, %s7208_s3, %s7209_s16  }
  0x37   :  { %s7210_s11 = smov [#allocation2]   ;;  %s7211_s13 = smov [#allocation7]  }
  0x38   :  { %s27_s12 = sshll.u32 %s7210_s11, 4  ;;  %s46_s15 = sshll.u32 %s7211_s13, 4  ;;  %s28_s12 = int_to_ptr.vmem [resolvable:$true] %s27_s12  ;;  %s47_s15 = int_to_ptr.vmem [resolvable:$true] %s46_s15 }
  0x39   :  { %s7059_s19 = scalar_lea.hbm %s7613_s0, 128 }
  0x3a   :  { %p7060_p10 = scmp.ne.s32.totalorder %s7613_s0, %s7059_s19  ;;  %p7063_p11 = scmp.lt.u32.totalorder %s7059_s19, %s7613_s0 }
  0x3c   :  { %p7065_p12 = pnand %p7063_p11, %p7060_p10 }
  0x3e   :  { %7068 = shalt.err (!%p7065_p12)
}
  0x3f   :  { %s7069_s5 = scalar_lea.vmem %s28_s12, 128  ;;  %p7074_p0 = scmp.lt.s32.totalorder %s28_s12, %s28_s12 }
  0x40   :  { %p7070_p13 = scmp.ne.s32.totalorder %s28_s12, %s7069_s5  ;;  %p7075_p1 = scmp.lt.s32.totalorder %s7069_s5, %s7069_s5 }
  0x42   :  { %p7076_p2 = por %p7075_p1, %p7074_p0 }
  0x44   :  { %p7077_p3 = pnand %p7076_p2, %p7070_p13 }
  0x46   :  { %7080 = shalt.err (!%p7077_p3)
}
  0x47   :  { %30 = dma.hbm_to_vmem [thread:$0]  %s7613_s0, 128, %s28_s12, [#allocation3]  }
  0x48   :  { %s7081_s28 = scalar_lea.hbm %s7615_s2, 8192 }
  0x49   :  { %p7082_p4 = scmp.ne.s32.totalorder %s7615_s2, %s7081_s28  ;;  %p7085_p5 = scmp.lt.u32.totalorder %s7081_s28, %s7615_s2 }
  0x4b   :  { %p7087_p6 = pnand %p7085_p5, %p7082_p4 }
  0x4d   :  { %7090 = shalt.err (!%p7087_p6)
}
  0x4e   :  { %s7091_s11 = scalar_lea.vmem %s47_s15, 8192  ;;  %p7096_p8 = scmp.lt.s32.totalorder %s47_s15, %s47_s15 }
  0x4f   :  { %p7092_p7 = scmp.ne.s32.totalorder %s47_s15, %s7091_s11  ;;  %p7097_p9 = scmp.lt.s32.totalorder %s7091_s11, %s7091_s11 }
  0x51   :  { %p7098_p10 = por %p7097_p9, %p7096_p8 }
  0x53   :  { %p7099_p11 = pnand %p7098_p10, %p7092_p7 }
  0x55   :  { %7102 = shalt.err (!%p7099_p11)
}
  0x56   :  { %s7212_s0 = smov 64   ;;  %s7213_s12 = smov 4  }
  0x57   :  { %52 = dma.hbm_to_vmem [thread:$0]  %s7615_s2, 8192, %s47_s15, [#allocation6], %s7212_s0, %s7212_s0, %s7213_s12  }
  0x58   :  { %s7214_s18 = smov [#allocation10]   ;;  %s7215_s21 = smov [#allocation13]  }
  0x59   :  { %s70_s19 = sshll.u32 %s7214_s18, 4  ;;  %s94_s22 = sshll.u32 %s7215_s21, 4  ;;  %s71_s19 = int_to_ptr.vmem [resolvable:$true] %s70_s19  ;;  %s95_s22 = int_to_ptr.vmem [resolvable:$true] %s94_s22 }
  0x5a   :  { %s7103_s5 = scalar_lea.hbm %s7617_s4, 12288 }
  0x5b   :  { %p7104_p12 = scmp.ne.s32.totalorder %s7617_s4, %s7103_s5  ;;  %p7107_p13 = scmp.lt.u32.totalorder %s7103_s5, %s7617_s4 }
  0x5d   :  { %p7109_p0 = pnand %p7107_p13, %p7104_p12 }
  0x5f   :  { %7112 = shalt.err (!%p7109_p0)
}
  0x60   :  { %s7113_s2 = scalar_lea.vmem %s71_s19, 12288  ;;  %p7118_p2 = scmp.lt.s32.totalorder %s71_s19, %s71_s19 }
  0x61   :  { %p7114_p1 = scmp.ne.s32.totalorder %s71_s19, %s7113_s2  ;;  %p7119_p3 = scmp.lt.s32.totalorder %s7113_s2, %s7113_s2 }
  0x63   :  { %p7120_p4 = por %p7119_p3, %p7118_p2 }
  0x65   :  { %p7121_p5 = pnand %p7120_p4, %p7114_p1 }
  0x67   :  { %7124 = shalt.err (!%p7121_p5)
}
  0x68   :  { %76 = dma.hbm_to_vmem [thread:$0]  %s7617_s4, 12288, %s71_s19, [#allocation9], %s7212_s0, %s7212_s0, %s7213_s12  }
  0x69   :  { %s7125_s29 = scalar_lea.hbm %s7619_s6, 16384 }
  0x6a   :  { %p7126_p6 = scmp.ne.s32.totalorder %s7619_s6, %s7125_s29  ;;  %p7129_p7 = scmp.lt.u32.totalorder %s7125_s29, %s7619_s6 }
  0x6c   :  { %p7131_p8 = pnand %p7129_p7, %p7126_p6 }
  0x6e   :  { %7134 = shalt.err (!%p7131_p8)
}
  0x6f   :  { %s7135_s18 = scalar_lea.vmem %s95_s22, 16384  ;;  %p7140_p10 = scmp.lt.s32.totalorder %s95_s22, %s95_s22 }
  0x70   :  { %p7136_p9 = scmp.ne.s32.totalorder %s95_s22, %s7135_s18  ;;  %p7141_p11 = scmp.lt.s32.totalorder %s7135_s18, %s7135_s18 }
  0x72   :  { %p7142_p12 = por %p7141_p11, %p7140_p10 }
  0x74   :  { %p7143_p13 = pnand %p7142_p12, %p7136_p9 }
  0x76   :  { %7146 = shalt.err (!%p7143_p13)
}
  0x77   :  { %100 = dma.hbm_to_vmem [thread:$0]  %s7619_s6, 16384, %s95_s22, [#allocation12], %s7205_s1, %s7205_s1, %s7206_s14  }
  0x78   :  { %s7216_s21 = smov [#allocation14]   ;;  %s7147_s20 = scalar_lea.hbm %s7622_s9, 128 }
  0x79   :  { %s110_s23 = sshll.u32 %s7216_s21, 4  ;;  %p7148_p0 = scmp.ne.s32.totalorder %s7622_s9, %s7147_s20  ;;  %s111_s23 = int_to_ptr.vmem [resolvable:$true] %s110_s23 }
  0x7a   :  { %p7151_p1 = scmp.lt.u32.totalorder %s7147_s20, %s7622_s9 }
  0x7c   :  { %p7153_p2 = pnand %p7151_p1, %p7148_p0 }
  0x7e   :  { %7156 = shalt.err (!%p7153_p2)
}
  0x7f   :  { %s7157_s15 = scalar_lea.vmem %s111_s23, 128  ;;  %p7162_p4 = scmp.lt.s32.totalorder %s111_s23, %s111_s23 }
  0x80   :  { %p7158_p3 = scmp.ne.s32.totalorder %s111_s23, %s7157_s15  ;;  %p7163_p5 = scmp.lt.s32.totalorder %s7157_s15, %s7157_s15 }
  0x82   :  { %p7164_p6 = por %p7163_p5, %p7162_p4 }
  0x84   :  { %p7165_p7 = pnand %p7164_p6, %p7158_p3 }
  0x86   :  { %7168 = shalt.err (!%p7165_p7)
}
  0x87   :  { %116 = dma.hbm_to_vmem [thread:$0]  %s7622_s9, 128, %s111_s23, [#allocation15], %s7212_s0, %s7212_s0, %s7213_s12  }
  0x88   :  { %7191 = dma.done.wait [#allocation3], 128  }
  0x89   :  { %7192 = vsyncadd [#allocation3], 4294967168 }
  0x8a   :  { %7193 = dma.done.wait [#allocation6], 8320  }
  0x8b   :  { %7194 = vsyncadd [#allocation6], 4294958976 }
  0x8c   :  { %7195 = dma.done.wait [#allocation9], 24576  }
  0x8d   :  { %7196 = vsyncadd [#allocation9], 4294942720 }
  0x8e   :  { %7197 = dma.done.wait [#allocation12], 32768  }
  0x8f   :  { %7198 = vsyncadd [#allocation12], 4294934528 }
  0x90   :  { %7199 = dma.done.wait [#allocation15], 128  }
  0x91   :  { %7200 = vsyncadd [#allocation15], 4294967168  ;;  %v7217_v0 = vmov 0.0   ;;  %vm7218_vm0 = vmmov 0   ;;  %v6183_v1 = vld [vmem:[#allocation7] sm:$0xff]   ;;  %v6184_v2 = vld [vmem:[#allocation7 + $0x8] sm:$0xff]   ;;  %v282_v62 = vlaneseq }
  0x92   :  { %5993 = vmatprep.subr.bf16.mxu1 %v7217_v0  ;;  %6009 = vmatprep.mubr.msk.bf16.mxu1 %vm7218_vm0, %v7217_v0  ;;  %v6185_v3 = vld [vmem:[#allocation7 + $0x10] sm:$0xff]   ;;  %v6186_v4 = vld [vmem:[#allocation7 + $0x18] sm:$0xff]   ;;  %v6187_v5 = vld [vmem:[#allocation7 + $0x20] sm:$0xff]   ;;  %v7219_v27 = vmov 0   ;;  %s7220_s18 = smov [#allocation16]  }
  0x93   :  { %5994 = vmatpush3.bf16.msra.mxu1 %v6183_v1  ;;  %v6188_v6 = vld [vmem:[#allocation7 + $0x28] sm:$0xff]   ;;  %v6189_v7 = vld [vmem:[#allocation7 + $0x30] sm:$0xff]   ;;  %v6190_v8 = vld [vmem:[#allocation7 + $0x38] sm:$0xff]   ;;  %v7417_v63 = vshrl.u32 %v282_v62, 7  ;;  %s5202_s4 = sshll.u32 %s7220_s18, 4  ;;  %s5203_s4 = int_to_ptr.vmem [resolvable:$true] %s5202_s4 }
  0x94   :  { %5995 = vmatprep.subr.bf16.mxu1 %v7217_v0  ;;  %v142_v9 = vld [vmem:[#allocation2] sm:$0xff]  ;;  %v6193_v11 = vld [vmem:[#allocation8 + $0x4] ss:$8 sps:$4 sm:$0xff]   ;;  %v6191_v12 = vld [vmem:[#allocation8] ss:$8 sps:$4 sm:$0xff]   ;;  %s7169_s19 = scalar_lea.vmem %s5203_s4, 128  ;;  %p7174_p9 = scmp.lt.s32.totalorder %s5203_s4, %s5203_s4 }
  0x95   :  { %v161_v10 = vpack.c.bf16 %v142_v9, %v142_v9  ;;  %v6196_v13 = vld [vmem:[#allocation8 + $0x14] ss:$8 sps:$4 sm:$0xff]   ;;  %v6194_v14 = vld [vmem:[#allocation8 + $0x10] ss:$8 sps:$4 sm:$0xff]   ;;  %v6199_v15 = vld [vmem:[#allocation8 + $0x24] ss:$8 sps:$4 sm:$0xff]   ;;  %p7170_p8 = scmp.ne.s32.totalorder %s5203_s4, %s7169_s19  ;;  %p7175_p10 = scmp.lt.s32.totalorder %s7169_s19, %s7169_s19 }
  0x96   :  { %v6197_v16 = vld [vmem:[#allocation8 + $0x20] ss:$8 sps:$4 sm:$0xff]   ;;  %v6202_v17 = vld [vmem:[#allocation8 + $0x34] ss:$8 sps:$4 sm:$0xff]   ;;  %v6200_v18 = vld [vmem:[#allocation8 + $0x30] ss:$8 sps:$4 sm:$0xff]  }
  0x97   :  { %5996 = vmatpush3.bf16.msra.mxu1 %v6184_v2  ;;  %v6205_v19 = vld [vmem:[#allocation8 + $0x44] ss:$8 sps:$4 sm:$0xff]   ;;  %v6203_v20 = vld [vmem:[#allocation8 + $0x40] ss:$8 sps:$4 sm:$0xff]   ;;  %v6208_v21 = vld [vmem:[#allocation8 + $0x54] ss:$8 sps:$4 sm:$0xff]   ;;  %p7176_p11 = por %p7175_p10, %p7174_p9 }
  0x98   :  { %5997 = vmatprep.subr.bf16.mxu1 %v7217_v0  ;;  %v6206_v22 = vld [vmem:[#allocation8 + $0x50] ss:$8 sps:$4 sm:$0xff]   ;;  %v6211_v23 = vld [vmem:[#allocation8 + $0x64] ss:$8 sps:$4 sm:$0xff]   ;;  %v6209_v24 = vld [vmem:[#allocation8 + $0x60] ss:$8 sps:$4 sm:$0xff]  }
  0x99   :  { %v6214_v25 = vld [vmem:[#allocation8 + $0x74] ss:$8 sps:$4 sm:$0xff]   ;;  %v6212_v26 = vld [vmem:[#allocation8 + $0x70] ss:$8 sps:$4 sm:$0xff]   ;;  %v6215_v40 = vld [vmem:[#allocation10 + $0x40] sm:$0xff]   ;;  %v7420_v1 = vsub.s32 0, %v7417_v63  ;;  %p7177_p12 = pnand %p7176_p11, %p7170_p8 }
  0x9a   :  { %v5215_v28 = vld [vmem:[%s7620_s7] ss:$0 sm:$0xff]  ;;  %v6216_v41 = vld [vmem:[#allocation10] sm:$0xff]   ;;  %5798 = vmatprep.subr.bf16.mxu0 %v6215_v40  ;;  %v6217_v42 = vld [vmem:[#allocation10 + $0x48] sm:$0xff]  }
  0x9b   :  { %5998 = vmatpush3.bf16.msra.mxu1 %v6185_v3  ;;  %5799 = vmatpush3.bf16.msra.mxu0 %v6216_v41  ;;  %v6218_v43 = vld [vmem:[#allocation10 + $0x8] sm:$0xff]   ;;  %v6219_v44 = vld [vmem:[#allocation10 + $0x50] sm:$0xff]   ;;  %v6221_v46 = vld [vmem:[#allocation10 + $0x58] sm:$0xff]   ;;  %v7426_v3 = vsub.s32 1, %v7417_v63 }
  0x9c   :  { %5999 = vmatprep.subr.bf16.mxu1 %v7217_v0  ;;  %5800 = vmatprep.subr.bf16.mxu0 %v6217_v42  ;;  %v6220_v45 = vld [vmem:[#allocation10 + $0x10] sm:$0xff]   ;;  %v6222_v47 = vld [vmem:[#allocation10 + $0x18] sm:$0xff]   ;;  %v6223_v48 = vld [vmem:[#allocation10 + $0x60] sm:$0xff]  }
  0x9d   :  { %v6224_v49 = vld [vmem:[#allocation10 + $0x20] sm:$0xff]   ;;  %v6225_v50 = vld [vmem:[#allocation10 + $0x68] sm:$0xff]   ;;  %v6227_v52 = vld [vmem:[#allocation10 + $0x70] sm:$0xff]  }
  0x9e   :  { %v6226_v51 = vld [vmem:[#allocation10 + $0x28] sm:$0xff]   ;;  %v6228_v53 = vld [vmem:[#allocation10 + $0x30] sm:$0xff]   ;;  %v6229_v54 = vld [vmem:[#allocation10 + $0x78] sm:$0xff]  }
  0x9f   :  { %6000 = vmatpush3.bf16.msra.mxu1 %v6186_v4  ;;  %5801 = vmatpush3.bf16.msra.mxu0 %v6218_v43  ;;  %v6230_v55 = vld [vmem:[#allocation10 + $0x38] sm:$0xff]   ;;  %v6231_v56 = vld [vmem:[#allocation7 + $0x40] sm:$0xff]   ;;  %v6232_v57 = vld [vmem:[#allocation7 + $0x48] sm:$0xff]  }
  0xa0   :  { %6001 = vmatprep.subr.bf16.mxu1 %v7217_v0  ;;  %5802 = vmatprep.subr.bf16.mxu0 %v6219_v44  ;;  %v6233_v58 = vld [vmem:[#allocation7 + $0x50] sm:$0xff]   ;;  %v6234_v59 = vld [vmem:[#allocation7 + $0x58] sm:$0xff]   ;;  %v6235_v60 = vld [vmem:[#allocation7 + $0x60] sm:$0xff]  }
  0xa1   :  { %v6236_v61 = vld [vmem:[#allocation7 + $0x68] sm:$0xff]   ;;  %v279_v2 = vld [vmem:[%s7621_s8] sm:$0x3]  ;;  %v6250_v43 = vld [vmem:[#allocation8 + $0xb4] ss:$8 sps:$4 sm:$0xff]  }
  0xa2   :  { %v285_v4 = vrot.slane %v279_v2, %v7420_v1  ;;  %v6242_v40 = vld [vmem:[#allocation8 + $0x90] ss:$8 sps:$4 sm:$0xff]   ;;  %v6247_v41 = vld [vmem:[#allocation8 + $0xa4] ss:$8 sps:$4 sm:$0xff]   ;;  %v6245_v42 = vld [vmem:[#allocation8 + $0xa0] ss:$8 sps:$4 sm:$0xff]  }
  0xa3   :  { %6002 = vmatpush3.bf16.msra.mxu1 %v6187_v5  ;;  %5803 = vmatpush3.bf16.msra.mxu0 %v6220_v45  ;;  %v289_v5 = vrot.slane %v279_v2, %v7426_v3  ;;  %v6248_v44 = vld [vmem:[#allocation8 + $0xb0] ss:$8 sps:$4 sm:$0xff]   ;;  %v6253_v45 = vld [vmem:[#allocation8 + $0xc4] ss:$8 sps:$4 sm:$0xff]  }
  0xa4   :  { %6003 = vmatprep.subr.bf16.mxu1 %v7217_v0  ;;  %5804 = vmatprep.subr.bf16.mxu0 %v6221_v46  ;;  %v6251_v46 = vld [vmem:[#allocation8 + $0xc0] ss:$8 sps:$4 sm:$0xff]  }
  0xa7   :  { %6004 = vmatpush3.bf16.msra.mxu1 %v6188_v6  ;;  %5805 = vmatpush3.bf16.msra.mxu0 %v6222_v47  ;;  %v6256_v47 = vld [vmem:[#allocation8 + $0xd4] ss:$8 sps:$4 sm:$0xff]  }
  0xa8   :  { %6005 = vmatprep.subr.bf16.mxu1 %v7217_v0  ;;  %5806 = vmatprep.subr.bf16.mxu0 %v6223_v48  ;;  %v6254_v48 = vld [vmem:[#allocation8 + $0xd0] ss:$8 sps:$4 sm:$0xff]  }
  0xab   :  { %6006 = vmatpush3.bf16.msra.mxu1 %v6189_v7  ;;  %5807 = vmatpush3.bf16.msra.mxu0 %v6224_v49  ;;  %v6259_v49 = vld [vmem:[#allocation8 + $0xe4] ss:$8 sps:$4 sm:$0xff]  }
  0xac   :  { %6007 = vmatprep.subr.bf16.mxu1 %v7217_v0  ;;  %5808 = vmatprep.subr.bf16.mxu0 %v6225_v50  ;;  %v6257_v50 = vld [vmem:[#allocation8 + $0xe0] ss:$8 sps:$4 sm:$0xff]  }
  0xaf   :  { %6008 = vmatpush3.bf16.msra.mxu1 %v6190_v8  ;;  %5809 = vmatpush3.bf16.msra.mxu0 %v6226_v51  ;;  %v6262_v51 = vld [vmem:[#allocation8 + $0xf4] ss:$8 sps:$4 sm:$0xff]  }
  0xb0   :  { %372 = vmatprep.subr.bf16.mxu1 %v6193_v11  ;;  %5810 = vmatprep.subr.bf16.mxu0 %v6227_v52  ;;  %v6260_v52 = vld [vmem:[#allocation8 + $0xf0] ss:$8 sps:$4 sm:$0xff]  }
  0xb2   :  { %6010 = vmatmul.mubr.bf16.vlgmr.msra.gmra.mrb[0].mxu1 %v161_v10 }
  0xb3   :  { %373 = vmatpush1.bf16.msra.mxu1 %v6191_v12  ;;  %404 = vmatprep.mubr.bf16.mxu1 %v7219_v27 }
  0xb4   :  { %374 = vmatprep.subr.bf16.mxu1 %v6196_v13  ;;  %5811 = vmatpush3.bf16.msra.mxu0 %v6228_v53  ;;  %v5262_v53 = vld [vmem:[%s7620_s7 + $0x2] ss:$0 sm:$0xff] }
  0xb5   :  { %5812 = vmatprep.subr.bf16.mxu0 %v6229_v54 }
  0xb7   :  { %375 = vmatpush1.bf16.msra.mxu1 %v6194_v14 }
  0xb8   :  { %376 = vmatprep.subr.bf16.mxu1 %v6199_v15  ;;  %5813 = vmatpush3.bf16.msra.mxu0 %v6230_v55 }
  0xbb   :  { %377 = vmatpush1.bf16.msra.mxu1 %v6197_v16 }
  0xbc   :  { %378 = vmatprep.subr.bf16.mxu1 %v6202_v17 }
  0xbf   :  { %379 = vmatpush1.bf16.msra.mxu1 %v6200_v18 }
  0xc0   :  { %380 = vmatprep.subr.bf16.mxu1 %v6205_v19 }
  0xc3   :  { %381 = vmatpush1.bf16.msra.mxu1 %v6203_v20 }
  0xc4   :  { %382 = vmatprep.subr.bf16.mxu1 %v6208_v21 }
  0xc7   :  { %383 = vmatpush1.bf16.msra.mxu1 %v6206_v22 }
  0xc8   :  { %384 = vmatprep.subr.bf16.mxu1 %v6211_v23 }
  0xcb   :  { %385 = vmatpush1.bf16.msra.mxu1 %v6209_v24  ;;  %v6237_v24 = vld [vmem:[#allocation7 + $0x70] sm:$0xff]  }
  0xcc   :  { %386 = vmatprep.subr.bf16.mxu1 %v6214_v25  ;;  %v6238_v25 = vld [vmem:[#allocation7 + $0x78] sm:$0xff]  }
  0xcf   :  { %387 = vmatpush1.bf16.msra.mxu1 %v6212_v26 }
  0xd0   :  { %6013 = vmatprep.subr.bf16.mxu1 %v7217_v0 }
 0x185   :  { %v250_v29 = vpop.f32.mrb[0].mxu1 }
 0x186   :  { %v251_v30 = vadd.f32 %v5215_v28, %v250_v29  ;;  %v6011_v31 = vpop.f32.mrb[1].mxu1  ;;  %v5244_v28 = vld [vmem:[%s7620_s7 + $0x1] ss:$0 sm:$0xff] }
 0x187   :  { %v253_v32 = vpop.f32.mrb[2].mxu1 }
 0x188   :  { %v5224_v33 = vmul.f32 -1.442695, %v251_v30  ;;  %v6012_v34 = vpop.f32.mrb[3].mxu1 }
 0x189   :  { %v6991_v34 = vld [vmem:[#allocation2] sm:$0xff] }
 0x18a   :  { %6871 = vpow2.f32 %v5224_v33 }
 0x194   :  { %v6872_v35 = vpop.eup %6871 }
 0x195   :  { %v259_v36 = vadd.f32 1.0, %v6872_v35 }
 0x197   :  { %6873 = vrcp.f32 %v259_v36 }
 0x1a1   :  { %v6874_v37 = vpop.eup %6873 }
 0x1a2   :  { %v262_v38 = vmul.f32 %v6874_v37, %v251_v30  ;;  %v6241_v37 = vld [vmem:[#allocation8 + $0x84] ss:$8 sps:$4 sm:$0xff]  }
 0x1a3   :  { %838 = vmatprep.subr.bf16.mxu0 %v6241_v37 }
 0x1a4   :  { %v280_v39 = vpack.c.bf16 %v262_v38, %v262_v38  ;;  %v6239_v38 = vld [vmem:[#allocation8 + $0x80] ss:$8 sps:$4 sm:$0xff]  }
 0x1a6   :  { %405 = vmatmul.mubr.bf16.vlgmr.msra.gmra.mrb[4].mxu1 %v280_v39  ;;  %v6244_v39 = vld [vmem:[#allocation8 + $0x94] ss:$8 sps:$4 sm:$0xff]  }
 0x1a7   :  { %6029 = vmatprep.mubr.msk.bf16.mxu1 %vm7218_vm0, %v7217_v0  ;;  %6014 = vmatpush3.bf16.msra.mxu1 %v6231_v56 }
 0x1a8   :  { %6015 = vmatprep.subr.bf16.mxu1 %v7217_v0 }
 0x1ab   :  { %6016 = vmatpush3.bf16.msra.mxu1 %v6232_v57 }
 0x1ac   :  { %6017 = vmatprep.subr.bf16.mxu1 %v7217_v0 }
 0x1af   :  { %6018 = vmatpush3.bf16.msra.mxu1 %v6233_v58 }
 0x1b0   :  { %6019 = vmatprep.subr.bf16.mxu1 %v7217_v0 }
 0x1b3   :  { %6020 = vmatpush3.bf16.msra.mxu1 %v6234_v59 }
 0x1b4   :  { %6021 = vmatprep.subr.bf16.mxu1 %v7217_v0 }
 0x1b7   :  { %6022 = vmatpush3.bf16.msra.mxu1 %v6235_v60 }
 0x1b8   :  { %6023 = vmatprep.subr.bf16.mxu1 %v7217_v0 }
 0x1bb   :  { %6024 = vmatpush3.bf16.msra.mxu1 %v6236_v61 }
 0x1bc   :  { %6025 = vmatprep.subr.bf16.mxu1 %v7217_v0 }
 0x1bf   :  { %6026 = vmatpush3.bf16.msra.mxu1 %v6237_v24  ;;  %v6280_v24 = vld [vmem:[#allocation10 + $0xa0] sm:$0xff]  }
 0x1c0   :  { %6027 = vmatprep.subr.bf16.mxu1 %v7217_v0 }
 0x1c3   :  { %6028 = vmatpush3.bf16.msra.mxu1 %v6238_v25  ;;  %v6281_v25 = vld [vmem:[#allocation10 + $0xe8] sm:$0xff]  }
 0x279   :  { %v406_v6 = vpop.f32.mrb[4].mxu1 }
 0x27a   :  { %v407_v7 = vadd.f32 %v406_v6, %v285_v4  ;;  %v408_v8 = vpop.f32.mrb[5].mxu1  ;;  %v6263_v4 = vld [vmem:[#allocation7 + $0x80] sm:$0xff]   ;;  %v6264_v6 = vld [vmem:[#allocation7 + $0x88] sm:$0xff]  }
 0x27b   :  { %v409_v9 = vadd.f32 %v408_v8, %v289_v5  ;;  %v410_v10 = vpop.f32.mrb[6].mxu1  ;;  %v6266_v8 = vld [vmem:[#allocation7 + $0x98] sm:$0xff]  }
 0x27c   :  { %v5241_v11 = vmul.f32 -1.442695, %v407_v7  ;;  %v411_v12 = vpop.f32.mrb[7].mxu1  ;;  %v6268_v10 = vld [vmem:[#allocation7 + $0xa8] sm:$0xff]  }
 0x27d   :  { %v5242_v13 = vmul.f32 -1.442695, %v409_v9  ;;  %v6270_v12 = vld [vmem:[#allocation7 + $0xb8] sm:$0xff]  }
 0x27e   :  { %6875 = vpow2.f32 %v5241_v11  ;;  %v6269_v11 = vld [vmem:[#allocation7 + $0xb0] sm:$0xff]  }
 0x27f   :  { %6877 = vpow2.f32 %v5242_v13  ;;  %v143_v13 = vld [vmem:[#allocation5] sm:$0xff] }
 0x288   :  { %v6876_v14 = vpop.eup %6875 }
 0x289   :  { %v6878_v15 = vpop.eup %6877  ;;  %v419_v16 = vadd.f32 1.0, %v6876_v14  ;;  %v1092_v14 = vpack.c.bf16 %v143_v13, %v143_v13  ;;  %v6304_v13 = vld [vmem:[#allocation8 + $0x154] ss:$8 sps:$4 sm:$0xff]  }
 0x28a   :  { %v420_v17 = vadd.f32 1.0, %v6878_v15  ;;  %v6271_v15 = vld [vmem:[#allocation10 + $0xc0] sm:$0xff]  }
 0x28b   :  { %6879 = vrcp.f32 %v419_v16  ;;  %v6272_v16 = vld [vmem:[#allocation10 + $0x80] sm:$0xff]   ;;  %5829 = vmatprep.subr.bf16.mxu1 %v6271_v15 }
 0x28c   :  { %6881 = vrcp.f32 %v420_v17  ;;  %v6273_v17 = vld [vmem:[#allocation10 + $0xc8] sm:$0xff]  }
 0x28d   :  { %v6307_v15 = vld [vmem:[#allocation8 + $0x164] ss:$8 sps:$4 sm:$0xff]  }
 0x295   :  { %v6880_v18 = vpop.eup %6879 }
 0x296   :  { %v6882_v19 = vpop.eup %6881  ;;  %v425_v20 = vmul.f32 %v6880_v18, %v407_v7  ;;  %v6265_v7 = vld [vmem:[#allocation7 + $0x90] sm:$0xff]   ;;  %v6274_v18 = vld [vmem:[#allocation10 + $0x88] sm:$0xff]  }
 0x297   :  { %v426_v21 = vmul.f32 %v6882_v19, %v409_v9  ;;  %v6267_v9 = vld [vmem:[#allocation7 + $0xa0] sm:$0xff]   ;;  %v6275_v19 = vld [vmem:[#allocation10 + $0xd0] sm:$0xff]  }
 0x298   :  { %v461_v23 = vpack.c.bf16 %v425_v20, %v425_v20  ;;  %v6276_v20 = vld [vmem:[#allocation10 + $0x90] sm:$0xff]  }
 0x299   :  { %v462_v22 = vpack.c.bf16 %v426_v21, %v426_v21  ;;  %v6277_v21 = vld [vmem:[#allocation10 + $0xd8] sm:$0xff]  }
 0x29b   :  { %597 = vmatprep.mubr.bf16.mxu0 %v462_v22  ;;  %v6278_v22 = vld [vmem:[#allocation10 + $0x98] sm:$0xff]  }
 0x29c   :  { %598 = vmatmul.mubr.bf16.vlgmr.msra.gmra.mrb[0].mxu0 %v461_v23  ;;  %v6279_v23 = vld [vmem:[#allocation10 + $0xe0] sm:$0xff]  }
 0x29d   :  { %870 = vmatprep.mubr.bf16.mxu0 %v7219_v27  ;;  %839 = vmatpush1.bf16.msra.mxu0 %v6239_v38 }
 0x29e   :  { %840 = vmatprep.subr.bf16.mxu0 %v6244_v39 }
 0x2a1   :  { %841 = vmatpush1.bf16.msra.mxu0 %v6242_v40 }
 0x2a2   :  { %842 = vmatprep.subr.bf16.mxu0 %v6247_v41 }
 0x2a5   :  { %843 = vmatpush1.bf16.msra.mxu0 %v6245_v42 }
 0x2a6   :  { %844 = vmatprep.subr.bf16.mxu0 %v6250_v43 }
 0x2a9   :  { %845 = vmatpush1.bf16.msra.mxu0 %v6248_v44 }
 0x2aa   :  { %846 = vmatprep.subr.bf16.mxu0 %v6253_v45 }
 0x2ad   :  { %847 = vmatpush1.bf16.msra.mxu0 %v6251_v46 }
 0x2ae   :  { %848 = vmatprep.subr.bf16.mxu0 %v6256_v47 }
 0x2b1   :  { %849 = vmatpush1.bf16.msra.mxu0 %v6254_v48 }
 0x2b2   :  { %850 = vmatprep.subr.bf16.mxu0 %v6259_v49 }
 0x2b5   :  { %851 = vmatpush1.bf16.msra.mxu0 %v6257_v50 }
 0x2b6   :  { %852 = vmatprep.subr.bf16.mxu0 %v6262_v51 }
 0x2b9   :  { %853 = vmatpush1.bf16.msra.mxu0 %v6260_v52 }
 0x2ba   :  { %6033 = vmatprep.subr.bf16.mxu0 %v7217_v0 }
 0x36f   :  { %v5814_v26 = vpop.f32.mrb[0].mxu0 }
 0x370   :  { %v5815_v29 = vpop.f32.mrb[1].mxu0 }
 0x371   :  { %v5816_v30 = vadd.f32 %v5815_v29, %v5814_v26  ;;  %v5817_v31 = vpop.f32.mrb[2].mxu0  ;;  %v6282_v26 = vld [vmem:[#allocation10 + $0xa8] sm:$0xff]   ;;  %v6284_v29 = vld [vmem:[#allocation10 + $0xb0] sm:$0xff]  }
 0x372   :  { %v5818_v32 = vpop.f32.mrb[3].mxu0  ;;  %v6286_v31 = vld [vmem:[#allocation10 + $0xb8] sm:$0xff]  }
 0x373   :  { %v600_v33 = vadd.f32 %v5816_v30, %v5244_v28  ;;  %v6283_v28 = vld [vmem:[#allocation10 + $0xf0] sm:$0xff]   ;;  %v6285_v30 = vld [vmem:[#allocation10 + $0xf8] sm:$0xff]   ;;  %v6289_v32 = vld [vmem:[#allocation8 + $0x104] ss:$8 sps:$4 sm:$0xff]  }
 0x375   :  { %v7435_v35 = vadd.f32 %v6991_v34, %v600_v33  ;;  %v5272_v33 = vld [vmem:[%s7621_s8 + $0x2] sm:$0x3] }
 0x376   :  { %v751_v34 = vrot.slane %v5272_v33, %v7420_v1 }
 0x377   :  { %v625_v36 = vpack.c.bf16 %v7435_v35, %v7435_v35 }
 0x379   :  { %6030 = vmatmul.mubr.bf16.vlgmr.msra.gmra.mrb[8].mxu1 %v625_v36  ;;  %v755_v36 = vrot.slane %v5272_v33, %v7426_v3  ;;  %v6321_v33 = vld [vmem:[#allocation10 + $0x168] sm:$0xff]  }
 0x37a   :  { %5830 = vmatpush3.bf16.msra.mxu1 %v6272_v16  ;;  %v6305_v16 = vld [vmem:[#allocation8 + $0x160] ss:$8 sps:$4 sm:$0xff]  }
 0x37b   :  { %5831 = vmatprep.subr.bf16.mxu1 %v6273_v17  ;;  %v6310_v17 = vld [vmem:[#allocation8 + $0x174] ss:$8 sps:$4 sm:$0xff]  }
 0x37e   :  { %5832 = vmatpush3.bf16.msra.mxu1 %v6274_v18 }
 0x37f   :  { %5833 = vmatprep.subr.bf16.mxu1 %v6275_v19  ;;  %v6308_v19 = vld [vmem:[#allocation8 + $0x170] ss:$8 sps:$4 sm:$0xff]  }
 0x382   :  { %5834 = vmatpush3.bf16.msra.mxu1 %v6276_v20 }
 0x383   :  { %5835 = vmatprep.subr.bf16.mxu1 %v6277_v21 }
 0x386   :  { %5836 = vmatpush3.bf16.msra.mxu1 %v6278_v22  ;;  %v6311_v22 = vld [vmem:[#allocation10 + $0x140] sm:$0xff]  }
 0x387   :  { %5837 = vmatprep.subr.bf16.mxu1 %v6279_v23  ;;  %v6312_v23 = vld [vmem:[#allocation10 + $0x100] sm:$0xff]  }
 0x38a   :  { %5838 = vmatpush3.bf16.msra.mxu1 %v6280_v24  ;;  %v6313_v24 = vld [vmem:[#allocation10 + $0x148] sm:$0xff]  }
 0x38b   :  { %5839 = vmatprep.subr.bf16.mxu1 %v6281_v25  ;;  %v6314_v25 = vld [vmem:[#allocation10 + $0x108] sm:$0xff]  }
 0x38e   :  { %5840 = vmatpush3.bf16.msra.mxu1 %v6282_v26  ;;  %v6315_v26 = vld [vmem:[#allocation10 + $0x150] sm:$0xff]  }
 0x38f   :  { %5841 = vmatprep.subr.bf16.mxu1 %v6283_v28  ;;  %v6316_v28 = vld [vmem:[#allocation10 + $0x110] sm:$0xff]  }
 0x392   :  { %5842 = vmatpush3.bf16.msra.mxu1 %v6284_v29  ;;  %v6317_v29 = vld [vmem:[#allocation10 + $0x158] sm:$0xff]  }
 0x393   :  { %5843 = vmatprep.subr.bf16.mxu1 %v6285_v30  ;;  %v6318_v30 = vld [vmem:[#allocation10 + $0x118] sm:$0xff]  }
 0x396   :  { %5844 = vmatpush3.bf16.msra.mxu1 %v6286_v31  ;;  %v6319_v31 = vld [vmem:[#allocation10 + $0x160] sm:$0xff]  }
 0x397   :  { %1305 = vmatprep.subr.bf16.mxu1 %v6289_v32  ;;  %v6320_v32 = vld [vmem:[#allocation10 + $0x120] sm:$0xff]  }
 0x44c   :  { %v714_v54 = vpop.f32.mrb[8].mxu1 }
 0x44d   :  { %v715_v55 = vadd.f32 %v5262_v53, %v714_v54  ;;  %v6031_v56 = vpop.f32.mrb[9].mxu1  ;;  %v5310_v53 = vld [vmem:[%s7620_s7 + $0x4] ss:$0 sm:$0xff] }
 0x44e   :  { %v717_v57 = vpop.f32.mrb[10].mxu1  ;;  %v6287_v56 = vld [vmem:[#allocation8 + $0x100] ss:$8 sps:$4 sm:$0xff]  }
 0x44f   :  { %v5271_v58 = vmul.f32 -1.442695, %v715_v55  ;;  %v6032_v59 = vpop.f32.mrb[11].mxu1 }
 0x451   :  { %6883 = vpow2.f32 %v5271_v58 }
 0x45b   :  { %v6884_v60 = vpop.eup %6883 }
 0x45c   :  { %v723_v61 = vadd.f32 1.0, %v6884_v60  ;;  %v6292_v60 = vld [vmem:[#allocation8 + $0x114] ss:$8 sps:$4 sm:$0xff]  }
 0x45e   :  { %6885 = vrcp.f32 %v723_v61 }
 0x468   :  { %v6886_v62 = vpop.eup %6885 }
 0x469   :  { %v726_v2 = vmul.f32 %v6886_v62, %v715_v55 }
 0x46b   :  { %v746_v5 = vpack.c.bf16 %v726_v2, %v726_v2 }
 0x46d   :  { %871 = vmatmul.mubr.bf16.vlgmr.msra.gmra.mrb[4].mxu0 %v746_v5  ;;  %v6295_v5 = vld [vmem:[#allocation8 + $0x124] ss:$8 sps:$4 sm:$0xff]  }
 0x46e   :  { %6034 = vmatpush3.bf16.msra.mxu0 %v6263_v4  ;;  %6049 = vmatprep.mubr.msk.bf16.mxu0 %vm7218_vm0, %v7217_v0  ;;  %v6290_v4 = vld [vmem:[#allocation8 + $0x110] ss:$8 sps:$4 sm:$0xff]  }
 0x46f   :  { %6035 = vmatprep.subr.bf16.mxu0 %v7217_v0 }
 0x472   :  { %6036 = vmatpush3.bf16.msra.mxu0 %v6264_v6  ;;  %v6293_v6 = vld [vmem:[#allocation8 + $0x120] ss:$8 sps:$4 sm:$0xff]  }
 0x473   :  { %6037 = vmatprep.subr.bf16.mxu0 %v7217_v0 }
 0x476   :  { %6038 = vmatpush3.bf16.msra.mxu0 %v6265_v7  ;;  %v6298_v7 = vld [vmem:[#allocation8 + $0x134] ss:$8 sps:$4 sm:$0xff]  }
 0x477   :  { %6039 = vmatprep.subr.bf16.mxu0 %v7217_v0 }
 0x47a   :  { %6040 = vmatpush3.bf16.msra.mxu0 %v6266_v8  ;;  %v6296_v8 = vld [vmem:[#allocation8 + $0x130] ss:$8 sps:$4 sm:$0xff]  }
 0x47b   :  { %6041 = vmatprep.subr.bf16.mxu0 %v7217_v0 }
 0x47e   :  { %6042 = vmatpush3.bf16.msra.mxu0 %v6267_v9  ;;  %v6301_v9 = vld [vmem:[#allocation8 + $0x144] ss:$8 sps:$4 sm:$0xff]  }
 0x47f   :  { %6043 = vmatprep.subr.bf16.mxu0 %v7217_v0 }
 0x482   :  { %6044 = vmatpush3.bf16.msra.mxu0 %v6268_v10 }
 0x483   :  { %6045 = vmatprep.subr.bf16.mxu0 %v7217_v0 }
 0x486   :  { %6046 = vmatpush3.bf16.msra.mxu0 %v6269_v11 }
 0x487   :  { %6047 = vmatprep.subr.bf16.mxu0 %v7217_v0 }
 0x48a   :  { %6048 = vmatpush3.bf16.msra.mxu0 %v6270_v12  ;;  %v6299_v12 = vld [vmem:[#allocation8 + $0x140] ss:$8 sps:$4 sm:$0xff]  }
 0x48b   :  { %5860 = vmatprep.subr.bf16.mxu0 %v6311_v22 }
 0x48d   :  { %6050 = vmatmul.mubr.bf16.vlgmr.msra.gmra.mrb[8].mxu0 %v1092_v14  ;;  %v6302_v14 = vld [vmem:[#allocation8 + $0x150] ss:$8 sps:$4 sm:$0xff]  }
 0x48e   :  { %5861 = vmatpush3.bf16.msra.mxu0 %v6312_v23 }
 0x48f   :  { %5862 = vmatprep.subr.bf16.mxu0 %v6313_v24  ;;  %v6341_v24 = vld [vmem:[#allocation7 + $0x130] sm:$0xff]  }
 0x492   :  { %5863 = vmatpush3.bf16.msra.mxu0 %v6314_v25  ;;  %v6342_v25 = vld [vmem:[#allocation7 + $0x138] sm:$0xff]  }
 0x493   :  { %5864 = vmatprep.subr.bf16.mxu0 %v6315_v26 }
 0x496   :  { %5865 = vmatpush3.bf16.msra.mxu0 %v6316_v28  ;;  %v5340_v28 = vld [vmem:[%s7620_s7 + $0x5] ss:$0 sm:$0xff] }
 0x497   :  { %5866 = vmatprep.subr.bf16.mxu0 %v6317_v29 }
 0x49a   :  { %5867 = vmatpush3.bf16.msra.mxu0 %v6318_v30 }
 0x49b   :  { %5868 = vmatprep.subr.bf16.mxu0 %v6319_v31 }
 0x49e   :  { %5869 = vmatpush3.bf16.msra.mxu0 %v6320_v32 }
 0x49f   :  { %5870 = vmatprep.subr.bf16.mxu0 %v6321_v33 }
 0x540   :  { %v872_v37 = vpop.f32.mrb[4].mxu0 }
 0x541   :  { %v873_v38 = vadd.f32 %v872_v37, %v751_v34  ;;  %v874_v39 = vpop.f32.mrb[5].mxu0  ;;  %v6322_v34 = vld [vmem:[#allocation10 + $0x128] sm:$0xff]   ;;  %v6324_v37 = vld [vmem:[#allocation10 + $0x130] sm:$0xff]  }
 0x542   :  { %v875_v40 = vadd.f32 %v874_v39, %v755_v36  ;;  %v876_v41 = vpop.f32.mrb[6].mxu0  ;;  %5871 = vmatpush3.bf16.msra.mxu0 %v6322_v34  ;;  %v6323_v36 = vld [vmem:[#allocation10 + $0x170] sm:$0xff]   ;;  %v6326_v39 = vld [vmem:[#allocation10 + $0x138] sm:$0xff]  }
 0x543   :  { %v5289_v42 = vmul.f32 -1.442695, %v873_v38  ;;  %v877_v43 = vpop.f32.mrb[7].mxu0  ;;  %5872 = vmatprep.subr.bf16.mxu0 %v6323_v36  ;;  %v6336_v41 = vld [vmem:[#allocation7 + $0x108] sm:$0xff]  }
 0x544   :  { %v5290_v44 = vmul.f32 -1.442695, %v875_v40  ;;  %v6338_v43 = vld [vmem:[#allocation7 + $0x118] sm:$0xff]  }
 0x545   :  { %6887 = vpow2.f32 %v5289_v42  ;;  %v6337_v42 = vld [vmem:[#allocation7 + $0x110] sm:$0xff]  }
 0x546   :  { %6889 = vpow2.f32 %v5290_v44  ;;  %5873 = vmatpush3.bf16.msra.mxu0 %v6324_v37  ;;  %v6339_v44 = vld [vmem:[#allocation7 + $0x120] sm:$0xff]  }
 0x54f   :  { %v6888_v45 = vpop.eup %6887 }
 0x550   :  { %v6890_v46 = vpop.eup %6889  ;;  %v885_v47 = vadd.f32 1.0, %v6888_v45  ;;  %v6340_v45 = vld [vmem:[#allocation7 + $0x128] sm:$0xff]  }
 0x551   :  { %v886_v48 = vadd.f32 1.0, %v6890_v46 }
 0x552   :  { %6891 = vrcp.f32 %v885_v47 }
 0x553   :  { %6893 = vrcp.f32 %v886_v48 }
 0x55c   :  { %v6892_v49 = vpop.eup %6891 }
 0x55d   :  { %v6894_v50 = vpop.eup %6893  ;;  %v891_v51 = vmul.f32 %v6892_v49, %v873_v38  ;;  %v6325_v38 = vld [vmem:[#allocation10 + $0x178] sm:$0xff]  }
 0x55e   :  { %v892_v52 = vmul.f32 %v6894_v50, %v875_v40  ;;  %5874 = vmatprep.subr.bf16.mxu0 %v6325_v38  ;;  %v6335_v40 = vld [vmem:[#allocation7 + $0x100] sm:$0xff]  }
 0x55f   :  { %v928_v57 = vpack.c.bf16 %v891_v51, %v891_v51  ;;  %5875 = vmatpush3.bf16.msra.mxu0 %v6326_v39  ;;  %v5320_v51 = vld [vmem:[%s7621_s8 + $0x4] sm:$0x3]  ;;  %v6345_v39 = vld [vmem:[#allocation8 + $0x184] ss:$8 sps:$4 sm:$0xff]  }
 0x560   :  { %v929_v54 = vpack.c.bf16 %v892_v52, %v892_v52  ;;  %v1181_v55 = vpop.f32.mrb[8].mxu0  ;;  %6073 = vmatprep.subr.bf16.mxu0 %v7217_v0  ;;  %v1218_v52 = vrot.slane %v5320_v51, %v7420_v1 }
 0x561   :  { %v1182_v58 = vadd.f32 %v5310_v53, %v1181_v55  ;;  %v6051_v59 = vpop.f32.mrb[9].mxu0  ;;  %v1222_v53 = vrot.slane %v5320_v51, %v7426_v3  ;;  %v6363_v51 = vld [vmem:[#allocation8 + $0x1e4] ss:$8 sps:$4 sm:$0xff]  }
 0x562   :  { %v1184_v61 = vpop.f32.mrb[10].mxu0  ;;  %1064 = vmatprep.mubr.bf16.mxu1 %v929_v54 }
 0x563   :  { %v5319_v62 = vmul.f32 -1.442695, %v1182_v58  ;;  %v6052_v2 = vpop.f32.mrb[11].mxu0  ;;  %1065 = vmatmul.mubr.bf16.vlgmr.msra.gmra.mrb[12].mxu1 %v928_v57 }
 0x564   :  { %1306 = vmatpush1.bf16.msra.mxu1 %v6287_v56  ;;  %1337 = vmatprep.mubr.bf16.mxu1 %v7219_v27 }
 0x565   :  { %6895 = vpow2.f32 %v5319_v62  ;;  %1307 = vmatprep.subr.bf16.mxu1 %v6292_v60 }
 0x568   :  { %1308 = vmatpush1.bf16.msra.mxu1 %v6290_v4 }
 0x569   :  { %1309 = vmatprep.subr.bf16.mxu1 %v6295_v5 }
 0x56c   :  { %1310 = vmatpush1.bf16.msra.mxu1 %v6293_v6 }
 0x56d   :  { %1311 = vmatprep.subr.bf16.mxu1 %v6298_v7 }
 0x56f   :  { %v6896_v10 = vpop.eup %6895 }
 0x570   :  { %v1190_v11 = vadd.f32 1.0, %v6896_v10  ;;  %1312 = vmatpush1.bf16.msra.mxu1 %v6296_v8 }
 0x571   :  { %1313 = vmatprep.subr.bf16.mxu1 %v6301_v9 }
 0x572   :  { %6897 = vrcp.f32 %v1190_v11  ;;  %v6327_v11 = vld [vmem:[#allocation7 + $0xc0] sm:$0xff]  }
 0x574   :  { %1314 = vmatpush1.bf16.msra.mxu1 %v6299_v12 }
 0x575   :  { %1315 = vmatprep.subr.bf16.mxu1 %v6304_v13  ;;  %v6328_v13 = vld [vmem:[#allocation7 + $0xc8] sm:$0xff]  }
 0x578   :  { %1316 = vmatpush1.bf16.msra.mxu1 %v6302_v14  ;;  %v6329_v14 = vld [vmem:[#allocation7 + $0xd0] sm:$0xff]  }
 0x579   :  { %1317 = vmatprep.subr.bf16.mxu1 %v6307_v15  ;;  %v6330_v15 = vld [vmem:[#allocation7 + $0xd8] sm:$0xff]  }
 0x57c   :  { %v6898_v18 = vpop.eup %6897  ;;  %1318 = vmatpush1.bf16.msra.mxu1 %v6305_v16  ;;  %v6331_v16 = vld [vmem:[#allocation7 + $0xe0] sm:$0xff]  }
 0x57d   :  { %v1193_v20 = vmul.f32 %v6898_v18, %v1182_v58  ;;  %1319 = vmatprep.subr.bf16.mxu1 %v6310_v17  ;;  %v6332_v17 = vld [vmem:[#allocation7 + $0xe8] sm:$0xff]   ;;  %v5292_v18 = vld [vmem:[%s7620_s7 + $0x3] ss:$0 sm:$0xff] }
 0x57f   :  { %v1213_v21 = vpack.c.bf16 %v1193_v20, %v1193_v20 }
 0x580   :  { %1320 = vmatpush1.bf16.msra.mxu1 %v6308_v19  ;;  %v6333_v19 = vld [vmem:[#allocation7 + $0xf0] sm:$0xff]  }
 0x581   :  { %6053 = vmatprep.subr.bf16.mxu1 %v7217_v0 }
 0x583   :  { %1338 = vmatmul.mubr.bf16.vlgmr.msra.gmra.mrb[16].mxu1 %v1213_v21  ;;  %v6334_v21 = vld [vmem:[#allocation7 + $0xf8] sm:$0xff]  }
 0x584   :  { %6069 = vmatprep.mubr.msk.bf16.mxu1 %vm7218_vm0, %v7217_v0  ;;  %6054 = vmatpush3.bf16.msra.mxu1 %v6335_v40  ;;  %v6343_v40 = vld [vmem:[#allocation8 + $0x180] ss:$8 sps:$4 sm:$0xff]  }
 0x585   :  { %6055 = vmatprep.subr.bf16.mxu1 %v7217_v0 }
 0x588   :  { %6056 = vmatpush3.bf16.msra.mxu1 %v6336_v41  ;;  %v6348_v41 = vld [vmem:[#allocation8 + $0x194] ss:$8 sps:$4 sm:$0xff]  }
 0x589   :  { %6057 = vmatprep.subr.bf16.mxu1 %v7217_v0 }
 0x58c   :  { %6058 = vmatpush3.bf16.msra.mxu1 %v6337_v42  ;;  %v6346_v42 = vld [vmem:[#allocation8 + $0x190] ss:$8 sps:$4 sm:$0xff]  }
 0x58d   :  { %6059 = vmatprep.subr.bf16.mxu1 %v7217_v0 }
 0x590   :  { %6060 = vmatpush3.bf16.msra.mxu1 %v6338_v43  ;;  %v6351_v43 = vld [vmem:[#allocation8 + $0x1a4] ss:$8 sps:$4 sm:$0xff]  }
 0x591   :  { %6061 = vmatprep.subr.bf16.mxu1 %v7217_v0 }
 0x594   :  { %6062 = vmatpush3.bf16.msra.mxu1 %v6339_v44  ;;  %v6349_v44 = vld [vmem:[#allocation8 + $0x1a0] ss:$8 sps:$4 sm:$0xff]  }
 0x595   :  { %6063 = vmatprep.subr.bf16.mxu1 %v7217_v0 }
 0x598   :  { %6064 = vmatpush3.bf16.msra.mxu1 %v6340_v45  ;;  %v6354_v45 = vld [vmem:[#allocation8 + $0x1b4] ss:$8 sps:$4 sm:$0xff]  }
 0x599   :  { %6065 = vmatprep.subr.bf16.mxu1 %v7217_v0 }
 0x59c   :  { %6066 = vmatpush3.bf16.msra.mxu1 %v6341_v24  ;;  %v6383_v24 = vld [vmem:[#allocation7 + $0x140] sm:$0xff]  }
 0x59d   :  { %6067 = vmatprep.subr.bf16.mxu1 %v7217_v0 }
 0x5a0   :  { %6068 = vmatpush3.bf16.msra.mxu1 %v6342_v25  ;;  %v6384_v25 = vld [vmem:[#allocation7 + $0x148] sm:$0xff]  }
 0x5a1   :  { %1878 = vmatprep.subr.bf16.mxu1 %v6345_v39 }
 0x636   :  { %v5845_v46 = vpop.f32.mrb[12].mxu1 }
 0x637   :  { %v5846_v47 = vpop.f32.mrb[13].mxu1 }
 0x638   :  { %v5847_v48 = vadd.f32 %v5846_v47, %v5845_v46  ;;  %v5848_v49 = vpop.f32.mrb[14].mxu1  ;;  %v6352_v46 = vld [vmem:[#allocation8 + $0x1b0] ss:$8 sps:$4 sm:$0xff]   ;;  %v6357_v47 = vld [vmem:[#allocation8 + $0x1c4] ss:$8 sps:$4 sm:$0xff]  }
 0x639   :  { %v5849_v50 = vpop.f32.mrb[15].mxu1  ;;  %v6360_v49 = vld [vmem:[#allocation8 + $0x1d4] ss:$8 sps:$4 sm:$0xff]  }
 0x63a   :  { %v1067_v20 = vadd.f32 %v5847_v48, %v5292_v18  ;;  %v6355_v48 = vld [vmem:[#allocation8 + $0x1c0] ss:$8 sps:$4 sm:$0xff]   ;;  %v6358_v50 = vld [vmem:[#allocation8 + $0x1d0] ss:$8 sps:$4 sm:$0xff]  }
 0x63b   :  { %v6377_v18 = vld [vmem:[#allocation10 + $0x1e8] sm:$0xff]  }
 0x63c   :  { %v1072_v22 = vadd.f32 %v1067_v20, %v7435_v35  ;;  %v6379_v20 = vld [vmem:[#allocation10 + $0x1f0] sm:$0xff]  }
 0x63e   :  { %v1575_v23 = vpack.c.bf16 %v1072_v22, %v1072_v22  ;;  %v6381_v22 = vld [vmem:[#allocation10 + $0x1f8] sm:$0xff]  }
 0x656   :  { %v1339_v54 = vpop.f32.mrb[16].mxu1 }
 0x657   :  { %v1340_v55 = vadd.f32 %v1339_v54, %v1218_v52  ;;  %v1341_v56 = vpop.f32.mrb[17].mxu1  ;;  %v6361_v52 = vld [vmem:[#allocation8 + $0x1e0] ss:$8 sps:$4 sm:$0xff]   ;;  %v6364_v54 = vld [vmem:[#allocation8 + $0x1f0] ss:$8 sps:$4 sm:$0xff]  }
 0x658   :  { %v1342_v57 = vadd.f32 %v1341_v56, %v1222_v53  ;;  %v1343_v58 = vpop.f32.mrb[18].mxu1  ;;  %v6366_v53 = vld [vmem:[#allocation8 + $0x1f4] ss:$8 sps:$4 sm:$0xff]  }
 0x659   :  { %v5337_v59 = vmul.f32 -1.442695, %v1340_v55  ;;  %v1344_v60 = vpop.f32.mrb[19].mxu1 }
 0x65a   :  { %v5338_v61 = vmul.f32 -1.442695, %v1342_v57 }
 0x65b   :  { %6899 = vpow2.f32 %v5337_v59 }
 0x65c   :  { %6901 = vpow2.f32 %v5338_v61 }
 0x665   :  { %v6900_v62 = vpop.eup %6899 }
 0x666   :  { %v6902_v2 = vpop.eup %6901  ;;  %v1352_v4 = vadd.f32 1.0, %v6900_v62 }
 0x667   :  { %v1353_v5 = vadd.f32 1.0, %v6902_v2 }
 0x668   :  { %6903 = vrcp.f32 %v1352_v4 }
 0x669   :  { %6905 = vrcp.f32 %v1353_v5 }
 0x672   :  { %v6904_v6 = vpop.eup %6903 }
 0x673   :  { %v6906_v7 = vpop.eup %6905  ;;  %v1358_v8 = vmul.f32 %v6904_v6, %v1340_v55  ;;  %v5374_v55 = vld [vmem:[%s7620_s7 + $0x6] ss:$0 sm:$0xff] }
 0x674   :  { %v1359_v9 = vmul.f32 %v6906_v7, %v1342_v57 }
 0x675   :  { %v1395_v12 = vpack.c.bf16 %v1358_v8, %v1358_v8  ;;  %v6367_v8 = vld [vmem:[#allocation10 + $0x1c0] sm:$0xff]  }
 0x676   :  { %v1396_v10 = vpack.c.bf16 %v1359_v9, %v1359_v9  ;;  %v6368_v9 = vld [vmem:[#allocation10 + $0x180] sm:$0xff]  }
 0x678   :  { %1531 = vmatprep.mubr.bf16.mxu0 %v1396_v10  ;;  %v6369_v10 = vld [vmem:[#allocation10 + $0x1c8] sm:$0xff]  }
 0x679   :  { %1532 = vmatmul.mubr.bf16.vlgmr.msra.gmra.mrb[12].mxu0 %v1395_v12  ;;  %v6371_v12 = vld [vmem:[#allocation10 + $0x1d0] sm:$0xff]  }
 0x67a   :  { %6074 = vmatpush3.bf16.msra.mxu0 %v6327_v11  ;;  %6089 = vmatprep.mubr.msk.bf16.mxu0 %vm7218_vm0, %v7217_v0  ;;  %v6370_v11 = vld [vmem:[#allocation10 + $0x188] sm:$0xff]  }
 0x67b   :  { %6075 = vmatprep.subr.bf16.mxu0 %v7217_v0 }
 0x67e   :  { %6076 = vmatpush3.bf16.msra.mxu0 %v6328_v13  ;;  %v6372_v13 = vld [vmem:[#allocation10 + $0x190] sm:$0xff]  }
 0x67f   :  { %6077 = vmatprep.subr.bf16.mxu0 %v7217_v0 }
 0x682   :  { %6078 = vmatpush3.bf16.msra.mxu0 %v6329_v14  ;;  %v6373_v14 = vld [vmem:[#allocation10 + $0x1d8] sm:$0xff]  }
 0x683   :  { %6079 = vmatprep.subr.bf16.mxu0 %v7217_v0 }
 0x686   :  { %6080 = vmatpush3.bf16.msra.mxu0 %v6330_v15  ;;  %v6374_v15 = vld [vmem:[#allocation10 + $0x198] sm:$0xff]  }
 0x687   :  { %6081 = vmatprep.subr.bf16.mxu0 %v7217_v0 }
 0x68a   :  { %6082 = vmatpush3.bf16.msra.mxu0 %v6331_v16  ;;  %v6375_v16 = vld [vmem:[#allocation10 + $0x1e0] sm:$0xff]  }
 0x68b   :  { %6083 = vmatprep.subr.bf16.mxu0 %v7217_v0 }
 0x68e   :  { %6084 = vmatpush3.bf16.msra.mxu0 %v6332_v17  ;;  %v6376_v17 = vld [vmem:[#allocation10 + $0x1a0] sm:$0xff]  }
 0x68f   :  { %6085 = vmatprep.subr.bf16.mxu0 %v7217_v0 }
 0x692   :  { %6086 = vmatpush3.bf16.msra.mxu0 %v6333_v19  ;;  %v6378_v19 = vld [vmem:[#allocation10 + $0x1a8] sm:$0xff]  }
 0x693   :  { %6087 = vmatprep.subr.bf16.mxu0 %v7217_v0 }
 0x696   :  { %6088 = vmatpush3.bf16.msra.mxu0 %v6334_v21  ;;  %v6380_v21 = vld [vmem:[#allocation10 + $0x1b0] sm:$0xff]  }
 0x697   :  { %5900 = vmatprep.subr.bf16.mxu0 %v6367_v8  ;;  %v6399_v8 = vld [vmem:[#allocation8 + $0x224] ss:$8 sps:$4 sm:$0xff]  }
 0x699   :  { %6090 = vmatmul.mubr.bf16.vlgmr.msra.gmra.mrb[16].mxu0 %v1575_v23  ;;  %v6382_v23 = vld [vmem:[#allocation10 + $0x1b8] sm:$0xff]  }
 0x69a   :  { %5901 = vmatpush3.bf16.msra.mxu0 %v6368_v9  ;;  %v6397_v9 = vld [vmem:[#allocation8 + $0x220] ss:$8 sps:$4 sm:$0xff]  }
 0x69b   :  { %5902 = vmatprep.subr.bf16.mxu0 %v6369_v10  ;;  %v6402_v10 = vld [vmem:[#allocation8 + $0x234] ss:$8 sps:$4 sm:$0xff]  }
 0x69e   :  { %5903 = vmatpush3.bf16.msra.mxu0 %v6370_v11  ;;  %v6400_v11 = vld [vmem:[#allocation8 + $0x230] ss:$8 sps:$4 sm:$0xff]  }
 0x69f   :  { %5904 = vmatprep.subr.bf16.mxu0 %v6371_v12  ;;  %v6403_v12 = vld [vmem:[#allocation8 + $0x240] ss:$8 sps:$4 sm:$0xff]  }
 0x6a2   :  { %5905 = vmatpush3.bf16.msra.mxu0 %v6372_v13  ;;  %v6408_v13 = vld [vmem:[#allocation8 + $0x254] ss:$8 sps:$4 sm:$0xff]  }
 0x6a3   :  { %5906 = vmatprep.subr.bf16.mxu0 %v6373_v14  ;;  %v6406_v14 = vld [vmem:[#allocation8 + $0x250] ss:$8 sps:$4 sm:$0xff]  }
 0x6a6   :  { %5907 = vmatpush3.bf16.msra.mxu0 %v6374_v15  ;;  %v6411_v15 = vld [vmem:[#allocation8 + $0x264] ss:$8 sps:$4 sm:$0xff]  }
 0x6a7   :  { %5908 = vmatprep.subr.bf16.mxu0 %v6375_v16  ;;  %v6409_v16 = vld [vmem:[#allocation8 + $0x260] ss:$8 sps:$4 sm:$0xff]  }
 0x6aa   :  { %5909 = vmatpush3.bf16.msra.mxu0 %v6376_v17  ;;  %v6414_v17 = vld [vmem:[#allocation8 + $0x274] ss:$8 sps:$4 sm:$0xff]  }
 0x6ab   :  { %5910 = vmatprep.subr.bf16.mxu0 %v6377_v18  ;;  %v6412_v18 = vld [vmem:[#allocation8 + $0x270] ss:$8 sps:$4 sm:$0xff]  }
 0x6ae   :  { %5911 = vmatpush3.bf16.msra.mxu0 %v6378_v19  ;;  %v6415_v19 = vld [vmem:[#allocation11] ss:$16 sps:$4 sm:$0xff]  }
 0x6af   :  { %5912 = vmatprep.subr.bf16.mxu0 %v6379_v20  ;;  %v6417_v20 = vld [vmem:[#allocation11 + $0x4] ss:$16 sps:$4 sm:$0xff]  }
 0x6b2   :  { %5913 = vmatpush3.bf16.msra.mxu0 %v6380_v21  ;;  %v6420_v21 = vld [vmem:[#allocation11 + $0xc] ss:$16 sps:$4 sm:$0xff]  }
 0x6b3   :  { %5914 = vmatprep.subr.bf16.mxu0 %v6381_v22  ;;  %v6423_v22 = vld [vmem:[#allocation11 + $0x24] ss:$16 sps:$4 sm:$0xff]  }
 0x6b6   :  { %5915 = vmatpush3.bf16.msra.mxu0 %v6382_v23  ;;  %v6421_v23 = vld [vmem:[#allocation11 + $0x20] ss:$16 sps:$4 sm:$0xff]  }
 0x74c   :  { %v5876_v26 = vpop.f32.mrb[12].mxu0 }
 0x74d   :  { %v5877_v29 = vpop.f32.mrb[13].mxu0 }
 0x74e   :  { %v5878_v30 = vadd.f32 %v5877_v29, %v5876_v26  ;;  %v5879_v31 = vpop.f32.mrb[14].mxu0  ;;  %v6385_v26 = vld [vmem:[#allocation7 + $0x150] sm:$0xff]   ;;  %v6387_v29 = vld [vmem:[#allocation7 + $0x160] sm:$0xff]  }
 0x74f   :  { %v5880_v35 = vpop.f32.mrb[15].mxu0  ;;  %v5376_v31 = vld [vmem:[%s7621_s8 + $0x6] sm:$0x3] }
 0x750   :  { %v7493_v32 = vadd.f32 %v5878_v30, %v5340_v28  ;;  %v6386_v28 = vld [vmem:[#allocation7 + $0x158] sm:$0xff]   ;;  %v6388_v30 = vld [vmem:[#allocation7 + $0x168] sm:$0xff]   ;;  %v1791_v35 = vrot.slane %v5376_v31, %v7420_v1 }
 0x752   :  { %v1576_v33 = vpack.c.bf16 %v7493_v32, %v7493_v32 }
 0x754   :  { %6070 = vmatmul.mubr.bf16.vlgmr.msra.gmra.mrb[20].mxu1 %v1576_v33  ;;  %v1795_v33 = vrot.slane %v5376_v31, %v7426_v3  ;;  %v6447_v31 = vld [vmem:[#allocation11 + $0xa4] ss:$16 sps:$4 sm:$0xff]  }
 0x755   :  { %1910 = vmatprep.mubr.bf16.mxu1 %v7219_v27  ;;  %1879 = vmatpush1.bf16.msra.mxu1 %v6343_v40 }
 0x756   :  { %1880 = vmatprep.subr.bf16.mxu1 %v6348_v41 }
 0x759   :  { %1881 = vmatpush1.bf16.msra.mxu1 %v6346_v42 }
 0x75a   :  { %1882 = vmatprep.subr.bf16.mxu1 %v6351_v43 }
 0x75d   :  { %1883 = vmatpush1.bf16.msra.mxu1 %v6349_v44 }
 0x75e   :  { %1884 = vmatprep.subr.bf16.mxu1 %v6354_v45 }
 0x761   :  { %1885 = vmatpush1.bf16.msra.mxu1 %v6352_v46 }
 0x762   :  { %1886 = vmatprep.subr.bf16.mxu1 %v6357_v47 }
 0x765   :  { %1887 = vmatpush1.bf16.msra.mxu1 %v6355_v48 }
 0x766   :  { %1888 = vmatprep.subr.bf16.mxu1 %v6360_v49 }
 0x769   :  { %1889 = vmatpush1.bf16.msra.mxu1 %v6358_v50 }
 0x76a   :  { %1890 = vmatprep.subr.bf16.mxu1 %v6363_v51 }
 0x76c   :  { %v1747_v34 = vpop.f32.mrb[16].mxu0 }
 0x76d   :  { %v6091_v36 = vpop.f32.mrb[17].mxu0  ;;  %1891 = vmatpush1.bf16.msra.mxu1 %v6361_v52 }
 0x76e   :  { %v1750_v37 = vpop.f32.mrb[18].mxu0  ;;  %1892 = vmatprep.subr.bf16.mxu1 %v6366_v53  ;;  %v6389_v53 = vld [vmem:[#allocation7 + $0x170] sm:$0xff]  }
 0x76f   :  { %v6092_v38 = vpop.f32.mrb[19].mxu0 }
 0x771   :  { %1893 = vmatpush1.bf16.msra.mxu1 %v6364_v54  ;;  %v6390_v54 = vld [vmem:[#allocation7 + $0x178] sm:$0xff]  }
 0x772   :  { %6093 = vmatprep.subr.bf16.mxu1 %v7217_v0 }
 0x827   :  { %v1659_v56 = vpop.f32.mrb[20].mxu1 }
 0x828   :  { %v1748_v57 = vadd.f32 %v1747_v34, %v1659_v56  ;;  %v6071_v58 = vpop.f32.mrb[21].mxu1  ;;  %v5396_v56 = vld [vmem:[%s7620_s7 + $0x7] ss:$0 sm:$0xff] }
 0x829   :  { %v1662_v59 = vpop.f32.mrb[22].mxu1 }
 0x82a   :  { %v1759_v60 = vadd.f32 %v5374_v55, %v1748_v57  ;;  %v6072_v61 = vpop.f32.mrb[23].mxu1 }
 0x82c   :  { %v5375_v62 = vmul.f32 -1.442695, %v1759_v60 }
 0x82e   :  { %6907 = vpow2.f32 %v5375_v62 }
 0x838   :  { %v6908_v2 = vpop.eup %6907 }
 0x839   :  { %v1763_v4 = vadd.f32 1.0, %v6908_v2 }
 0x83b   :  { %6909 = vrcp.f32 %v1763_v4  ;;  %v6393_v4 = vld [vmem:[#allocation8 + $0x204] ss:$8 sps:$4 sm:$0xff]  }
 0x83c   :  { %2345 = vmatprep.subr.bf16.mxu0 %v6393_v4  ;;  %v6462_v4 = vld [vmem:[#allocation11 + $0xec] ss:$16 sps:$4 sm:$0xff]  }
 0x845   :  { %v6910_v5 = vpop.eup %6909 }
 0x846   :  { %v1766_v6 = vmul.f32 %v6910_v5, %v1759_v60  ;;  %v6391_v5 = vld [vmem:[#allocation8 + $0x200] ss:$8 sps:$4 sm:$0xff]  }
 0x848   :  { %v1786_v7 = vpack.c.bf16 %v1766_v6, %v1766_v6  ;;  %v6396_v6 = vld [vmem:[#allocation8 + $0x214] ss:$8 sps:$4 sm:$0xff]  }
 0x84a   :  { %1911 = vmatmul.mubr.bf16.vlgmr.msra.gmra.mrb[24].mxu1 %v1786_v7  ;;  %v6394_v7 = vld [vmem:[#allocation8 + $0x210] ss:$8 sps:$4 sm:$0xff]  }
 0x84b   :  { %6109 = vmatprep.mubr.msk.bf16.mxu1 %vm7218_vm0, %v7217_v0  ;;  %6094 = vmatpush3.bf16.msra.mxu1 %v6383_v24  ;;  %v6429_v24 = vld [vmem:[#allocation11 + $0x44] ss:$16 sps:$4 sm:$0xff]  }
 0x84c   :  { %6095 = vmatprep.subr.bf16.mxu1 %v7217_v0 }
 0x84f   :  { %6096 = vmatpush3.bf16.msra.mxu1 %v6384_v25  ;;  %v6427_v25 = vld [vmem:[#allocation11 + $0x40] ss:$16 sps:$4 sm:$0xff]  }
 0x850   :  { %6097 = vmatprep.subr.bf16.mxu1 %v7217_v0 }
 0x853   :  { %6098 = vmatpush3.bf16.msra.mxu1 %v6385_v26  ;;  %v6435_v26 = vld [vmem:[#allocation11 + $0x64] ss:$16 sps:$4 sm:$0xff]  }
 0x854   :  { %6099 = vmatprep.subr.bf16.mxu1 %v7217_v0 }
 0x857   :  { %6100 = vmatpush3.bf16.msra.mxu1 %v6386_v28  ;;  %v6433_v28 = vld [vmem:[#allocation11 + $0x60] ss:$16 sps:$4 sm:$0xff]  }
 0x858   :  { %6101 = vmatprep.subr.bf16.mxu1 %v7217_v0 }
 0x85b   :  { %6102 = vmatpush3.bf16.msra.mxu1 %v6387_v29  ;;  %v6441_v29 = vld [vmem:[#allocation11 + $0x84] ss:$16 sps:$4 sm:$0xff]  }
 0x85c   :  { %6103 = vmatprep.subr.bf16.mxu1 %v7217_v0 }
 0x85f   :  { %6104 = vmatpush3.bf16.msra.mxu1 %v6388_v30  ;;  %v6439_v30 = vld [vmem:[#allocation11 + $0x80] ss:$16 sps:$4 sm:$0xff]  }
 0x860   :  { %6105 = vmatprep.subr.bf16.mxu1 %v7217_v0 }
 0x863   :  { %6106 = vmatpush3.bf16.msra.mxu1 %v6389_v53  ;;  %v6432_v53 = vld [vmem:[#allocation11 + $0x4c] ss:$16 sps:$4 sm:$0xff]  }
 0x864   :  { %6107 = vmatprep.subr.bf16.mxu1 %v7217_v0 }
 0x867   :  { %6108 = vmatpush3.bf16.msra.mxu1 %v6390_v54  ;;  %v6430_v54 = vld [vmem:[#allocation11 + $0x48] ss:$16 sps:$4 sm:$0xff]  }
 0x868   :  { %2808 = vmatprep.subr.bf16.mxu1 %v6417_v20  ;;  %v6484_v20 = vld [vmem:[#allocation11 + $0x168] ss:$16 sps:$4 sm:$0xff]  }
 0x91d   :  { %v1912_v34 = vpop.f32.mrb[24].mxu1 }
 0x91e   :  { %v1913_v36 = vadd.f32 %v1912_v34, %v1791_v35  ;;  %v1914_v37 = vpop.f32.mrb[25].mxu1  ;;  %v6445_v35 = vld [vmem:[#allocation11 + $0xa0] ss:$16 sps:$4 sm:$0xff]  }
 0x91f   :  { %v1915_v38 = vadd.f32 %v1914_v37, %v1795_v33  ;;  %v1916_v39 = vpop.f32.mrb[26].mxu1  ;;  %v6453_v33 = vld [vmem:[#allocation11 + $0xc4] ss:$16 sps:$4 sm:$0xff]   ;;  %v6451_v34 = vld [vmem:[#allocation11 + $0xc0] ss:$16 sps:$4 sm:$0xff]  }
 0x920   :  { %v5393_v40 = vmul.f32 -1.442695, %v1913_v36  ;;  %v1917_v41 = vpop.f32.mrb[27].mxu1  ;;  %v6457_v37 = vld [vmem:[#allocation11 + $0xe0] ss:$16 sps:$4 sm:$0xff]  }
 0x921   :  { %v5394_v42 = vmul.f32 -1.442695, %v1915_v38 }
 0x922   :  { %6911 = vpow2.f32 %v5393_v40 }
 0x923   :  { %6913 = vpow2.f32 %v5394_v42 }
 0x92c   :  { %v6912_v43 = vpop.eup %6911 }
 0x92d   :  { %v6914_v44 = vpop.eup %6913  ;;  %v1925_v45 = vadd.f32 1.0, %v6912_v43 }
 0x92e   :  { %v1926_v46 = vadd.f32 1.0, %v6914_v44 }
 0x92f   :  { %6915 = vrcp.f32 %v1925_v45 }
 0x930   :  { %6917 = vrcp.f32 %v1926_v46 }
 0x939   :  { %v6916_v47 = vpop.eup %6915 }
 0x93a   :  { %v6918_v48 = vpop.eup %6917  ;;  %v1931_v49 = vmul.f32 %v6916_v47, %v1913_v36  ;;  %v6459_v36 = vld [vmem:[#allocation11 + $0xe4] ss:$16 sps:$4 sm:$0xff]  }
 0x93b   :  { %v1932_v50 = vmul.f32 %v6918_v48, %v1915_v38  ;;  %v5414_v38 = vld [vmem:[%s7620_s7 + $0x8] ss:$0 sm:$0xff] }
 0x93c   :  { %v1968_v52 = vpack.c.bf16 %v1931_v49, %v1931_v49  ;;  %v6418_v49 = vld [vmem:[#allocation11 + $0x8] ss:$16 sps:$4 sm:$0xff]  }
 0x93d   :  { %v1969_v51 = vpack.c.bf16 %v1932_v50, %v1932_v50 }
 0x93f   :  { %2104 = vmatprep.mubr.bf16.mxu0 %v1969_v51  ;;  %v6426_v51 = vld [vmem:[#allocation11 + $0x2c] ss:$16 sps:$4 sm:$0xff]  }
 0x940   :  { %2105 = vmatmul.mubr.bf16.vlgmr.msra.gmra.mrb[20].mxu0 %v1968_v52  ;;  %v6424_v52 = vld [vmem:[#allocation11 + $0x28] ss:$16 sps:$4 sm:$0xff]  }
 0x941   :  { %2377 = vmatprep.mubr.bf16.mxu0 %v7219_v27  ;;  %2346 = vmatpush1.bf16.msra.mxu0 %v6391_v5  ;;  %v6460_v5 = vld [vmem:[#allocation11 + $0xe8] ss:$16 sps:$4 sm:$0xff]  }
 0x942   :  { %2347 = vmatprep.subr.bf16.mxu0 %v6396_v6  ;;  %v6465_v6 = vld [vmem:[#allocation11 + $0x104] ss:$16 sps:$4 sm:$0xff]  }
 0x945   :  { %2348 = vmatpush1.bf16.msra.mxu0 %v6394_v7  ;;  %v6468_v7 = vld [vmem:[#allocation11 + $0x10c] ss:$16 sps:$4 sm:$0xff]  }
 0x946   :  { %2349 = vmatprep.subr.bf16.mxu0 %v6399_v8  ;;  %v6463_v8 = vld [vmem:[#allocation11 + $0x100] ss:$16 sps:$4 sm:$0xff]  }
 0x949   :  { %2350 = vmatpush1.bf16.msra.mxu0 %v6397_v9  ;;  %v6466_v9 = vld [vmem:[#allocation11 + $0x108] ss:$16 sps:$4 sm:$0xff]  }
 0x94a   :  { %2351 = vmatprep.subr.bf16.mxu0 %v6402_v10  ;;  %v6471_v10 = vld [vmem:[#allocation11 + $0x124] ss:$16 sps:$4 sm:$0xff]  }
 0x94d   :  { %2352 = vmatpush1.bf16.msra.mxu0 %v6400_v11  ;;  %v6474_v11 = vld [vmem:[#allocation11 + $0x12c] ss:$16 sps:$4 sm:$0xff]  }
 0xa13   :  { %v5916_v55 = vpop.f32.mrb[20].mxu0 }
 0xa14   :  { %v5917_v57 = vpop.f32.mrb[21].mxu0 }
 0xa15   :  { %v5918_v58 = vadd.f32 %v5917_v57, %v5916_v55  ;;  %v5919_v59 = vpop.f32.mrb[22].mxu0  ;;  %v6438_v55 = vld [vmem:[#allocation11 + $0x6c] ss:$16 sps:$4 sm:$0xff]  }
 0xa16   :  { %v5920_v60 = vpop.f32.mrb[23].mxu0  ;;  %v6444_v57 = vld [vmem:[#allocation11 + $0x8c] ss:$16 sps:$4 sm:$0xff]  }
 0xa17   :  { %v2107_v61 = vadd.f32 %v5918_v58, %v5396_v56  ;;  %v6436_v56 = vld [vmem:[#allocation11 + $0x68] ss:$16 sps:$4 sm:$0xff]   ;;  %v6450_v59 = vld [vmem:[#allocation11 + $0xac] ss:$16 sps:$4 sm:$0xff]  }
 0xa18   :  { %v6442_v58 = vld [vmem:[#allocation11 + $0x88] ss:$16 sps:$4 sm:$0xff]  }
 0xa19   :  { %v7521_v62 = vadd.f32 %v2107_v61, %v7493_v32  ;;  %v6405_v32 = vld [vmem:[#allocation8 + $0x244] ss:$8 sps:$4 sm:$0xff]   ;;  %v6448_v60 = vld [vmem:[#allocation11 + $0xa8] ss:$16 sps:$4 sm:$0xff]  }
 0xa1a   :  { %2353 = vmatprep.subr.bf16.mxu0 %v6405_v32  ;;  %v6456_v61 = vld [vmem:[#allocation11 + $0xcc] ss:$16 sps:$4 sm:$0xff]   ;;  %v6469_v32 = vld [vmem:[#allocation11 + $0x120] ss:$16 sps:$4 sm:$0xff]  }
 0xa1b   :  { %v2132_v2 = vpack.c.bf16 %v7521_v62, %v7521_v62  ;;  %2354 = vmatpush1.bf16.msra.mxu0 %v6403_v12  ;;  %v6472_v12 = vld [vmem:[#allocation11 + $0x128] ss:$16 sps:$4 sm:$0xff]  }
 0xa1c   :  { %2355 = vmatprep.subr.bf16.mxu0 %v6408_v13  ;;  %v6477_v13 = vld [vmem:[#allocation11 + $0x144] ss:$16 sps:$4 sm:$0xff]  }
 0xa1d   :  { %6110 = vmatmul.mubr.bf16.vlgmr.msra.gmra.mrb[28].mxu1 %v2132_v2  ;;  %v6454_v2 = vld [vmem:[#allocation11 + $0xc8] ss:$16 sps:$4 sm:$0xff]  }
 0xa1e   :  { %2809 = vmatpush1.bf16.msra.mxu1 %v6415_v19  ;;  %v6481_v19 = vld [vmem:[#allocation11 + $0x160] ss:$16 sps:$4 sm:$0xff]  }
 0xa1f   :  { %2356 = vmatpush1.bf16.msra.mxu0 %v6406_v14  ;;  %2810 = vmatprep.subr.bf16.mxu1 %v6423_v22  ;;  %v6480_v14 = vld [vmem:[#allocation11 + $0x14c] ss:$16 sps:$4 sm:$0xff]  }
 0xa20   :  { %2357 = vmatprep.subr.bf16.mxu0 %v6411_v15  ;;  %v6475_v15 = vld [vmem:[#allocation11 + $0x140] ss:$16 sps:$4 sm:$0xff]   ;;  %v6492_v22 = vld [vmem:[#allocation11 + $0x18c] ss:$16 sps:$4 sm:$0xff]  }
 0xa22   :  { %2811 = vmatpush1.bf16.msra.mxu1 %v6421_v23  ;;  %v6487_v23 = vld [vmem:[#allocation11 + $0x180] ss:$16 sps:$4 sm:$0xff]  }
 0xa23   :  { %2358 = vmatpush1.bf16.msra.mxu0 %v6409_v16  ;;  %2812 = vmatprep.subr.bf16.mxu1 %v6429_v24  ;;  %v6478_v16 = vld [vmem:[#allocation11 + $0x148] ss:$16 sps:$4 sm:$0xff]  }
 0xa24   :  { %2359 = vmatprep.subr.bf16.mxu0 %v6414_v17  ;;  %v6483_v17 = vld [vmem:[#allocation11 + $0x164] ss:$16 sps:$4 sm:$0xff]   ;;  %v6490_v24 = vld [vmem:[#allocation11 + $0x188] ss:$16 sps:$4 sm:$0xff]  }
 0xa26   :  { %2813 = vmatpush1.bf16.msra.mxu1 %v6427_v25  ;;  %v6495_v25 = vld [vmem:[#allocation11 + $0x1a4] ss:$16 sps:$4 sm:$0xff]  }
 0xa27   :  { %2360 = vmatpush1.bf16.msra.mxu0 %v6412_v18  ;;  %2814 = vmatprep.subr.bf16.mxu1 %v6435_v26  ;;  %v6486_v18 = vld [vmem:[#allocation11 + $0x16c] ss:$16 sps:$4 sm:$0xff]  }
 0xa28   :  { %2849 = vmatprep.subr.bf16.mxu0 %v6420_v21  ;;  %v6489_v21 = vld [vmem:[#allocation11 + $0x184] ss:$16 sps:$4 sm:$0xff]   ;;  %v6498_v26 = vld [vmem:[#allocation11 + $0x1ac] ss:$16 sps:$4 sm:$0xff]  }
 0xa2a   :  { %2815 = vmatpush1.bf16.msra.mxu1 %v6433_v28  ;;  %v6493_v28 = vld [vmem:[#allocation11 + $0x1a0] ss:$16 sps:$4 sm:$0xff]  }
 0xa2b   :  { %2816 = vmatprep.subr.bf16.mxu1 %v6441_v29  ;;  %v6496_v29 = vld [vmem:[#allocation11 + $0x1a8] ss:$16 sps:$4 sm:$0xff]  }
 0xa2e   :  { %2817 = vmatpush1.bf16.msra.mxu1 %v6439_v30  ;;  %v6501_v30 = vld [vmem:[#allocation11 + $0x1c4] ss:$16 sps:$4 sm:$0xff]  }
 0xa2f   :  { %2818 = vmatprep.subr.bf16.mxu1 %v6447_v31  ;;  %v6504_v31 = vld [vmem:[#allocation11 + $0x1cc] ss:$16 sps:$4 sm:$0xff]  }
 0xa32   :  { %2819 = vmatpush1.bf16.msra.mxu1 %v6445_v35  ;;  %v6499_v35 = vld [vmem:[#allocation11 + $0x1c0] ss:$16 sps:$4 sm:$0xff]  }
 0xa33   :  { %2820 = vmatprep.subr.bf16.mxu1 %v6453_v33  ;;  %v6502_v33 = vld [vmem:[#allocation11 + $0x1c8] ss:$16 sps:$4 sm:$0xff]  }
 0xa36   :  { %2821 = vmatpush1.bf16.msra.mxu1 %v6451_v34  ;;  %v6507_v34 = vld [vmem:[#allocation11 + $0x1e4] ss:$16 sps:$4 sm:$0xff]  }
 0xa37   :  { %2822 = vmatprep.subr.bf16.mxu1 %v6459_v36  ;;  %v6510_v36 = vld [vmem:[#allocation11 + $0x1ec] ss:$16 sps:$4 sm:$0xff]  }
 0xa3a   :  { %2823 = vmatpush1.bf16.msra.mxu1 %v6457_v37  ;;  %v6505_v37 = vld [vmem:[#allocation11 + $0x1e0] ss:$16 sps:$4 sm:$0xff]  }
 0xa3b   :  { %2824 = vmatprep.subr.bf16.mxu1 %v6465_v6  ;;  %v6517_v6 = vld [vmem:[#allocation13 + $0x20] ss:$8 sps:$4 sm:$0xff]  }
 0xa3e   :  { %2825 = vmatpush1.bf16.msra.mxu1 %v6463_v8  ;;  %v6520_v8 = vld [vmem:[#allocation13 + $0x30] ss:$8 sps:$4 sm:$0xff]  }
 0xa3f   :  { %2826 = vmatprep.subr.bf16.mxu1 %v6471_v10  ;;  %v6523_v10 = vld [vmem:[#allocation13 + $0x40] ss:$8 sps:$4 sm:$0xff]  }
 0xa42   :  { %2827 = vmatpush1.bf16.msra.mxu1 %v6469_v32  ;;  %v6526_v32 = vld [vmem:[#allocation13 + $0x50] ss:$8 sps:$4 sm:$0xff]  }
 0xa43   :  { %2828 = vmatprep.subr.bf16.mxu1 %v6477_v13  ;;  %v6529_v13 = vld [vmem:[#allocation13 + $0x60] ss:$8 sps:$4 sm:$0xff]  }
 0xa46   :  { %2829 = vmatpush1.bf16.msra.mxu1 %v6475_v15  ;;  %v6532_v15 = vld [vmem:[#allocation13 + $0x70] ss:$8 sps:$4 sm:$0xff]  }
 0xa47   :  { %2830 = vmatprep.subr.bf16.mxu1 %v6483_v17  ;;  %v6535_v17 = vld [vmem:[#allocation13 + $0x80] ss:$8 sps:$4 sm:$0xff]  }
 0xa4a   :  { %2831 = vmatpush1.bf16.msra.mxu1 %v6481_v19  ;;  %v6538_v19 = vld [vmem:[#allocation13 + $0x90] ss:$8 sps:$4 sm:$0xff]  }
 0xa4b   :  { %2832 = vmatprep.subr.bf16.mxu1 %v6489_v21  ;;  %v6541_v21 = vld [vmem:[#allocation13 + $0xa0] ss:$8 sps:$4 sm:$0xff]  }
 0xa4e   :  { %2833 = vmatpush1.bf16.msra.mxu1 %v6487_v23  ;;  %v6544_v23 = vld [vmem:[#allocation13 + $0xb0] ss:$8 sps:$4 sm:$0xff]  }
 0xa4f   :  { %2834 = vmatprep.subr.bf16.mxu1 %v6495_v25  ;;  %v6547_v25 = vld [vmem:[#allocation13 + $0xc0] ss:$8 sps:$4 sm:$0xff]  }
 0xa52   :  { %2835 = vmatpush1.bf16.msra.mxu1 %v6493_v28  ;;  %v6550_v28 = vld [vmem:[#allocation13 + $0xd0] ss:$8 sps:$4 sm:$0xff]  }
 0xa53   :  { %2836 = vmatprep.subr.bf16.mxu1 %v6501_v30  ;;  %v6553_v30 = vld [vmem:[#allocation13 + $0xe0] ss:$8 sps:$4 sm:$0xff]  }
 0xa56   :  { %2837 = vmatpush1.bf16.msra.mxu1 %v6499_v35  ;;  %v6556_v35 = vld [vmem:[#allocation13 + $0xf0] ss:$8 sps:$4 sm:$0xff]  }
 0xa57   :  { %2838 = vmatprep.subr.bf16.mxu1 %v6507_v34  ;;  %v2464_v34 = vld [vmem:[#allocation14] sm:$0xf] }
 0xa5a   :  { %2839 = vmatpush1.bf16.msra.mxu1 %v6505_v37  ;;  %v2471_v37 = vrot.slane %v2464_v34, %v7420_v1 }
 0xaf0   :  { %v2221_v39 = vpop.f32.mrb[28].mxu1 }
 0xaf1   :  { %v2222_v40 = vadd.f32 %v5414_v38, %v2221_v39  ;;  %v6111_v41 = vpop.f32.mrb[29].mxu1  ;;  %v6508_v38 = vld [vmem:[#allocation11 + $0x1e8] ss:$16 sps:$4 sm:$0xff]   ;;  %v6513_v39 = vld [vmem:[#allocation13 + $0x4] ss:$8 sps:$4 sm:$0xff]  }
 0xaf2   :  { %v2224_v42 = vpop.f32.mrb[30].mxu1  ;;  %3319 = vmatprep.subr.bf16.mxu1 %v6513_v39 }
 0xaf3   :  { %v5423_v43 = vmul.f32 -1.442695, %v2222_v40  ;;  %v6112_v44 = vpop.f32.mrb[31].mxu1 }
 0xaf5   :  { %6919 = vpow2.f32 %v5423_v43 }
 0xaff   :  { %v6920_v45 = vpop.eup %6919 }
 0xb00   :  { %v2230_v46 = vadd.f32 1.0, %v6920_v45 }
 0xb02   :  { %6921 = vrcp.f32 %v2230_v46 }
 0xb0c   :  { %v6922_v47 = vpop.eup %6921 }
 0xb0d   :  { %v2233_v48 = vmul.f32 %v6922_v47, %v2222_v40  ;;  %v5424_v40 = vld [vmem:[%s7621_s8 + $0x8] sm:$0x3] }
 0xb0e   :  { %v2258_v41 = vrot.slane %v5424_v40, %v7420_v1  ;;  %v2262_v42 = vrot.slane %v5424_v40, %v7426_v3 }
 0xb0f   :  { %v2253_v50 = vpack.c.bf16 %v2233_v48, %v2233_v48 }
 0xb11   :  { %2378 = vmatmul.mubr.bf16.vlgmr.msra.gmra.mrb[24].mxu0 %v2253_v50 }
 0xb12   :  { %2850 = vmatpush1.bf16.msra.mxu0 %v6418_v49 }
 0xb13   :  { %2851 = vmatprep.subr.bf16.mxu0 %v6426_v51 }
 0xb16   :  { %2852 = vmatpush1.bf16.msra.mxu0 %v6424_v52 }
 0xb17   :  { %2853 = vmatprep.subr.bf16.mxu0 %v6432_v53 }
 0xb1a   :  { %2854 = vmatpush1.bf16.msra.mxu0 %v6430_v54 }
 0xb1b   :  { %2855 = vmatprep.subr.bf16.mxu0 %v6438_v55 }
 0xb1e   :  { %2856 = vmatpush1.bf16.msra.mxu0 %v6436_v56 }
 0xb1f   :  { %2857 = vmatprep.subr.bf16.mxu0 %v6444_v57 }
 0xb22   :  { %2858 = vmatpush1.bf16.msra.mxu0 %v6442_v58 }
 0xb23   :  { %2859 = vmatprep.subr.bf16.mxu0 %v6450_v59 }
 0xb26   :  { %2860 = vmatpush1.bf16.msra.mxu0 %v6448_v60  ;;  %v6511_v60 = vld [vmem:[#allocation13] ss:$8 sps:$4 sm:$0xff]  }
 0xb27   :  { %2861 = vmatprep.subr.bf16.mxu0 %v6456_v61 }
 0xb2a   :  { %2862 = vmatpush1.bf16.msra.mxu0 %v6454_v2  ;;  %v6516_v2 = vld [vmem:[#allocation13 + $0x14] ss:$8 sps:$4 sm:$0xff]  }
 0xb2b   :  { %2863 = vmatprep.subr.bf16.mxu0 %v6462_v4  ;;  %v6514_v4 = vld [vmem:[#allocation13 + $0x10] ss:$8 sps:$4 sm:$0xff]  }
 0xb2e   :  { %2864 = vmatpush1.bf16.msra.mxu0 %v6460_v5  ;;  %v6519_v5 = vld [vmem:[#allocation13 + $0x24] ss:$8 sps:$4 sm:$0xff]  }
 0xb2f   :  { %2865 = vmatprep.subr.bf16.mxu0 %v6468_v7  ;;  %v6522_v7 = vld [vmem:[#allocation13 + $0x34] ss:$8 sps:$4 sm:$0xff]  }
 0xb32   :  { %2866 = vmatpush1.bf16.msra.mxu0 %v6466_v9  ;;  %v6525_v9 = vld [vmem:[#allocation13 + $0x44] ss:$8 sps:$4 sm:$0xff]  }
 0xb33   :  { %2867 = vmatprep.subr.bf16.mxu0 %v6474_v11  ;;  %v6528_v11 = vld [vmem:[#allocation13 + $0x54] ss:$8 sps:$4 sm:$0xff]  }
 0xb36   :  { %2868 = vmatpush1.bf16.msra.mxu0 %v6472_v12  ;;  %v6531_v12 = vld [vmem:[#allocation13 + $0x64] ss:$8 sps:$4 sm:$0xff]  }
 0xb37   :  { %2869 = vmatprep.subr.bf16.mxu0 %v6480_v14  ;;  %v6534_v14 = vld [vmem:[#allocation13 + $0x74] ss:$8 sps:$4 sm:$0xff]  }
 0xb3a   :  { %2870 = vmatpush1.bf16.msra.mxu0 %v6478_v16  ;;  %v6537_v16 = vld [vmem:[#allocation13 + $0x84] ss:$8 sps:$4 sm:$0xff]  }
 0xb3b   :  { %2871 = vmatprep.subr.bf16.mxu0 %v6486_v18  ;;  %v6540_v18 = vld [vmem:[#allocation13 + $0x94] ss:$8 sps:$4 sm:$0xff]  }
 0xb3e   :  { %2872 = vmatpush1.bf16.msra.mxu0 %v6484_v20  ;;  %v6543_v20 = vld [vmem:[#allocation13 + $0xa4] ss:$8 sps:$4 sm:$0xff]  }
 0xb3f   :  { %2873 = vmatprep.subr.bf16.mxu0 %v6492_v22  ;;  %v6546_v22 = vld [vmem:[#allocation13 + $0xb4] ss:$8 sps:$4 sm:$0xff]  }
 0xb42   :  { %2874 = vmatpush1.bf16.msra.mxu0 %v6490_v24  ;;  %v6549_v24 = vld [vmem:[#allocation13 + $0xc4] ss:$8 sps:$4 sm:$0xff]  }
 0xb43   :  { %2875 = vmatprep.subr.bf16.mxu0 %v6498_v26  ;;  %v6552_v26 = vld [vmem:[#allocation13 + $0xd4] ss:$8 sps:$4 sm:$0xff]  }
 0xb46   :  { %2876 = vmatpush1.bf16.msra.mxu0 %v6496_v29  ;;  %v6555_v29 = vld [vmem:[#allocation13 + $0xe4] ss:$8 sps:$4 sm:$0xff]  }
 0xb47   :  { %2877 = vmatprep.subr.bf16.mxu0 %v6504_v31  ;;  %v6558_v31 = vld [vmem:[#allocation13 + $0xf4] ss:$8 sps:$4 sm:$0xff]  }
 0xb4a   :  { %2878 = vmatpush1.bf16.msra.mxu0 %v6502_v33  ;;  %v6561_v33 = vld [vmem:[#allocation13 + $0x104] ss:$8 sps:$4 sm:$0xff]  }
 0xb4b   :  { %2879 = vmatprep.subr.bf16.mxu0 %v6510_v36  ;;  %v2482_v36 = vsub.s32 3, %v7417_v63 }
 0xb4d   :  { %v2483_v39 = vrot.slane %v2464_v34, %v2482_v36 }
 0xb4e   :  { %2880 = vmatpush1.bf16.msra.mxu0 %v6508_v38  ;;  %v2475_v38 = vrot.slane %v2464_v34, %v7426_v3 }
 0xbe4   :  { %v2379_v43 = vpop.f32.mrb[24].mxu0 }
 0xbe5   :  { %v2380_v44 = vadd.f32 %v2379_v43, %v2258_v41  ;;  %v2381_v45 = vpop.f32.mrb[25].mxu0 }
 0xbe6   :  { %v2382_v46 = vadd.f32 %v2381_v45, %v2262_v42  ;;  %v2383_v47 = vpop.f32.mrb[26].mxu0 }
 0xbe7   :  { %v5441_v48 = vmul.f32 -1.442695, %v2380_v44  ;;  %v2384_v49 = vpop.f32.mrb[27].mxu0 }
 0xbe8   :  { %v5442_v50 = vmul.f32 -1.442695, %v2382_v46 }
 0xbe9   :  { %6923 = vpow2.f32 %v5441_v48 }
 0xbea   :  { %6925 = vpow2.f32 %v5442_v50 }
 0xbf3   :  { %v6924_v51 = vpop.eup %6923 }
 0xbf4   :  { %v6926_v52 = vpop.eup %6925  ;;  %v2392_v53 = vadd.f32 1.0, %v6924_v51 }
 0xbf5   :  { %v2393_v54 = vadd.f32 1.0, %v6926_v52 }
 0xbf6   :  { %6927 = vrcp.f32 %v2392_v53 }
 0xbf7   :  { %6929 = vrcp.f32 %v2393_v54 }
 0xc00   :  { %v6928_v55 = vpop.eup %6927 }
 0xc01   :  { %v6930_v56 = vpop.eup %6929  ;;  %v2398_v57 = vmul.f32 %v6928_v55, %v2380_v44 }
 0xc02   :  { %v2399_v58 = vmul.f32 %v6930_v56, %v2382_v46 }
 0xc03   :  { %v2465_v61 = vpack.c.bf16 %v2398_v57, %v2398_v57 }
 0xc04   :  { %v2466_v59 = vpack.c.bf16 %v2399_v58, %v2399_v58 }
 0xc06   :  { %2840 = vmatprep.mubr.bf16.mxu1 %v2466_v59  ;;  %2881 = vmatprep.mubr.bf16.mxu0 %v2466_v59 }
 0xc07   :  { %2841 = vmatmul.mubr.bf16.vlgmr.msra.gmra.mrb[32].mxu1 %v2465_v61  ;;  %2882 = vmatmul.mubr.bf16.vlgmr.msra.gmra.mrb[28].mxu0 %v2465_v61 }
 0xc08   :  { %3320 = vmatpush1.bf16.msra.mxu1 %v6511_v60 }
 0xc09   :  { %3321 = vmatprep.subr.bf16.mxu1 %v6516_v2 }
 0xc0c   :  { %3322 = vmatpush1.bf16.msra.mxu1 %v6514_v4 }
 0xc0d   :  { %3323 = vmatprep.subr.bf16.mxu1 %v6519_v5 }
 0xc10   :  { %3324 = vmatpush1.bf16.msra.mxu1 %v6517_v6 }
 0xc11   :  { %3325 = vmatprep.subr.bf16.mxu1 %v6522_v7 }
 0xc14   :  { %3326 = vmatpush1.bf16.msra.mxu1 %v6520_v8  ;;  %v6559_v8 = vld [vmem:[#allocation13 + $0x100] ss:$8 sps:$4 sm:$0xff]  }
 0xc15   :  { %3327 = vmatprep.subr.bf16.mxu1 %v6525_v9 }
 0xc18   :  { %3328 = vmatpush1.bf16.msra.mxu1 %v6523_v10  ;;  %v6564_v10 = vld [vmem:[#allocation13 + $0x114] ss:$8 sps:$4 sm:$0xff]  }
 0xc19   :  { %3329 = vmatprep.subr.bf16.mxu1 %v6528_v11 }
 0xc1c   :  { %3330 = vmatpush1.bf16.msra.mxu1 %v6526_v32  ;;  %v6562_v32 = vld [vmem:[#allocation13 + $0x110] ss:$8 sps:$4 sm:$0xff]  }
 0xc1d   :  { %3331 = vmatprep.subr.bf16.mxu1 %v6531_v12  ;;  %v6567_v12 = vld [vmem:[#allocation13 + $0x124] ss:$8 sps:$4 sm:$0xff]  }
 0xc20   :  { %3332 = vmatpush1.bf16.msra.mxu1 %v6529_v13  ;;  %v6565_v13 = vld [vmem:[#allocation13 + $0x120] ss:$8 sps:$4 sm:$0xff]  }
 0xc21   :  { %3333 = vmatprep.subr.bf16.mxu1 %v6534_v14  ;;  %v6570_v14 = vld [vmem:[#allocation13 + $0x134] ss:$8 sps:$4 sm:$0xff]  }
 0xc24   :  { %3334 = vmatpush1.bf16.msra.mxu1 %v6532_v15  ;;  %v6568_v15 = vld [vmem:[#allocation13 + $0x130] ss:$8 sps:$4 sm:$0xff]  }
 0xc25   :  { %3335 = vmatprep.subr.bf16.mxu1 %v6537_v16  ;;  %v6573_v16 = vld [vmem:[#allocation13 + $0x144] ss:$8 sps:$4 sm:$0xff]  }
 0xc28   :  { %3336 = vmatpush1.bf16.msra.mxu1 %v6535_v17  ;;  %v2478_v17 = vsub.s32 2, %v7417_v63  ;;  %v6828_v63 = vld [vmem:[#allocation13 + $0x394] ss:$8 sps:$4 sm:$0xff]  }
 0xc29   :  { %3337 = vmatprep.subr.bf16.mxu1 %v6540_v18  ;;  %v6571_v18 = vld [vmem:[#allocation13 + $0x140] ss:$8 sps:$4 sm:$0xff]  }
 0xc2c   :  { %3338 = vmatpush1.bf16.msra.mxu1 %v6538_v19  ;;  %v6576_v19 = vld [vmem:[#allocation13 + $0x154] ss:$8 sps:$4 sm:$0xff]  }
 0xc2d   :  { %3339 = vmatprep.subr.bf16.mxu1 %v6543_v20  ;;  %v2479_v20 = vrot.slane %v2464_v34, %v2478_v17  ;;  %v6589_v34 = vld [vmem:[#allocation13 + $0x1a0] ss:$8 sps:$4 sm:$0xff]  }
 0xc30   :  { %3340 = vmatpush1.bf16.msra.mxu1 %v6541_v21  ;;  %v6574_v21 = vld [vmem:[#allocation13 + $0x150] ss:$8 sps:$4 sm:$0xff]  }
 0xc31   :  { %3341 = vmatprep.subr.bf16.mxu1 %v6546_v22  ;;  %v6579_v22 = vld [vmem:[#allocation13 + $0x164] ss:$8 sps:$4 sm:$0xff]  }
 0xc34   :  { %3342 = vmatpush1.bf16.msra.mxu1 %v6544_v23 }
 0xc35   :  { %3343 = vmatprep.subr.bf16.mxu1 %v6549_v24  ;;  %v6577_v24 = vld [vmem:[#allocation13 + $0x160] ss:$8 sps:$4 sm:$0xff]  }
 0xc38   :  { %3344 = vmatpush1.bf16.msra.mxu1 %v6547_v25  ;;  %v6582_v25 = vld [vmem:[#allocation13 + $0x174] ss:$8 sps:$4 sm:$0xff]  }
 0xc39   :  { %3345 = vmatprep.subr.bf16.mxu1 %v6552_v26 }
 0xc3c   :  { %3346 = vmatpush1.bf16.msra.mxu1 %v6550_v28  ;;  %v6580_v28 = vld [vmem:[#allocation13 + $0x170] ss:$8 sps:$4 sm:$0xff]  }
 0xc3d   :  { %3347 = vmatprep.subr.bf16.mxu1 %v6555_v29  ;;  %v6585_v29 = vld [vmem:[#allocation13 + $0x184] ss:$8 sps:$4 sm:$0xff]  }
 0xc40   :  { %3348 = vmatpush1.bf16.msra.mxu1 %v6553_v30  ;;  %v6583_v30 = vld [vmem:[#allocation13 + $0x180] ss:$8 sps:$4 sm:$0xff]  }
 0xc41   :  { %3349 = vmatprep.subr.bf16.mxu1 %v6558_v31  ;;  %v6588_v31 = vld [vmem:[#allocation13 + $0x194] ss:$8 sps:$4 sm:$0xff]  }
 0xc44   :  { %3350 = vmatpush1.bf16.msra.mxu1 %v6556_v35  ;;  %v6586_v35 = vld [vmem:[#allocation13 + $0x190] ss:$8 sps:$4 sm:$0xff]  }
 0xc45   :  { %3360 = vmatprep.subr.bf16.mxu1 %v6561_v33  ;;  %v6591_v33 = vld [vmem:[#allocation13 + $0x1a4] ss:$8 sps:$4 sm:$0xff]  }
 0xcda   :  { %v2842_v40 = vpop.f32.mrb[32].mxu1  ;;  %v2883_v41 = vpop.f32.mrb[28].mxu0 }
 0xcdb   :  { %v2843_v42 = vadd.f32 %v2842_v40, %v2471_v37  ;;  %v2844_v43 = vpop.f32.mrb[33].mxu1  ;;  %v2885_v44 = vpop.f32.mrb[29].mxu0  ;;  %v2884_v23 = vadd.f32 %v2883_v41, %v2479_v20  ;;  %v6592_v40 = vld [vmem:[#allocation13 + $0x1b0] ss:$8 sps:$4 sm:$0xff]   ;;  %v6597_v41 = vld [vmem:[#allocation13 + $0x1c4] ss:$8 sps:$4 sm:$0xff]  }
 0xcdc   :  { %v2845_v45 = vadd.f32 %v2844_v43, %v2475_v38  ;;  %v2886_v46 = vadd.f32 %v2885_v44, %v2483_v39  ;;  %v2846_v47 = vpop.f32.mrb[34].mxu1  ;;  %v2887_v48 = vpop.f32.mrb[30].mxu0  ;;  %v6594_v38 = vld [vmem:[#allocation13 + $0x1b4] ss:$8 sps:$4 sm:$0xff]   ;;  %v6598_v44 = vld [vmem:[#allocation13 + $0x1d0] ss:$8 sps:$4 sm:$0xff]  }
 0xcdd   :  { %v5507_v49 = vmul.f32 -1.442695, %v2843_v42  ;;  %v2847_v50 = vpop.f32.mrb[35].mxu1  ;;  %v2888_v51 = vpop.f32.mrb[31].mxu0  ;;  %v5509_v26 = vmul.f32 -1.442695, %v2884_v23 }
 0xcde   :  { %v5508_v52 = vmul.f32 -1.442695, %v2845_v45  ;;  %v5510_v53 = vmul.f32 -1.442695, %v2886_v46  ;;  %v6600_v43 = vld [vmem:[#allocation13 + $0x1d4] ss:$8 sps:$4 sm:$0xff]  }
 0xcdf   :  { %6931 = vpow2.f32 %v5507_v49  ;;  %v6606_v47 = vld [vmem:[#allocation13 + $0x1f4] ss:$8 sps:$4 sm:$0xff]   ;;  %v6604_v49 = vld [vmem:[#allocation13 + $0x1f0] ss:$8 sps:$4 sm:$0xff]  }
 0xce0   :  { %6933 = vpow2.f32 %v5508_v52  ;;  %v6607_v52 = vld [vmem:[#allocation10 + $0x240] sm:$0xff]  }
 0xce1   :  { %6935 = vpow2.f32 %v5510_v53  ;;  %v6608_v53 = vld [vmem:[#allocation10 + $0x200] sm:$0xff]   ;;  %5931 = vmatprep.subr.bf16.mxu0 %v6607_v52  ;;  %v6636_v52 = vld [vmem:[#allocation8 + $0x294] ss:$8 sps:$4 sm:$0xff]  }
 0xce2   :  { %5932 = vmatpush3.bf16.msra.mxu0 %v6608_v53  ;;  %v6634_v53 = vld [vmem:[#allocation8 + $0x290] ss:$8 sps:$4 sm:$0xff]  }
 0xce9   :  { %v6932_v54 = vpop.eup %6931 }
 0xcea   :  { %v2902_v55 = vadd.f32 1.0, %v6932_v54  ;;  %v6934_v56 = vpop.eup %6933  ;;  %v6609_v54 = vld [vmem:[#allocation10 + $0x248] sm:$0xff]  }
 0xceb   :  { %v6936_v57 = vpop.eup %6935  ;;  %v2903_v58 = vadd.f32 1.0, %v6934_v56  ;;  %5933 = vmatprep.subr.bf16.mxu0 %v6609_v54  ;;  %v6611_v56 = vld [vmem:[#allocation10 + $0x250] sm:$0xff]   ;;  %v6639_v54 = vld [vmem:[#allocation8 + $0x2a4] ss:$8 sps:$4 sm:$0xff]  }
 0xcec   :  { %6937 = vrcp.f32 %v2902_v55  ;;  %v2905_v59 = vadd.f32 1.0, %v6936_v57  ;;  %v6610_v55 = vld [vmem:[#allocation10 + $0x208] sm:$0xff]   ;;  %v6612_v57 = vld [vmem:[#allocation10 + $0x210] sm:$0xff]  }
 0xced   :  { %6939 = vrcp.f32 %v2903_v58  ;;  %5934 = vmatpush3.bf16.msra.mxu0 %v6610_v55  ;;  %v6613_v58 = vld [vmem:[#allocation10 + $0x258] sm:$0xff]   ;;  %v6637_v55 = vld [vmem:[#allocation8 + $0x2a0] ss:$8 sps:$4 sm:$0xff]  }
 0xcee   :  { %6941 = vrcp.f32 %v2905_v59  ;;  %5935 = vmatprep.subr.bf16.mxu0 %v6611_v56  ;;  %v6614_v59 = vld [vmem:[#allocation10 + $0x218] sm:$0xff]  }
 0xcef   :  { %6943 = vpow2.f32 %v5509_v26  ;;  %v6640_v56 = vld [vmem:[#allocation8 + $0x2b0] ss:$8 sps:$4 sm:$0xff]  }
 0xcf1   :  { %5936 = vmatpush3.bf16.msra.mxu0 %v6612_v57  ;;  %v6645_v57 = vld [vmem:[#allocation8 + $0x2c4] ss:$8 sps:$4 sm:$0xff]  }
 0xcf2   :  { %5937 = vmatprep.subr.bf16.mxu0 %v6613_v58  ;;  %v6643_v58 = vld [vmem:[#allocation8 + $0x2c0] ss:$8 sps:$4 sm:$0xff]  }
 0xcf5   :  { %5938 = vmatpush3.bf16.msra.mxu0 %v6614_v59  ;;  %v6646_v59 = vld [vmem:[#allocation8 + $0x2d0] ss:$8 sps:$4 sm:$0xff]  }
 0xcf6   :  { %v6938_v60 = vpop.eup %6937 }
 0xcf7   :  { %v6940_v61 = vpop.eup %6939  ;;  %v2914_v2 = vmul.f32 %v6938_v60, %v2843_v42  ;;  %v6595_v42 = vld [vmem:[#allocation13 + $0x1c0] ss:$8 sps:$4 sm:$0xff]  }
 0xcf8   :  { %v6942_v4 = vpop.eup %6941  ;;  %v2915_v5 = vmul.f32 %v6940_v61, %v2845_v45  ;;  %v6603_v45 = vld [vmem:[#allocation13 + $0x1e4] ss:$8 sps:$4 sm:$0xff]  }
 0xcf9   :  { %v2917_v6 = vmul.f32 %v6942_v4, %v2886_v46  ;;  %v2984_v9 = vpack.c.bf16 %v2914_v2, %v2914_v2  ;;  %v6944_v37 = vpop.eup %6943  ;;  %v6601_v46 = vld [vmem:[#allocation13 + $0x1e0] ss:$8 sps:$4 sm:$0xff]  }
 0xcfa   :  { %v2985_v7 = vpack.c.bf16 %v2915_v5, %v2915_v5  ;;  %v2904_v39 = vadd.f32 1.0, %v6944_v37  ;;  %v6615_v60 = vld [vmem:[#allocation10 + $0x260] sm:$0xff]   ;;  %v6617_v2 = vld [vmem:[#allocation10 + $0x268] sm:$0xff]   ;;  %v6619_v5 = vld [vmem:[#allocation10 + $0x270] sm:$0xff]  }
 0xcfb   :  { %v2987_v11 = vpack.c.bf16 %v2917_v6, %v2917_v6  ;;  %v6616_v61 = vld [vmem:[#allocation10 + $0x220] sm:$0xff]   ;;  %5939 = vmatprep.subr.bf16.mxu0 %v6615_v60  ;;  %v6618_v4 = vld [vmem:[#allocation10 + $0x228] sm:$0xff]   ;;  %v6620_v6 = vld [vmem:[#allocation10 + $0x230] sm:$0xff]  }
 0xcfc   :  { %3351 = vmatprep.mubr.bf16.mxu1 %v2985_v7  ;;  %6945 = vrcp.f32 %v2904_v39  ;;  %5940 = vmatpush3.bf16.msra.mxu0 %v6616_v61  ;;  %v6621_v7 = vld [vmem:[#allocation10 + $0x278] sm:$0xff]   ;;  %v6627_v37 = vld [vmem:[#allocation7 + $0x1a0] sm:$0xff]   ;;  %v6629_v39 = vld [vmem:[#allocation7 + $0x1b0] sm:$0xff]  }
 0xcfd   :  { %3352 = vmatmul.mubr.bf16.vlgmr.msra.gmra.mrb[36].mxu1 %v2984_v9  ;;  %5941 = vmatprep.subr.bf16.mxu0 %v6617_v2  ;;  %v5511_v9 = vld [vmem:[%s7621_s8 + $0xa] sm:$0x3]  ;;  %v6651_v60 = vld [vmem:[#allocation8 + $0x2e4] ss:$8 sps:$4 sm:$0xff]   ;;  %v6649_v61 = vld [vmem:[#allocation8 + $0x2e0] ss:$8 sps:$4 sm:$0xff]  }
 0xcfe   :  { %3361 = vmatpush1.bf16.msra.mxu1 %v6559_v8  ;;  %3392 = vmatprep.mubr.bf16.mxu1 %v2987_v11  ;;  %v6622_v8 = vld [vmem:[#allocation10 + $0x238] sm:$0xff]   ;;  %v2996_v11 = vrot.slane %v5511_v9, %v7426_v3 }
 0xcff   :  { %3362 = vmatprep.subr.bf16.mxu1 %v6564_v10  ;;  %v2992_v10 = vrot.slane %v5511_v9, %v7420_v1  ;;  %v6654_v2 = vld [vmem:[#allocation8 + $0x2f4] ss:$8 sps:$4 sm:$0xff]   ;;  %v6664_v9 = vld [vmem:[#allocation11 + $0x228] ss:$16 sps:$4 sm:$0xff]  }
 0xd00   :  { %5942 = vmatpush3.bf16.msra.mxu0 %v6618_v4  ;;  %v6652_v4 = vld [vmem:[#allocation8 + $0x2f0] ss:$8 sps:$4 sm:$0xff]  }
 0xd01   :  { %5943 = vmatprep.subr.bf16.mxu0 %v6619_v5  ;;  %v6657_v5 = vld [vmem:[#allocation11 + $0x204] ss:$16 sps:$4 sm:$0xff]  }
 0xd02   :  { %3363 = vmatpush1.bf16.msra.mxu1 %v6562_v32 }
 0xd03   :  { %3364 = vmatprep.subr.bf16.mxu1 %v6567_v12 }
 0xd04   :  { %5944 = vmatpush3.bf16.msra.mxu0 %v6620_v6  ;;  %v6658_v6 = vld [vmem:[#allocation11 + $0x208] ss:$16 sps:$4 sm:$0xff]  }
 0xd05   :  { %5945 = vmatprep.subr.bf16.mxu0 %v6621_v7  ;;  %v6660_v7 = vld [vmem:[#allocation11 + $0x20c] ss:$16 sps:$4 sm:$0xff]  }
 0xd06   :  { %3365 = vmatpush1.bf16.msra.mxu1 %v6565_v13  ;;  %v6946_v48 = vpop.eup %6945 }
 0xd07   :  { %3366 = vmatprep.subr.bf16.mxu1 %v6570_v14  ;;  %v2916_v50 = vmul.f32 %v6946_v48, %v2884_v23 }
 0xd08   :  { %5946 = vmatpush3.bf16.msra.mxu0 %v6622_v8  ;;  %v6666_v8 = vld [vmem:[#allocation11 + $0x22c] ss:$16 sps:$4 sm:$0xff]  }
 0xd09   :  { %v2986_v51 = vpack.c.bf16 %v2916_v50, %v2916_v50  ;;  %6113 = vmatprep.subr.bf16.mxu0 %v7217_v0  ;;  %v6633_v50 = vld [vmem:[#allocation8 + $0x284] ss:$8 sps:$4 sm:$0xff]  }
 0xd0a   :  { %3367 = vmatpush1.bf16.msra.mxu1 %v6568_v15 }
 0xd0b   :  { %3368 = vmatprep.subr.bf16.mxu1 %v6573_v16 }
 0xd0e   :  { %3369 = vmatpush1.bf16.msra.mxu1 %v6571_v18 }
 0xd0f   :  { %3370 = vmatprep.subr.bf16.mxu1 %v6576_v19 }
 0xd12   :  { %3371 = vmatpush1.bf16.msra.mxu1 %v6574_v21 }
 0xd13   :  { %3372 = vmatprep.subr.bf16.mxu1 %v6579_v22 }
 0xd16   :  { %3373 = vmatpush1.bf16.msra.mxu1 %v6577_v24 }
 0xd17   :  { %3374 = vmatprep.subr.bf16.mxu1 %v6582_v25 }
 0xd1a   :  { %3375 = vmatpush1.bf16.msra.mxu1 %v6580_v28 }
 0xd1b   :  { %3376 = vmatprep.subr.bf16.mxu1 %v6585_v29 }
 0xd1e   :  { %3377 = vmatpush1.bf16.msra.mxu1 %v6583_v30  ;;  %v6623_v30 = vld [vmem:[#allocation7 + $0x180] sm:$0xff]  }
 0xd1f   :  { %3378 = vmatprep.subr.bf16.mxu1 %v6588_v31 }
 0xd22   :  { %3379 = vmatpush1.bf16.msra.mxu1 %v6586_v35  ;;  %v6624_v35 = vld [vmem:[#allocation7 + $0x188] sm:$0xff]  }
 0xd23   :  { %3380 = vmatprep.subr.bf16.mxu1 %v6591_v33  ;;  %v6625_v33 = vld [vmem:[#allocation7 + $0x190] sm:$0xff]  }
 0xd26   :  { %3381 = vmatpush1.bf16.msra.mxu1 %v6589_v34  ;;  %v6626_v34 = vld [vmem:[#allocation7 + $0x198] sm:$0xff]  }
 0xd27   :  { %3382 = vmatprep.subr.bf16.mxu1 %v6594_v38  ;;  %v6628_v38 = vld [vmem:[#allocation7 + $0x1a8] sm:$0xff]  }
 0xd2a   :  { %3383 = vmatpush1.bf16.msra.mxu1 %v6592_v40  ;;  %v6630_v40 = vld [vmem:[#allocation7 + $0x1b8] sm:$0xff]  }
 0xd2b   :  { %3384 = vmatprep.subr.bf16.mxu1 %v6597_v41 }
 0xd2e   :  { %3385 = vmatpush1.bf16.msra.mxu1 %v6595_v42  ;;  %v5579_v42 = vld [vmem:[%s7620_s7 + $0x9] ss:$0 sm:$0xff] }
 0xd2f   :  { %3386 = vmatprep.subr.bf16.mxu1 %v6600_v43 }
 0xd32   :  { %3387 = vmatpush1.bf16.msra.mxu1 %v6598_v44 }
 0xd33   :  { %3388 = vmatprep.subr.bf16.mxu1 %v6603_v45 }
 0xd36   :  { %3389 = vmatpush1.bf16.msra.mxu1 %v6601_v46 }
 0xd37   :  { %3390 = vmatprep.subr.bf16.mxu1 %v6606_v47 }
 0xd3a   :  { %3391 = vmatpush1.bf16.msra.mxu1 %v6604_v49 }
 0xd3b   :  { %4333 = vmatprep.subr.bf16.mxu1 %v6660_v7  ;;  %v6724_v7 = vld [vmem:[#allocation11 + $0x368] ss:$16 sps:$4 sm:$0xff]  }
 0xd3d   :  { %3393 = vmatmul.mubr.bf16.vlgmr.msra.gmra.mrb[36].mxu1 %v2986_v51  ;;  %v6631_v51 = vld [vmem:[#allocation8 + $0x280] ss:$8 sps:$4 sm:$0xff]  }
 0xd3e   :  { %4334 = vmatpush1.bf16.msra.mxu1 %v6658_v6  ;;  %v6721_v6 = vld [vmem:[#allocation11 + $0x360] ss:$16 sps:$4 sm:$0xff]  }
 0xd3f   :  { %4335 = vmatprep.subr.bf16.mxu1 %v6666_v8  ;;  %v6729_v8 = vld [vmem:[#allocation11 + $0x384] ss:$16 sps:$4 sm:$0xff]  }
 0xd42   :  { %4336 = vmatpush1.bf16.msra.mxu1 %v6664_v9  ;;  %v6732_v9 = vld [vmem:[#allocation11 + $0x38c] ss:$16 sps:$4 sm:$0xff]  }
 0xe10   :  { %v3394_v32 = vpop.f32.mrb[36].mxu1 }
 0xe11   :  { %v6153_v12 = vadd.f32 %v3394_v32, %v2992_v10  ;;  %v3396_v13 = vpop.f32.mrb[37].mxu1  ;;  %v6672_v10 = vld [vmem:[#allocation11 + $0x24c] ss:$16 sps:$4 sm:$0xff]  }
 0xe12   :  { %v6154_v14 = vadd.f32 %v3396_v13, %v2996_v11  ;;  %v3398_v15 = vpop.f32.mrb[38].mxu1  ;;  %v6670_v11 = vld [vmem:[#allocation11 + $0x248] ss:$16 sps:$4 sm:$0xff]   ;;  %4337 = vmatprep.subr.bf16.mxu1 %v6672_v10  ;;  %v6678_v32 = vld [vmem:[#allocation11 + $0x26c] ss:$16 sps:$4 sm:$0xff]  }
 0xe13   :  { %v5576_v16 = vmul.f32 -1.442695, %v6153_v12  ;;  %v3399_v18 = vpop.f32.mrb[39].mxu1  ;;  %4338 = vmatpush1.bf16.msra.mxu1 %v6670_v11  ;;  %v6684_v13 = vld [vmem:[#allocation11 + $0x28c] ss:$16 sps:$4 sm:$0xff]  }
 0xe14   :  { %v5577_v19 = vmul.f32 -1.442695, %v6154_v14  ;;  %4339 = vmatprep.subr.bf16.mxu1 %v6678_v32  ;;  %v6690_v15 = vld [vmem:[#allocation11 + $0x2ac] ss:$16 sps:$4 sm:$0xff]   ;;  %v6727_v10 = vld [vmem:[#allocation11 + $0x380] ss:$16 sps:$4 sm:$0xff]  }
 0xe15   :  { %6947 = vpow2.f32 %v5576_v16  ;;  %v6688_v16 = vld [vmem:[#allocation11 + $0x2a8] ss:$16 sps:$4 sm:$0xff]   ;;  %v6696_v18 = vld [vmem:[#allocation11 + $0x2cc] ss:$16 sps:$4 sm:$0xff]   ;;  %v6735_v32 = vld [vmem:[#allocation11 + $0x3a4] ss:$16 sps:$4 sm:$0xff]  }
 0xe16   :  { %6949 = vpow2.f32 %v5577_v19  ;;  %v6694_v19 = vld [vmem:[#allocation11 + $0x2c8] ss:$16 sps:$4 sm:$0xff]  }
 0xe17   :  { %v6730_v11 = vld [vmem:[#allocation11 + $0x388] ss:$16 sps:$4 sm:$0xff]  }
 0xe1f   :  { %v6948_v20 = vpop.eup %6947 }
 0xe20   :  { %v6950_v21 = vpop.eup %6949  ;;  %v3407_v22 = vadd.f32 1.0, %v6948_v20  ;;  %v6702_v20 = vld [vmem:[#allocation11 + $0x2ec] ss:$16 sps:$4 sm:$0xff]  }
 0xe21   :  { %v3408_v23 = vadd.f32 1.0, %v6950_v21  ;;  %v6700_v21 = vld [vmem:[#allocation11 + $0x2e8] ss:$16 sps:$4 sm:$0xff]  }
 0xe22   :  { %6951 = vrcp.f32 %v3407_v22  ;;  %v5597_v22 = vld [vmem:[%s7620_s7 + $0xa] ss:$0 sm:$0xff] }
 0xe23   :  { %6953 = vrcp.f32 %v3408_v23 }
 0xe2c   :  { %v6952_v24 = vpop.eup %6951 }
 0xe2d   :  { %v6954_v25 = vpop.eup %6953  ;;  %v3413_v26 = vmul.f32 %v6952_v24, %v6153_v12  ;;  %v6676_v12 = vld [vmem:[#allocation11 + $0x268] ss:$16 sps:$4 sm:$0xff]  }
 0xe2e   :  { %v3414_v28 = vmul.f32 %v6954_v25, %v6154_v14  ;;  %4340 = vmatpush1.bf16.msra.mxu1 %v6676_v12  ;;  %v6682_v14 = vld [vmem:[#allocation11 + $0x288] ss:$16 sps:$4 sm:$0xff]   ;;  %v6738_v12 = vld [vmem:[#allocation11 + $0x3ac] ss:$16 sps:$4 sm:$0xff]  }
 0xe2f   :  { %v3450_v31 = vpack.c.bf16 %v3413_v26, %v3413_v26  ;;  %4341 = vmatprep.subr.bf16.mxu1 %v6684_v13  ;;  %v6733_v13 = vld [vmem:[#allocation11 + $0x3a0] ss:$16 sps:$4 sm:$0xff]  }
 0xe30   :  { %v3451_v29 = vpack.c.bf16 %v3414_v28, %v3414_v28 }
 0xe32   :  { %3586 = vmatprep.mubr.bf16.mxu0 %v3451_v29  ;;  %4342 = vmatpush1.bf16.msra.mxu1 %v6682_v14  ;;  %v6736_v14 = vld [vmem:[#allocation11 + $0x3a8] ss:$16 sps:$4 sm:$0xff]  }
 0xe33   :  { %3587 = vmatmul.mubr.bf16.vlgmr.msra.gmra.mrb[32].mxu0 %v3450_v31  ;;  %4343 = vmatprep.subr.bf16.mxu1 %v6690_v15  ;;  %v6741_v15 = vld [vmem:[#allocation11 + $0x3c4] ss:$16 sps:$4 sm:$0xff]  }
 0xe34   :  { %6114 = vmatpush3.bf16.msra.mxu0 %v6623_v30  ;;  %6129 = vmatprep.mubr.msk.bf16.mxu0 %vm7218_vm0, %v7217_v0 }
 0xe35   :  { %6115 = vmatprep.subr.bf16.mxu0 %v7217_v0 }
 0xe36   :  { %4344 = vmatpush1.bf16.msra.mxu1 %v6688_v16  ;;  %v6744_v16 = vld [vmem:[#allocation11 + $0x3cc] ss:$16 sps:$4 sm:$0xff]  }
 0xe37   :  { %4345 = vmatprep.subr.bf16.mxu1 %v6696_v18  ;;  %v6739_v18 = vld [vmem:[#allocation11 + $0x3c0] ss:$16 sps:$4 sm:$0xff]  }
 0xe38   :  { %6116 = vmatpush3.bf16.msra.mxu0 %v6624_v35 }
 0xe39   :  { %6117 = vmatprep.subr.bf16.mxu0 %v7217_v0 }
 0xe3a   :  { %4346 = vmatpush1.bf16.msra.mxu1 %v6694_v19  ;;  %v6742_v19 = vld [vmem:[#allocation11 + $0x3c8] ss:$16 sps:$4 sm:$0xff]  }
 0xe3b   :  { %4347 = vmatprep.subr.bf16.mxu1 %v6702_v20  ;;  %v6747_v20 = vld [vmem:[#allocation11 + $0x3e4] ss:$16 sps:$4 sm:$0xff]  }
 0xe3c   :  { %6118 = vmatpush3.bf16.msra.mxu0 %v6625_v33 }
 0xe3d   :  { %6119 = vmatprep.subr.bf16.mxu0 %v7217_v0 }
 0xe3e   :  { %4348 = vmatpush1.bf16.msra.mxu1 %v6700_v21  ;;  %v6750_v21 = vld [vmem:[#allocation11 + $0x3ec] ss:$16 sps:$4 sm:$0xff]  }
 0xe40   :  { %6120 = vmatpush3.bf16.msra.mxu0 %v6626_v34  ;;  %v6655_v34 = vld [vmem:[#allocation11 + $0x200] ss:$16 sps:$4 sm:$0xff]  }
 0xe41   :  { %6121 = vmatprep.subr.bf16.mxu0 %v7217_v0 }
 0xe44   :  { %6122 = vmatpush3.bf16.msra.mxu0 %v6627_v37 }
 0xe45   :  { %6123 = vmatprep.subr.bf16.mxu0 %v7217_v0 }
 0xe48   :  { %6124 = vmatpush3.bf16.msra.mxu0 %v6628_v38  ;;  %v6663_v38 = vld [vmem:[#allocation11 + $0x224] ss:$16 sps:$4 sm:$0xff]  }
 0xe49   :  { %6125 = vmatprep.subr.bf16.mxu0 %v7217_v0 }
 0xe4c   :  { %6126 = vmatpush3.bf16.msra.mxu0 %v6629_v39  ;;  %v6661_v39 = vld [vmem:[#allocation11 + $0x220] ss:$16 sps:$4 sm:$0xff]  }
 0xe4d   :  { %6127 = vmatprep.subr.bf16.mxu0 %v7217_v0 }
 0xe50   :  { %6128 = vmatpush3.bf16.msra.mxu0 %v6630_v40  ;;  %v6669_v40 = vld [vmem:[#allocation11 + $0x244] ss:$16 sps:$4 sm:$0xff]  }
 0xe51   :  { %3827 = vmatprep.subr.bf16.mxu0 %v6633_v50  ;;  %v6691_v50 = vld [vmem:[#allocation11 + $0x2c0] ss:$16 sps:$4 sm:$0xff]  }
 0xf06   :  { %v5947_v41 = vpop.f32.mrb[32].mxu0 }
 0xf07   :  { %v5948_v43 = vpop.f32.mrb[33].mxu0 }
 0xf08   :  { %v5949_v44 = vadd.f32 %v5948_v43, %v5947_v41  ;;  %v5950_v45 = vpop.f32.mrb[34].mxu0  ;;  %v6667_v41 = vld [vmem:[#allocation11 + $0x240] ss:$16 sps:$4 sm:$0xff]  }
 0xf09   :  { %v5951_v46 = vpop.f32.mrb[35].mxu0  ;;  %v6673_v43 = vld [vmem:[#allocation11 + $0x260] ss:$16 sps:$4 sm:$0xff]  }
 0xf0a   :  { %v3589_v47 = vadd.f32 %v5949_v44, %v5579_v42  ;;  %v6675_v42 = vld [vmem:[#allocation11 + $0x264] ss:$16 sps:$4 sm:$0xff]   ;;  %v6679_v45 = vld [vmem:[#allocation11 + $0x280] ss:$16 sps:$4 sm:$0xff]  }
 0xf0b   :  { %v6681_v44 = vld [vmem:[#allocation11 + $0x284] ss:$16 sps:$4 sm:$0xff]  }
 0xf0c   :  { %v7560_v48 = vadd.f32 %v3589_v47, %v7521_v62  ;;  %v6642_v62 = vld [vmem:[#allocation8 + $0x2b4] ss:$8 sps:$4 sm:$0xff]   ;;  %v6685_v47 = vld [vmem:[#allocation11 + $0x2a0] ss:$16 sps:$4 sm:$0xff]  }
 0xf0d   :  { %v6687_v46 = vld [vmem:[#allocation11 + $0x2a4] ss:$16 sps:$4 sm:$0xff]  }
 0xf0e   :  { %v3614_v49 = vpack.c.bf16 %v7560_v48, %v7560_v48 }
 0xf10   :  { %6130 = vmatmul.mubr.bf16.vlgmr.msra.gmra.mrb[36].mxu0 %v3614_v49  ;;  %v6693_v49 = vld [vmem:[#allocation11 + $0x2c4] ss:$16 sps:$4 sm:$0xff]  }
 0xf11   :  { %3859 = vmatprep.mubr.bf16.mxu0 %v7219_v27  ;;  %3828 = vmatpush1.bf16.msra.mxu0 %v6631_v51  ;;  %v6648_v27 = vld [vmem:[#allocation8 + $0x2d4] ss:$8 sps:$4 sm:$0xff]  }
 0xf12   :  { %3829 = vmatprep.subr.bf16.mxu0 %v6636_v52  ;;  %v6699_v51 = vld [vmem:[#allocation11 + $0x2e4] ss:$16 sps:$4 sm:$0xff]   ;;  %v6697_v52 = vld [vmem:[#allocation11 + $0x2e0] ss:$16 sps:$4 sm:$0xff]  }
 0xf15   :  { %3830 = vmatpush1.bf16.msra.mxu0 %v6634_v53  ;;  %v6705_v53 = vld [vmem:[#allocation11 + $0x304] ss:$16 sps:$4 sm:$0xff]  }
 0xf16   :  { %3831 = vmatprep.subr.bf16.mxu0 %v6639_v54  ;;  %v6708_v54 = vld [vmem:[#allocation11 + $0x30c] ss:$16 sps:$4 sm:$0xff]  }
 0xf17   :  { %4349 = vmatprep.subr.bf16.mxu1 %v6708_v54  ;;  %v6757_v54 = vld [vmem:[#allocation13 + $0x220] ss:$8 sps:$4 sm:$0xff]  }
 0xf19   :  { %3832 = vmatpush1.bf16.msra.mxu0 %v6637_v55  ;;  %v6703_v55 = vld [vmem:[#allocation11 + $0x300] ss:$16 sps:$4 sm:$0xff]  }
 0xf1a   :  { %3833 = vmatprep.subr.bf16.mxu0 %v6642_v62  ;;  %v6706_v62 = vld [vmem:[#allocation11 + $0x308] ss:$16 sps:$4 sm:$0xff]  }
 0xf1b   :  { %4350 = vmatpush1.bf16.msra.mxu1 %v6706_v62  ;;  %v6760_v62 = vld [vmem:[#allocation13 + $0x230] ss:$8 sps:$4 sm:$0xff]  }
 0xf1d   :  { %3834 = vmatpush1.bf16.msra.mxu0 %v6640_v56  ;;  %v6711_v56 = vld [vmem:[#allocation11 + $0x324] ss:$16 sps:$4 sm:$0xff]  }
 0xf1e   :  { %3835 = vmatprep.subr.bf16.mxu0 %v6645_v57  ;;  %v6714_v57 = vld [vmem:[#allocation11 + $0x32c] ss:$16 sps:$4 sm:$0xff]  }
 0xf1f   :  { %4351 = vmatprep.subr.bf16.mxu1 %v6714_v57  ;;  %v6763_v57 = vld [vmem:[#allocation13 + $0x240] ss:$8 sps:$4 sm:$0xff]  }
 0xf21   :  { %3836 = vmatpush1.bf16.msra.mxu0 %v6643_v58  ;;  %v6709_v58 = vld [vmem:[#allocation11 + $0x320] ss:$16 sps:$4 sm:$0xff]  }
 0xf22   :  { %3837 = vmatprep.subr.bf16.mxu0 %v6648_v27  ;;  %v6712_v27 = vld [vmem:[#allocation11 + $0x328] ss:$16 sps:$4 sm:$0xff]  }
 0xf23   :  { %4352 = vmatpush1.bf16.msra.mxu1 %v6712_v27  ;;  %v6766_v27 = vld [vmem:[#allocation13 + $0x250] ss:$8 sps:$4 sm:$0xff]  }
 0xf25   :  { %3838 = vmatpush1.bf16.msra.mxu0 %v6646_v59  ;;  %v6717_v59 = vld [vmem:[#allocation11 + $0x344] ss:$16 sps:$4 sm:$0xff]  }
 0xf26   :  { %3839 = vmatprep.subr.bf16.mxu0 %v6651_v60  ;;  %v6720_v60 = vld [vmem:[#allocation11 + $0x34c] ss:$16 sps:$4 sm:$0xff]  }
 0xf27   :  { %4353 = vmatprep.subr.bf16.mxu1 %v6720_v60  ;;  %v6769_v60 = vld [vmem:[#allocation13 + $0x260] ss:$8 sps:$4 sm:$0xff]  }
 0xf29   :  { %3840 = vmatpush1.bf16.msra.mxu0 %v6649_v61  ;;  %v6715_v61 = vld [vmem:[#allocation11 + $0x340] ss:$16 sps:$4 sm:$0xff]  }
 0xf2a   :  { %3841 = vmatprep.subr.bf16.mxu0 %v6654_v2  ;;  %v6718_v2 = vld [vmem:[#allocation11 + $0x348] ss:$16 sps:$4 sm:$0xff]  }
 0xf2b   :  { %4354 = vmatpush1.bf16.msra.mxu1 %v6718_v2  ;;  %v6772_v2 = vld [vmem:[#allocation13 + $0x270] ss:$8 sps:$4 sm:$0xff]  }
 0xf2d   :  { %3842 = vmatpush1.bf16.msra.mxu0 %v6652_v4  ;;  %v6723_v4 = vld [vmem:[#allocation11 + $0x364] ss:$16 sps:$4 sm:$0xff]  }
 0xf2e   :  { %4292 = vmatprep.subr.bf16.mxu0 %v6657_v5  ;;  %v6726_v5 = vld [vmem:[#allocation11 + $0x36c] ss:$16 sps:$4 sm:$0xff]  }
 0xf2f   :  { %4355 = vmatprep.subr.bf16.mxu1 %v6726_v5  ;;  %v6775_v5 = vld [vmem:[#allocation13 + $0x280] ss:$8 sps:$4 sm:$0xff]  }
 0xf30   :  { %4356 = vmatpush1.bf16.msra.mxu1 %v6724_v7  ;;  %v6778_v7 = vld [vmem:[#allocation13 + $0x290] ss:$8 sps:$4 sm:$0xff]  }
 0xf31   :  { %4357 = vmatprep.subr.bf16.mxu1 %v6732_v9  ;;  %v6781_v9 = vld [vmem:[#allocation13 + $0x2a0] ss:$8 sps:$4 sm:$0xff]  }
 0xf34   :  { %4358 = vmatpush1.bf16.msra.mxu1 %v6730_v11  ;;  %v6784_v11 = vld [vmem:[#allocation13 + $0x2b0] ss:$8 sps:$4 sm:$0xff]  }
 0xf35   :  { %4359 = vmatprep.subr.bf16.mxu1 %v6738_v12  ;;  %v6787_v12 = vld [vmem:[#allocation13 + $0x2c0] ss:$8 sps:$4 sm:$0xff]  }
 0xf38   :  { %4360 = vmatpush1.bf16.msra.mxu1 %v6736_v14  ;;  %v6790_v14 = vld [vmem:[#allocation13 + $0x2d0] ss:$8 sps:$4 sm:$0xff]  }
 0xf39   :  { %4361 = vmatprep.subr.bf16.mxu1 %v6744_v16  ;;  %v6793_v16 = vld [vmem:[#allocation13 + $0x2e0] ss:$8 sps:$4 sm:$0xff]  }
 0xf3c   :  { %4362 = vmatpush1.bf16.msra.mxu1 %v6742_v19  ;;  %v6796_v19 = vld [vmem:[#allocation13 + $0x2f0] ss:$8 sps:$4 sm:$0xff]  }
 0xf3d   :  { %4363 = vmatprep.subr.bf16.mxu1 %v6750_v21  ;;  %v3948_v21 = vld [vmem:[#allocation14 + $0x4] sm:$0xf] }
 0xfe3   :  { %v3703_v23 = vpop.f32.mrb[36].mxu0 }
 0xfe4   :  { %v3704_v24 = vadd.f32 %v5597_v22, %v3703_v23  ;;  %v6131_v25 = vpop.f32.mrb[37].mxu0  ;;  %v6745_v22 = vld [vmem:[#allocation11 + $0x3e0] ss:$16 sps:$4 sm:$0xff]   ;;  %v6748_v23 = vld [vmem:[#allocation11 + $0x3e8] ss:$16 sps:$4 sm:$0xff]  }
 0xfe5   :  { %v3706_v26 = vpop.f32.mrb[38].mxu0  ;;  %4364 = vmatpush1.bf16.msra.mxu1 %v6748_v23  ;;  %v5607_v25 = vld [vmem:[%s7621_s8 + $0xc] sm:$0x3]  ;;  %v3959_v23 = vrot.slane %v3948_v21, %v7426_v3 }
 0xfe6   :  { %v5606_v28 = vmul.f32 -1.442695, %v3704_v24  ;;  %v6132_v29 = vpop.f32.mrb[39].mxu0  ;;  %v3740_v26 = vrot.slane %v5607_v25, %v7420_v1 }
 0xfe8   :  { %6955 = vpow2.f32 %v5606_v28  ;;  %v3744_v28 = vrot.slane %v5607_v25, %v7426_v3 }
 0xff2   :  { %v6956_v30 = vpop.eup %6955 }
 0xff3   :  { %v3712_v31 = vadd.f32 1.0, %v6956_v30 }
 0xff5   :  { %6957 = vrcp.f32 %v3712_v31 }
 0xfff   :  { %v6958_v35 = vpop.eup %6957 }
0x1000   :  { %v3715_v33 = vmul.f32 %v6958_v35, %v3704_v24  ;;  %v6753_v24 = vld [vmem:[#allocation13 + $0x204] ss:$8 sps:$4 sm:$0xff]  }
0x1002   :  { %v3735_v37 = vpack.c.bf16 %v3715_v33, %v3715_v33 }
0x1004   :  { %3860 = vmatmul.mubr.bf16.vlgmr.msra.gmra.mrb[40].mxu0 %v3735_v37 }
0x1005   :  { %4293 = vmatpush1.bf16.msra.mxu0 %v6655_v34 }
0x1006   :  { %4294 = vmatprep.subr.bf16.mxu0 %v6663_v38 }
0x1009   :  { %4295 = vmatpush1.bf16.msra.mxu0 %v6661_v39 }
0x100a   :  { %4296 = vmatprep.subr.bf16.mxu0 %v6669_v40 }
0x100d   :  { %4297 = vmatpush1.bf16.msra.mxu0 %v6667_v41 }
0x100e   :  { %4298 = vmatprep.subr.bf16.mxu0 %v6675_v42 }
0x1011   :  { %4299 = vmatpush1.bf16.msra.mxu0 %v6673_v43 }
0x1012   :  { %4300 = vmatprep.subr.bf16.mxu0 %v6681_v44 }
0x1015   :  { %4301 = vmatpush1.bf16.msra.mxu0 %v6679_v45 }
0x1016   :  { %4302 = vmatprep.subr.bf16.mxu0 %v6687_v46 }
0x1019   :  { %4303 = vmatpush1.bf16.msra.mxu0 %v6685_v47 }
0x101a   :  { %4304 = vmatprep.subr.bf16.mxu0 %v6693_v49  ;;  %v6751_v49 = vld [vmem:[#allocation13 + $0x200] ss:$8 sps:$4 sm:$0xff]  }
0x101d   :  { %4305 = vmatpush1.bf16.msra.mxu0 %v6691_v50 }
0x101e   :  { %4306 = vmatprep.subr.bf16.mxu0 %v6699_v51  ;;  %v6756_v51 = vld [vmem:[#allocation13 + $0x214] ss:$8 sps:$4 sm:$0xff]  }
0x1021   :  { %4307 = vmatpush1.bf16.msra.mxu0 %v6697_v52  ;;  %v6754_v52 = vld [vmem:[#allocation13 + $0x210] ss:$8 sps:$4 sm:$0xff]  }
0x1022   :  { %4308 = vmatprep.subr.bf16.mxu0 %v6705_v53  ;;  %v6759_v53 = vld [vmem:[#allocation13 + $0x224] ss:$8 sps:$4 sm:$0xff]  }
0x1025   :  { %4309 = vmatpush1.bf16.msra.mxu0 %v6703_v55  ;;  %v6762_v55 = vld [vmem:[#allocation13 + $0x234] ss:$8 sps:$4 sm:$0xff]  }
0x1026   :  { %4310 = vmatprep.subr.bf16.mxu0 %v6711_v56  ;;  %v6765_v56 = vld [vmem:[#allocation13 + $0x244] ss:$8 sps:$4 sm:$0xff]  }
0x1029   :  { %4311 = vmatpush1.bf16.msra.mxu0 %v6709_v58  ;;  %v6768_v58 = vld [vmem:[#allocation13 + $0x254] ss:$8 sps:$4 sm:$0xff]  }
0x102a   :  { %4312 = vmatprep.subr.bf16.mxu0 %v6717_v59  ;;  %v6771_v59 = vld [vmem:[#allocation13 + $0x264] ss:$8 sps:$4 sm:$0xff]  }
0x102d   :  { %4313 = vmatpush1.bf16.msra.mxu0 %v6715_v61  ;;  %v6774_v61 = vld [vmem:[#allocation13 + $0x274] ss:$8 sps:$4 sm:$0xff]  }
0x102e   :  { %4314 = vmatprep.subr.bf16.mxu0 %v6723_v4  ;;  %v6777_v4 = vld [vmem:[#allocation13 + $0x284] ss:$8 sps:$4 sm:$0xff]  }
0x1031   :  { %4315 = vmatpush1.bf16.msra.mxu0 %v6721_v6  ;;  %v6780_v6 = vld [vmem:[#allocation13 + $0x294] ss:$8 sps:$4 sm:$0xff]  }
0x1032   :  { %4316 = vmatprep.subr.bf16.mxu0 %v6729_v8  ;;  %v6783_v8 = vld [vmem:[#allocation13 + $0x2a4] ss:$8 sps:$4 sm:$0xff]  }
0x1035   :  { %4317 = vmatpush1.bf16.msra.mxu0 %v6727_v10  ;;  %v6786_v10 = vld [vmem:[#allocation13 + $0x2b4] ss:$8 sps:$4 sm:$0xff]  }
0x1036   :  { %4318 = vmatprep.subr.bf16.mxu0 %v6735_v32  ;;  %v6789_v32 = vld [vmem:[#allocation13 + $0x2c4] ss:$8 sps:$4 sm:$0xff]  }
0x1039   :  { %4319 = vmatpush1.bf16.msra.mxu0 %v6733_v13  ;;  %v6792_v13 = vld [vmem:[#allocation13 + $0x2d4] ss:$8 sps:$4 sm:$0xff]  }
0x103a   :  { %4320 = vmatprep.subr.bf16.mxu0 %v6741_v15  ;;  %v6795_v15 = vld [vmem:[#allocation13 + $0x2e4] ss:$8 sps:$4 sm:$0xff]  }
0x103d   :  { %4321 = vmatpush1.bf16.msra.mxu0 %v6739_v18  ;;  %v6798_v18 = vld [vmem:[#allocation13 + $0x2f4] ss:$8 sps:$4 sm:$0xff]  }
0x103e   :  { %4322 = vmatprep.subr.bf16.mxu0 %v6747_v20  ;;  %v6801_v20 = vld [vmem:[#allocation13 + $0x304] ss:$8 sps:$4 sm:$0xff]  }
0x1041   :  { %4323 = vmatpush1.bf16.msra.mxu0 %v6745_v22  ;;  %v3955_v22 = vrot.slane %v3948_v21, %v7420_v1 }
0x1042   :  { %4804 = vmatprep.subr.bf16.mxu0 %v6753_v24  ;;  %v3967_v24 = vrot.slane %v3948_v21, %v2482_v36 }
0x10d7   :  { %v3861_v29 = vpop.f32.mrb[40].mxu0 }
0x10d8   :  { %v3862_v30 = vadd.f32 %v3861_v29, %v3740_v26  ;;  %v3863_v31 = vpop.f32.mrb[41].mxu0 }
0x10d9   :  { %v3864_v35 = vadd.f32 %v3863_v31, %v3744_v28  ;;  %v3865_v33 = vpop.f32.mrb[42].mxu0 }
0x10da   :  { %v5624_v34 = vmul.f32 -1.442695, %v3862_v30  ;;  %v3866_v37 = vpop.f32.mrb[43].mxu0 }
0x10db   :  { %v5625_v38 = vmul.f32 -1.442695, %v3864_v35 }
0x10dc   :  { %6959 = vpow2.f32 %v5624_v34 }
0x10dd   :  { %6961 = vpow2.f32 %v5625_v38 }
0x10e6   :  { %v6960_v39 = vpop.eup %6959 }
0x10e7   :  { %v6962_v40 = vpop.eup %6961  ;;  %v3874_v41 = vadd.f32 1.0, %v6960_v39 }
0x10e8   :  { %v3875_v42 = vadd.f32 1.0, %v6962_v40 }
0x10e9   :  { %6963 = vrcp.f32 %v3874_v41 }
0x10ea   :  { %6965 = vrcp.f32 %v3875_v42 }
0x10f3   :  { %v6964_v43 = vpop.eup %6963 }
0x10f4   :  { %v6966_v44 = vpop.eup %6965  ;;  %v3880_v45 = vmul.f32 %v6964_v43, %v3862_v30 }
0x10f5   :  { %v3881_v46 = vmul.f32 %v6966_v44, %v3864_v35 }
0x10f6   :  { %v3949_v50 = vpack.c.bf16 %v3880_v45, %v3880_v45 }
0x10f7   :  { %v3950_v47 = vpack.c.bf16 %v3881_v46, %v3881_v46 }
0x10f9   :  { %4324 = vmatprep.mubr.bf16.mxu0 %v3950_v47  ;;  %4365 = vmatprep.mubr.bf16.mxu1 %v3950_v47 }
0x10fa   :  { %4325 = vmatmul.mubr.bf16.vlgmr.msra.gmra.mrb[44].mxu0 %v3949_v50  ;;  %4366 = vmatmul.mubr.bf16.vlgmr.msra.gmra.mrb[40].mxu1 %v3949_v50 }
0x10fb   :  { %4805 = vmatpush1.bf16.msra.mxu0 %v6751_v49 }
0x10fc   :  { %4806 = vmatprep.subr.bf16.mxu0 %v6756_v51 }
0x10ff   :  { %4807 = vmatpush1.bf16.msra.mxu0 %v6754_v52 }
0x1100   :  { %4808 = vmatprep.subr.bf16.mxu0 %v6759_v53 }
0x1103   :  { %4809 = vmatpush1.bf16.msra.mxu0 %v6757_v54 }
0x1104   :  { %4810 = vmatprep.subr.bf16.mxu0 %v6762_v55  ;;  %v6799_v55 = vld [vmem:[#allocation13 + $0x300] ss:$8 sps:$4 sm:$0xff]  }
0x1107   :  { %4811 = vmatpush1.bf16.msra.mxu0 %v6760_v62 }
0x1108   :  { %4812 = vmatprep.subr.bf16.mxu0 %v6765_v56  ;;  %v6804_v56 = vld [vmem:[#allocation13 + $0x314] ss:$8 sps:$4 sm:$0xff]  }
0x110b   :  { %4813 = vmatpush1.bf16.msra.mxu0 %v6763_v57 }
0x110c   :  { %4814 = vmatprep.subr.bf16.mxu0 %v6768_v58  ;;  %v6802_v58 = vld [vmem:[#allocation13 + $0x310] ss:$8 sps:$4 sm:$0xff]  }
0x110f   :  { %4815 = vmatpush1.bf16.msra.mxu0 %v6766_v27  ;;  %v6807_v27 = vld [vmem:[#allocation13 + $0x324] ss:$8 sps:$4 sm:$0xff]  }
0x1110   :  { %4816 = vmatprep.subr.bf16.mxu0 %v6771_v59  ;;  %v6805_v59 = vld [vmem:[#allocation13 + $0x320] ss:$8 sps:$4 sm:$0xff]  }
0x1113   :  { %4817 = vmatpush1.bf16.msra.mxu0 %v6769_v60  ;;  %v6810_v60 = vld [vmem:[#allocation13 + $0x334] ss:$8 sps:$4 sm:$0xff]  }
0x1114   :  { %4818 = vmatprep.subr.bf16.mxu0 %v6774_v61  ;;  %v6808_v61 = vld [vmem:[#allocation13 + $0x330] ss:$8 sps:$4 sm:$0xff]  }
0x1117   :  { %4819 = vmatpush1.bf16.msra.mxu0 %v6772_v2  ;;  %v6813_v2 = vld [vmem:[#allocation13 + $0x344] ss:$8 sps:$4 sm:$0xff]  }
0x1118   :  { %4820 = vmatprep.subr.bf16.mxu0 %v6777_v4  ;;  %v6811_v4 = vld [vmem:[#allocation13 + $0x340] ss:$8 sps:$4 sm:$0xff]  }
0x111b   :  { %4821 = vmatpush1.bf16.msra.mxu0 %v6775_v5  ;;  %v6816_v5 = vld [vmem:[#allocation13 + $0x354] ss:$8 sps:$4 sm:$0xff]  }
0x111c   :  { %4822 = vmatprep.subr.bf16.mxu0 %v6780_v6  ;;  %v3963_v6 = vrot.slane %v3948_v21, %v2478_v17  ;;  %v6826_v17 = vld [vmem:[#allocation13 + $0x390] ss:$8 sps:$4 sm:$0xff]  }
0x111d   :  { %v6832_v21 = vld [vmem:[#allocation13 + $0x3b0] ss:$8 sps:$4 sm:$0xff]  }
0x111f   :  { %4823 = vmatpush1.bf16.msra.mxu0 %v6778_v7  ;;  %v6814_v7 = vld [vmem:[#allocation13 + $0x350] ss:$8 sps:$4 sm:$0xff]  }
0x1120   :  { %4824 = vmatprep.subr.bf16.mxu0 %v6783_v8  ;;  %v6819_v8 = vld [vmem:[#allocation13 + $0x364] ss:$8 sps:$4 sm:$0xff]  }
0x1123   :  { %4825 = vmatpush1.bf16.msra.mxu0 %v6781_v9 }
0x1124   :  { %4826 = vmatprep.subr.bf16.mxu0 %v6786_v10  ;;  %v6817_v10 = vld [vmem:[#allocation13 + $0x360] ss:$8 sps:$4 sm:$0xff]  }
0x1127   :  { %4827 = vmatpush1.bf16.msra.mxu0 %v6784_v11  ;;  %v6822_v11 = vld [vmem:[#allocation13 + $0x374] ss:$8 sps:$4 sm:$0xff]  }
0x1128   :  { %4828 = vmatprep.subr.bf16.mxu0 %v6789_v32 }
0x112b   :  { %4829 = vmatpush1.bf16.msra.mxu0 %v6787_v12  ;;  %v6820_v12 = vld [vmem:[#allocation13 + $0x370] ss:$8 sps:$4 sm:$0xff]  }
0x112c   :  { %4830 = vmatprep.subr.bf16.mxu0 %v6792_v13  ;;  %v6825_v13 = vld [vmem:[#allocation13 + $0x384] ss:$8 sps:$4 sm:$0xff]  }
0x112f   :  { %4831 = vmatpush1.bf16.msra.mxu0 %v6790_v14  ;;  %v6823_v14 = vld [vmem:[#allocation13 + $0x380] ss:$8 sps:$4 sm:$0xff]  }
0x1130   :  { %4832 = vmatprep.subr.bf16.mxu0 %v6795_v15  ;;  %v6831_v15 = vld [vmem:[#allocation13 + $0x3a4] ss:$8 sps:$4 sm:$0xff]  }
0x1133   :  { %4833 = vmatpush1.bf16.msra.mxu0 %v6793_v16  ;;  %v6829_v16 = vld [vmem:[#allocation13 + $0x3a0] ss:$8 sps:$4 sm:$0xff]  }
0x1134   :  { %4834 = vmatprep.subr.bf16.mxu0 %v6798_v18 }
0x1137   :  { %4835 = vmatpush1.bf16.msra.mxu0 %v6796_v19  ;;  %v6834_v19 = vld [vmem:[#allocation13 + $0x3b4] ss:$8 sps:$4 sm:$0xff]  }
0x1138   :  { %4845 = vmatprep.subr.bf16.mxu0 %v6801_v20 }
0x11cd   :  { %v4326_v25 = vpop.f32.mrb[44].mxu0  ;;  %v4367_v26 = vpop.f32.mrb[40].mxu1 }
0x11ce   :  { %v4327_v28 = vadd.f32 %v4326_v25, %v3955_v22  ;;  %v4328_v29 = vpop.f32.mrb[45].mxu0  ;;  %v4369_v30 = vpop.f32.mrb[41].mxu1  ;;  %v4368_v9 = vadd.f32 %v4367_v26, %v3963_v6  ;;  %v6837_v22 = vld [vmem:[#allocation13 + $0x3c4] ss:$8 sps:$4 sm:$0xff]   ;;  %v6838_v25 = vld [vmem:[#allocation13 + $0x3d0] ss:$8 sps:$4 sm:$0xff]  }
0x11cf   :  { %v4329_v31 = vadd.f32 %v4328_v29, %v3959_v23  ;;  %v4370_v35 = vadd.f32 %v4369_v30, %v3967_v24  ;;  %v4330_v33 = vpop.f32.mrb[46].mxu0  ;;  %v4371_v34 = vpop.f32.mrb[42].mxu1  ;;  %v6835_v23 = vld [vmem:[#allocation13 + $0x3c0] ss:$8 sps:$4 sm:$0xff]   ;;  %v6840_v24 = vld [vmem:[#allocation13 + $0x3d4] ss:$8 sps:$4 sm:$0xff]  }
0x11d0   :  { %v5690_v37 = vmul.f32 -1.442695, %v4327_v28  ;;  %v4331_v38 = vpop.f32.mrb[47].mxu0  ;;  %v4372_v39 = vpop.f32.mrb[43].mxu1  ;;  %v5692_v32 = vmul.f32 -1.442695, %v4368_v9 }
0x11d1   :  { %v5691_v40 = vmul.f32 -1.442695, %v4329_v31  ;;  %v5693_v41 = vmul.f32 -1.442695, %v4370_v35  ;;  %v6843_v26 = vld [vmem:[#allocation13 + $0x3e4] ss:$8 sps:$4 sm:$0xff]  }
0x11d2   :  { %6967 = vpow2.f32 %v5690_v37  ;;  %v6846_v29 = vld [vmem:[#allocation13 + $0x3f4] ss:$8 sps:$4 sm:$0xff]   ;;  %v6847_v34 = vld [vmem:[#allocation10 + $0x2c0] sm:$0xff]   ;;  %v6849_v38 = vld [vmem:[#allocation10 + $0x2c8] sm:$0xff]  }
0x11d3   :  { %6969 = vpow2.f32 %v5691_v40  ;;  %v6848_v37 = vld [vmem:[#allocation10 + $0x280] sm:$0xff]   ;;  %5962 = vmatprep.subr.bf16.mxu1 %v6847_v34  ;;  %v6850_v39 = vld [vmem:[#allocation10 + $0x288] sm:$0xff]   ;;  %v6851_v40 = vld [vmem:[#allocation10 + $0x2d0] sm:$0xff]  }
0x11d4   :  { %6971 = vpow2.f32 %v5693_v41  ;;  %5963 = vmatpush3.bf16.msra.mxu1 %v6848_v37  ;;  %v6852_v41 = vld [vmem:[#allocation10 + $0x290] sm:$0xff]  }
0x11d5   :  { %5964 = vmatprep.subr.bf16.mxu1 %v6849_v38 }
0x11d8   :  { %5965 = vmatpush3.bf16.msra.mxu1 %v6850_v39 }
0x11d9   :  { %5966 = vmatprep.subr.bf16.mxu1 %v6851_v40 }
0x11dc   :  { %v6968_v42 = vpop.eup %6967  ;;  %5967 = vmatpush3.bf16.msra.mxu1 %v6852_v41 }
0x11dd   :  { %v4386_v43 = vadd.f32 1.0, %v6968_v42  ;;  %v6970_v36 = vpop.eup %6969  ;;  %v6853_v42 = vld [vmem:[#allocation10 + $0x2d8] sm:$0xff]  }
0x11de   :  { %v6972_v44 = vpop.eup %6971  ;;  %v4387_v45 = vadd.f32 1.0, %v6970_v36  ;;  %5968 = vmatprep.subr.bf16.mxu1 %v6853_v42  ;;  %v6855_v36 = vld [vmem:[#allocation10 + $0x2e0] sm:$0xff]  }
0x11df   :  { %6973 = vrcp.f32 %v4386_v43  ;;  %v4389_v46 = vadd.f32 1.0, %v6972_v44  ;;  %v6854_v43 = vld [vmem:[#allocation10 + $0x298] sm:$0xff]   ;;  %v6856_v44 = vld [vmem:[#allocation10 + $0x2a0] sm:$0xff]  }
0x11e0   :  { %6975 = vrcp.f32 %v4387_v45  ;;  %5969 = vmatpush3.bf16.msra.mxu1 %v6854_v43  ;;  %v6857_v45 = vld [vmem:[#allocation10 + $0x2e8] sm:$0xff]  }
0x11e1   :  { %6977 = vrcp.f32 %v4389_v46  ;;  %5970 = vmatprep.subr.bf16.mxu1 %v6855_v36  ;;  %v6858_v46 = vld [vmem:[#allocation10 + $0x2a8] sm:$0xff]  }
0x11e2   :  { %6979 = vpow2.f32 %v5692_v32  ;;  %v6865_v32 = vld [vmem:[#allocation7 + $0x1d0] sm:$0xff]  }
0x11e4   :  { %5971 = vmatpush3.bf16.msra.mxu1 %v6856_v44 }
0x11e5   :  { %5972 = vmatprep.subr.bf16.mxu1 %v6857_v45 }
0x11e8   :  { %5973 = vmatpush3.bf16.msra.mxu1 %v6858_v46 }
0x11e9   :  { %v6974_v47 = vpop.eup %6973 }
0x11ea   :  { %v6976_v49 = vpop.eup %6975  ;;  %v4398_v50 = vmul.f32 %v6974_v47, %v4327_v28  ;;  %v6841_v28 = vld [vmem:[#allocation13 + $0x3e0] ss:$8 sps:$4 sm:$0xff]   ;;  %v6859_v47 = vld [vmem:[#allocation10 + $0x2f0] sm:$0xff]  }
0x11eb   :  { %v6978_v51 = vpop.eup %6977  ;;  %v4399_v52 = vmul.f32 %v6976_v49, %v4329_v31  ;;  %v6844_v31 = vld [vmem:[#allocation13 + $0x3f0] ss:$8 sps:$4 sm:$0xff]   ;;  %5974 = vmatprep.subr.bf16.mxu1 %v6859_v47 }
0x11ec   :  { %v4401_v53 = vmul.f32 %v6978_v51, %v4370_v35  ;;  %v4469_v62 = vpack.c.bf16 %v4398_v50, %v4398_v50  ;;  %v6980_v18 = vpop.eup %6979  ;;  %v6860_v49 = vld [vmem:[#allocation10 + $0x2b0] sm:$0xff]   ;;  %v6861_v50 = vld [vmem:[#allocation10 + $0x2f8] sm:$0xff]  }
0x11ed   :  { %v4470_v54 = vpack.c.bf16 %v4399_v52, %v4399_v52  ;;  %v4388_v20 = vadd.f32 1.0, %v6980_v18  ;;  %5975 = vmatpush3.bf16.msra.mxu1 %v6860_v49  ;;  %v6862_v51 = vld [vmem:[#allocation10 + $0x2b8] sm:$0xff]  }
0x11ee   :  { %v4472_v57 = vpack.c.bf16 %v4401_v53, %v4401_v53  ;;  %5976 = vmatprep.subr.bf16.mxu1 %v6861_v50  ;;  %v5694_v52 = vld [vmem:[%s7621_s8 + $0xe] sm:$0x3] }
0x11ef   :  { %4836 = vmatprep.mubr.bf16.mxu0 %v4470_v54  ;;  %6981 = vrcp.f32 %v4388_v20  ;;  %v4477_v53 = vrot.slane %v5694_v52, %v7420_v1  ;;  %v4481_v54 = vrot.slane %v5694_v52, %v7426_v3 }
0x11f0   :  { %4837 = vmatmul.mubr.bf16.vlgmr.msra.gmra.mrb[48].mxu0 %v4469_v62 }
0x11f1   :  { %4846 = vmatpush1.bf16.msra.mxu0 %v6799_v55  ;;  %4877 = vmatprep.mubr.bf16.mxu0 %v4472_v57 }
0x11f2   :  { %4847 = vmatprep.subr.bf16.mxu0 %v6804_v56  ;;  %5977 = vmatpush3.bf16.msra.mxu1 %v6862_v51 }
0x11f3   :  { %6133 = vmatprep.subr.bf16.mxu1 %v7217_v0 }
0x11f5   :  { %4848 = vmatpush1.bf16.msra.mxu0 %v6802_v58 }
0x11f6   :  { %4849 = vmatprep.subr.bf16.mxu0 %v6807_v27 }
0x11f9   :  { %4850 = vmatpush1.bf16.msra.mxu0 %v6805_v59  ;;  %v6982_v30 = vpop.eup %6981 }
0x11fa   :  { %4851 = vmatprep.subr.bf16.mxu0 %v6810_v60  ;;  %v4400_v35 = vmul.f32 %v6982_v30, %v4368_v9  ;;  %v6863_v9 = vld [vmem:[#allocation7 + $0x1c0] sm:$0xff]   ;;  %v6992_v30 = vld [vmem:[#allocation2] sm:$0xff] }
0x11fc   :  { %v4471_v33 = vpack.c.bf16 %v4400_v35, %v4400_v35 }
0x11fd   :  { %4852 = vmatpush1.bf16.msra.mxu0 %v6808_v61 }
0x11fe   :  { %4853 = vmatprep.subr.bf16.mxu0 %v6813_v2 }
0x1201   :  { %4854 = vmatpush1.bf16.msra.mxu0 %v6811_v4 }
0x1202   :  { %4855 = vmatprep.subr.bf16.mxu0 %v6816_v5 }
0x1205   :  { %4856 = vmatpush1.bf16.msra.mxu0 %v6814_v7 }
0x1206   :  { %4857 = vmatprep.subr.bf16.mxu0 %v6819_v8 }
0x1209   :  { %4858 = vmatpush1.bf16.msra.mxu0 %v6817_v10 }
0x120a   :  { %4859 = vmatprep.subr.bf16.mxu0 %v6822_v11  ;;  %v6864_v11 = vld [vmem:[#allocation7 + $0x1c8] sm:$0xff]  }
0x120d   :  { %4860 = vmatpush1.bf16.msra.mxu0 %v6820_v12  ;;  %v6866_v12 = vld [vmem:[#allocation7 + $0x1d8] sm:$0xff]  }
0x120e   :  { %4861 = vmatprep.subr.bf16.mxu0 %v6825_v13  ;;  %v6867_v13 = vld [vmem:[#allocation7 + $0x1e0] sm:$0xff]  }
0x1211   :  { %4862 = vmatpush1.bf16.msra.mxu0 %v6823_v14  ;;  %v6868_v14 = vld [vmem:[#allocation7 + $0x1e8] sm:$0xff]  }
0x1212   :  { %4863 = vmatprep.subr.bf16.mxu0 %v6828_v63  ;;  %v6869_v63 = vld [vmem:[#allocation7 + $0x1f0] sm:$0xff]  }
0x1215   :  { %4864 = vmatpush1.bf16.msra.mxu0 %v6826_v17  ;;  %v6870_v17 = vld [vmem:[#allocation7 + $0x1f8] sm:$0xff]  }
0x1216   :  { %4865 = vmatprep.subr.bf16.mxu0 %v6831_v15 }
0x1219   :  { %4866 = vmatpush1.bf16.msra.mxu0 %v6829_v16  ;;  %v5762_v16 = vld [vmem:[%s7620_s7 + $0xb] ss:$0 sm:$0xff] }
0x121a   :  { %4867 = vmatprep.subr.bf16.mxu0 %v6834_v19 }
0x121d   :  { %4868 = vmatpush1.bf16.msra.mxu0 %v6832_v21 }
0x121e   :  { %4869 = vmatprep.subr.bf16.mxu0 %v6837_v22 }
0x1221   :  { %4870 = vmatpush1.bf16.msra.mxu0 %v6835_v23 }
0x1222   :  { %4871 = vmatprep.subr.bf16.mxu0 %v6840_v24 }
0x1225   :  { %4872 = vmatpush1.bf16.msra.mxu0 %v6838_v25 }
0x1226   :  { %4873 = vmatprep.subr.bf16.mxu0 %v6843_v26 }
0x1229   :  { %4874 = vmatpush1.bf16.msra.mxu0 %v6841_v28 }
0x122a   :  { %4875 = vmatprep.subr.bf16.mxu0 %v6846_v29 }
0x122d   :  { %4876 = vmatpush1.bf16.msra.mxu0 %v6844_v31 }
0x1230   :  { %4878 = vmatmul.mubr.bf16.vlgmr.msra.gmra.mrb[48].mxu0 %v4471_v33 }
0x1303   :  { %v4879_v55 = vpop.f32.mrb[48].mxu0 }
0x1304   :  { %v6155_v62 = vadd.f32 %v4879_v55, %v4477_v53  ;;  %v4881_v56 = vpop.f32.mrb[49].mxu0 }
0x1305   :  { %v6156_v57 = vadd.f32 %v4881_v56, %v4481_v54  ;;  %v4883_v58 = vpop.f32.mrb[50].mxu0 }
0x1306   :  { %v5759_v27 = vmul.f32 -1.442695, %v6155_v62  ;;  %v4884_v59 = vpop.f32.mrb[51].mxu0 }
0x1307   :  { %v5760_v60 = vmul.f32 -1.442695, %v6156_v57 }
0x1308   :  { %6983 = vpow2.f32 %v5759_v27 }
0x1309   :  { %6985 = vpow2.f32 %v5760_v60 }
0x1312   :  { %v6984_v61 = vpop.eup %6983 }
0x1313   :  { %v6986_v2 = vpop.eup %6985  ;;  %v4892_v4 = vadd.f32 1.0, %v6984_v61 }
0x1314   :  { %v4893_v5 = vadd.f32 1.0, %v6986_v2 }
0x1315   :  { %6987 = vrcp.f32 %v4892_v4 }
0x1316   :  { %6989 = vrcp.f32 %v4893_v5 }
0x131f   :  { %v6988_v6 = vpop.eup %6987 }
0x1320   :  { %v6990_v1 = vpop.eup %6989  ;;  %v4898_v7 = vmul.f32 %v6988_v6, %v6155_v62 }
0x1321   :  { %v4899_v3 = vmul.f32 %v6990_v1, %v6156_v57 }
0x1322   :  { %v4935_v10 = vpack.c.bf16 %v4898_v7, %v4898_v7 }
0x1323   :  { %v4936_v8 = vpack.c.bf16 %v4899_v3, %v4899_v3 }
0x1325   :  { %5071 = vmatprep.mubr.bf16.mxu1 %v4936_v8 }
0x1326   :  { %5072 = vmatmul.mubr.bf16.vlgmr.msra.gmra.mrb[44].mxu1 %v4935_v10 }
0x1327   :  { %6134 = vmatpush3.bf16.msra.mxu1 %v6863_v9  ;;  %6149 = vmatprep.mubr.msk.bf16.mxu1 %vm7218_vm0, %v7217_v0 }
0x1328   :  { %6135 = vmatprep.subr.bf16.mxu1 %v7217_v0 }
0x132b   :  { %6136 = vmatpush3.bf16.msra.mxu1 %v6864_v11 }
0x132c   :  { %6137 = vmatprep.subr.bf16.mxu1 %v7217_v0 }
0x132f   :  { %6138 = vmatpush3.bf16.msra.mxu1 %v6865_v32 }
0x1330   :  { %6139 = vmatprep.subr.bf16.mxu1 %v7217_v0 }
0x1333   :  { %6140 = vmatpush3.bf16.msra.mxu1 %v6866_v12 }
0x1334   :  { %6141 = vmatprep.subr.bf16.mxu1 %v7217_v0 }
0x1337   :  { %6142 = vmatpush3.bf16.msra.mxu1 %v6867_v13 }
0x1338   :  { %6143 = vmatprep.subr.bf16.mxu1 %v7217_v0 }
0x133b   :  { %6144 = vmatpush3.bf16.msra.mxu1 %v6868_v14 }
0x133c   :  { %6145 = vmatprep.subr.bf16.mxu1 %v7217_v0 }
0x133f   :  { %6146 = vmatpush3.bf16.msra.mxu1 %v6869_v63 }
0x1340   :  { %6147 = vmatprep.subr.bf16.mxu1 %v7217_v0  ;;  %v5780_v0 = vld [vmem:[%s7620_s7 + $0xc] ss:$0 sm:$0xff] }
0x1343   :  { %6148 = vmatpush3.bf16.msra.mxu1 %v6870_v17 }
0x13f9   :  { %v5978_v15 = vpop.f32.mrb[44].mxu1 }
0x13fa   :  { %v5979_v18 = vpop.f32.mrb[45].mxu1 }
0x13fb   :  { %v5980_v19 = vadd.f32 %v5979_v18, %v5978_v15  ;;  %v5981_v20 = vpop.f32.mrb[46].mxu1 }
0x13fc   :  { %v5982_v21 = vpop.f32.mrb[47].mxu1 }
0x13fd   :  { %v5074_v22 = vadd.f32 %v5980_v19, %v5762_v16 }
0x13ff   :  { %v5079_v23 = vadd.f32 %v5074_v22, %v7560_v48 }
0x1401   :  { %v5099_v24 = vpack.c.bf16 %v5079_v23, %v5079_v23 }
0x1403   :  { %6150 = vmatmul.mubr.bf16.vlgmr.msra.gmra.mrb[48].mxu1 %v5099_v24 }
0x14d6   :  { %v5188_v25 = vpop.f32.mrb[48].mxu1 }
0x14d7   :  { %v5189_v26 = vadd.f32 %v5780_v0, %v5188_v25  ;;  %v6151_v28 = vpop.f32.mrb[49].mxu1 }
0x14d8   :  { %v5191_v29 = vpop.f32.mrb[50].mxu1 }
0x14d9   :  { %v5194_v31 = vsub.f32 %v6992_v30, %v5189_v26  ;;  %v6152_v35 = vpop.f32.mrb[51].mxu1 }
0x14db   :  { %5195 = vst [vmem:[#allocation16] sm:$0xff] %v5194_v31 }
0x14dc   :  { %7180 = shalt.err (!%p7177_p12)
}
0x14dd   :  { %s7181_s23 = scalar_lea.hbm %s7623_s10, 128 }
0x14de   :  { %p7182_p13 = scmp.ne.s32.totalorder %s7623_s10, %s7181_s23  ;;  %p7185_p0 = scmp.lt.u32.totalorder %s7181_s23, %s7623_s10 }
0x14e0   :  { %p7187_p1 = pnand %p7185_p0, %p7182_p13 }
0x14e2   :  { %7190 = shalt.err (!%p7187_p1)
}
0x14e3   :  { %5205 = dma.vmem_to_hbm [thread:$0]  %s5203_s4, 128, %s7623_s10, [#allocation4]  }
0x14e4   :  { %7201 = dma.done.wait [#allocation4], 128  }
0x14e5   :  { %7202 = vsyncadd [#allocation4], 4294967168 }
0x14e6   :  { %5209 = vsyncpa [#allocation3], 1 }
0x14e7   :  { %5210 = vsyncpa [#allocation6], 1 }
0x14e8   :  { %5211 = vsyncpa [#allocation9], 1 }
0x14e9   :  { %5212 = vsyncpa [#allocation12], 1 }
0x14ea   :  { %5213 = vsyncpa [#allocation15], 1 }
0x14eb   :  { %5214 = vsyncpa [#allocation4], 1 }

</bundles_post_ra>
